<compile_context>
chip_gen: v7x
topology: tpu7x:2x2x1
jax: 0.10.0
libtpu: 0.0.40
codegen_flags: <defaults>
</compile_context>

<pallas_src>
import functools
import math

import jax
import jax.numpy as jnp
from jax.experimental import pallas as pl
from jax.experimental.pallas import tpu as pltpu

# ------------------------- small synthetic config --------------------------
VOCAB = 100
B = 2          # batch (per tower)
S = 8          # sequence length
H = 32         # hidden size (real MiniLM: 384)
NH = 2         # attention heads
DH = H // NH   # head dim
FFN = 64       # intermediate size
LAYERS = 2     # encoder layers (real MiniLM: 6)
LN_EPS = 1e-12


def _layernorm(x, gamma, beta, eps=LN_EPS):
  mu = jnp.mean(x, axis=-1, keepdims=True)
  var = jnp.mean(jnp.square(x - mu), axis=-1, keepdims=True)
  return (x - mu) * jax.lax.rsqrt(var + eps) * gamma + beta


# ------------------- fully fused encoder + pool + head ---------------------
def fused_sbert_kernel(x_ref, mask_row_ref, mask_col_ref, qw_ref,
                       wq_ref, bq_ref, wk_ref, bk_ref, wv_ref, bv_ref,
                       wo_ref, bo_ref, ln1g_ref, ln1b_ref,
                       w1_ref, b1_ref, w2_ref, b2_ref, ln2g_ref, ln2b_ref,
                       qww_ref, qwb_ref, cw1_ref, cb1_ref, cw2_ref, cb2_ref,
                       out_ref):
  bb = x_ref.shape[0]          # 2*B : both siamese towers batched together
  half = bb // 2
  m_rows = bb * S

  # fold batch into the matmul M dimension for all projections
  x = x_ref[...].reshape(m_rows, H)                    # (2B*S, H)
  neg_bias = (1.0 - mask_row_ref[...]) * (-1e9)        # (2B, 1, S) additive mask
  scale = 1.0 / math.sqrt(DH)

  for l in range(LAYERS):                              # static unroll
    # fused (H, H) projections across all heads
    q = jnp.dot(x, wq_ref[l], preferred_element_type=jnp.float32) + bq_ref[l]
    k = jnp.dot(x, wk_ref[l], preferred_element_type=jnp.float32) + bk_ref[l]
    v = jnp.dot(x, wv_ref[l], preferred_element_type=jnp.float32) + bv_ref[l]
    q3 = q.reshape(bb, S, H)
    k3 = k.reshape(bb, S, H)
    v3 = v.reshape(bb, S, H)

    ctx_heads = []
    for h in range(NH):                                # static unroll over heads
      sl = slice(h * DH, (h + 1) * DH)
      qh = q3[:, :, sl]                                # (2B, S, DH)
      kh = k3[:, :, sl]
      vh = v3[:, :, sl]
      scores = jnp.einsum('bqd,bkd->bqk', qh, kh,
                          preferred_element_type=jnp.float32) * scale
      scores = scores + neg_bias                       # (2B, S, S)
      m = jnp.max(scores, axis=-1, keepdims=True)
      p = jnp.exp(scores - m)
      p = p * pl.reciprocal(jnp.sum(p, axis=-1, keepdims=True), approx=True)
      ctx_heads.append(jnp.einsum('bqk,bkd->bqd', p, vh,
                                  preferred_element_type=jnp.float32))
    ctx = jnp.concatenate(ctx_heads, axis=-1).reshape(m_rows, H)
    attn = (jnp.dot(ctx, wo_ref[l], preferred_element_type=jnp.float32)
            + bo_ref[l])

    x1 = _layernorm(x + attn, ln1g_ref[l], ln1b_ref[l])
    # TODO(synk): HF MiniLM uses exact erf-GELU; tanh-approx GELU used here.
    hmid = jax.nn.gelu(
        jnp.dot(x1, w1_ref[l], preferred_element_type=jnp.float32) + b1_ref[l],
        approximate=True)
    ffn = jnp.dot(hmid, w2_ref[l], preferred_element_type=jnp.float32) + b2_ref[l]
    x = _layernorm(x1 + ffn, ln2g_ref[l], ln2b_ref[l])

  # --------------- masked mean pooling (VMEM resident) ---------------
  x3 = x.reshape(bb, S, H)
  m_col = mask_col_ref[...]                            # (2B, S, 1)
  summed = jnp.sum(x3 * m_col, axis=1)                 # (2B, H)
  cnt = jnp.maximum(jnp.sum(m_col, axis=1), 1e-9)      # (2B, 1) (clamp min=1e-9)
  pooled = summed * pl.reciprocal(cnt, approx=True)

  q1e = pooled[:half]                                  # (B, H)
  q2e = pooled[half:]                                  # (B, H)

  # qw_dense: Linear(1, H) + ReLU — broadcast multiply instead of K=1 matmul
  qw_emb = jnp.maximum(qw_ref[...] * qww_ref[...] + qwb_ref[...], 0.0)   # (B, H)

  # classifier layer 1: concat + (B,4H)x(4H,H) replaced by 4 partial matmuls
  hid = (jnp.dot(q1e, cw1_ref[0], preferred_element_type=jnp.float32)
         + jnp.dot(q2e, cw1_ref[1], preferred_element_type=jnp.float32)
         + jnp.dot(jnp.abs(q1e - q2e), cw1_ref[2],
                   preferred_element_type=jnp.float32)
         + jnp.dot(qw_emb, cw1_ref[3], preferred_element_type=jnp.float32)
         + cb1_ref[...])
  hid = jnp.maximum(hid, 0.0)
  # nn.Dropout(0.1) is identity at inference time.
  out_ref[...] = (jnp.dot(hid, cw2_ref[...], preferred_element_type=jnp.float32)
                  + cb2_ref[...])


def _full_spec(a):
  return pl.BlockSpec(a.shape, lambda i, _nd=a.ndim: (0,) * _nd)


# ------------------------------ glue (plain JAX) ---------------------------
def embed(params, ids):
  # embedding gather + LayerNorm kept in plain JAX (data-dependent gather glue)
  x = (params['word_emb'][ids]
       + params['pos_emb'][None, :ids.shape[1], :]
       + params['type_emb'][None, None, 0, :])
  return _layernorm(x, params['emb_ln_g'], params['emb_ln_b'])


def sbert_siamese_forward(params, q1_ids, q1_mask, q2_ids, q2_mask, qw_diff):
  bsz = q1_ids.shape[0]
  # run both siamese towers through the shared encoder in one batch (2B)
  ids = jnp.concatenate([q1_ids, q2_ids], axis=0)                  # (2B, S)
  mask = jnp.concatenate([q1_mask, q2_mask], axis=0).astype(jnp.float32)

  x = embed(params, ids)                                           # (2B, S, H)
  mask_row = mask[:, None, :]                                      # (2B, 1, S)
  mask_col = mask[:, :, None]                                      # (2B, S, 1)
  qw = qw_diff[:, None].astype(jnp.float32)                        # (B, 1)

  args = (x, mask_row, mask_col, qw,
          params['wq'], params['bq'], params['wk'], params['bk'],
          params['wv'], params['bv'], params['wo'], params['bo'],
          params['ln1_g'], params['ln1_b'],
          params['w1'], params['b1'], params['w2'], params['b2'],
          params['ln2_g'], params['ln2_b'],
          params['qw_w'], params['qw_b'],
          params['cls_w1'], params['cls_b1'],
          params['cls_w2'], params['cls_b2'])

  logits = pl.pallas_call(
      fused_sbert_kernel,
      out_shape=jax.ShapeDtypeStruct((bsz, 1), jnp.float32),
      grid=(1,),
      in_specs=[_full_spec(a) for a in args],
      out_specs=pl.BlockSpec((bsz, 1), lambda i: (0, 0)),
      compiler_params=pltpu.CompilerParams(dimension_semantics=("arbitrary",)),
  )(*args)
  return logits[:, 0]                                              # .squeeze(1)


# ---------------------------- deterministic init ---------------------------
def init_params(key):
  def dense(k, shape, scale=0.02):
    return scale * jax.random.normal(k, shape, jnp.float32)

  keys = iter(jax.random.split(key, 32))
  params = dict(
      word_emb=dense(next(keys), (VOCAB, H)),
      pos_emb=dense(next(keys), (S, H)),
      type_emb=dense(next(keys), (2, H)),
      emb_ln_g=jnp.ones((H,), jnp.float32),
      emb_ln_b=jnp.zeros((H,), jnp.float32),
      # encoder weights stacked along a leading layer axis (single fused call)
      wq=dense(next(keys), (LAYERS, H, H)),
      bq=jnp.zeros((LAYERS, 1, H), jnp.float32),
      wk=dense(next(keys), (LAYERS, H, H)),
      bk=jnp.zeros((LAYERS, 1, H), jnp.float32),
      wv=dense(next(keys), (LAYERS, H, H)),
      bv=jnp.zeros((LAYERS, 1, H), jnp.float32),
      wo=dense(next(keys), (LAYERS, H, H)),
      bo=jnp.zeros((LAYERS, 1, H), jnp.float32),
      ln1_g=jnp.ones((LAYERS, 1, H), jnp.float32),
      ln1_b=jnp.zeros((LAYERS, 1, H), jnp.float32),
      w1=dense(next(keys), (LAYERS, H, FFN)),
      b1=jnp.zeros((LAYERS, 1, FFN), jnp.float32),
      w2=dense(next(keys), (LAYERS, FFN, H)),
      b2=jnp.zeros((LAYERS, 1, H), jnp.float32),
      ln2_g=jnp.ones((LAYERS, 1, H), jnp.float32),
      ln2_b=jnp.zeros((LAYERS, 1, H), jnp.float32),
      # head
      qw_w=dense(next(keys), (1, H)),
      qw_b=jnp.zeros((1, H), jnp.float32),
      cls_w1=dense(next(keys), (4, H, H)),     # pre-split rows of (4H, H)
      cls_b1=jnp.zeros((1, H), jnp.float32),
      cls_w2=dense(next(keys), (H, 1)),
      cls_b2=jnp.zeros((1, 1), jnp.float32),
  )
  return params


if __name__ == "__main__":
  root = jax.random.PRNGKey(0)
  k_par, k_q1, k_q2, k_qw = jax.random.split(root, 4)
  params = init_params(k_par)

  q1_ids = jax.random.randint(k_q1, (B, S), 0, VOCAB, dtype=jnp.int32)
  q2_ids = jax.random.randint(k_q2, (B, S), 0, VOCAB, dtype=jnp.int32)
  q1_mask = jnp.array([[1] * S, [1] * 6 + [0] * (S - 6)], dtype=jnp.int32)
  q2_mask = jnp.array([[1] * 7 + [0] * (S - 7), [1] * S], dtype=jnp.int32)
  qw_diff = jax.random.normal(k_qw, (B,), jnp.float32)

  fwd = jax.jit(functools.partial(sbert_siamese_forward, params))
  logits = fwd(q1_ids, q1_mask, q2_ids, q2_mask, qw_diff)
  jax.block_until_ready(logits)
  assert logits.shape == (B,)
  print("KERNEL_OK")
</pallas_src>

<mosaic_0001>
module attributes {stable_mosaic.version = 11 : i64} {
  func.func @fused_sbert_kernel(%arg0: i32, %arg1: memref<4x8x32xf32, #tpu.memory_space<vmem>>, %arg2: memref<4x1x8xf32, #tpu.memory_space<vmem>>, %arg3: memref<4x8x1xf32, #tpu.memory_space<vmem>>, %arg4: memref<2x1xf32, #tpu.memory_space<vmem>>, %arg5: memref<2x32x32xf32, #tpu.memory_space<vmem>>, %arg6: memref<2x1x32xf32, #tpu.memory_space<vmem>>, %arg7: memref<2x32x32xf32, #tpu.memory_space<vmem>>, %arg8: memref<2x1x32xf32, #tpu.memory_space<vmem>>, %arg9: memref<2x32x32xf32, #tpu.memory_space<vmem>>, %arg10: memref<2x1x32xf32, #tpu.memory_space<vmem>>, %arg11: memref<2x32x32xf32, #tpu.memory_space<vmem>>, %arg12: memref<2x1x32xf32, #tpu.memory_space<vmem>>, %arg13: memref<2x1x32xf32, #tpu.memory_space<vmem>>, %arg14: memref<2x1x32xf32, #tpu.memory_space<vmem>>, %arg15: memref<2x32x64xf32, #tpu.memory_space<vmem>>, %arg16: memref<2x1x64xf32, #tpu.memory_space<vmem>>, %arg17: memref<2x64x32xf32, #tpu.memory_space<vmem>>, %arg18: memref<2x1x32xf32, #tpu.memory_space<vmem>>, %arg19: memref<2x1x32xf32, #tpu.memory_space<vmem>>, %arg20: memref<2x1x32xf32, #tpu.memory_space<vmem>>, %arg21: memref<1x32xf32, #tpu.memory_space<vmem>>, %arg22: memref<1x32xf32, #tpu.memory_space<vmem>>, %arg23: memref<4x32x32xf32, #tpu.memory_space<vmem>>, %arg24: memref<1x32xf32, #tpu.memory_space<vmem>>, %arg25: memref<32x1xf32, #tpu.memory_space<vmem>>, %arg26: memref<1x1xf32, #tpu.memory_space<vmem>>, %arg27: memref<2x1xf32, #tpu.memory_space<vmem>>) attributes {dimension_semantics = [#tpu.dimension_semantics<arbitrary>], iteration_bounds = array<i64: 1>, scalar_prefetch = 0 : i64, scratch_operands = 0 : i64, tpu.core_type = #tpu.core_type<tc>, window_params = [{pipeline_mode = #tpu.pipeline_mode<synchronous>, transform_indices = @transform_0, window_bounds = array<i64: 4, 8, 32>}, {pipeline_mode = #tpu.pipeline_mode<synchronous>, transform_indices = @transform_1, window_bounds = array<i64: 4, 1, 8>}, {pipeline_mode = #tpu.pipeline_mode<synchronous>, transform_indices = @transform_2, window_bounds = array<i64: 4, 8, 1>}, {pipeline_mode = #tpu.pipeline_mode<synchronous>, transform_indices = @transform_3, window_bounds = array<i64: 2, 1>}, {pipeline_mode = #tpu.pipeline_mode<synchronous>, transform_indices = @transform_4, window_bounds = array<i64: 2, 32, 32>}, {pipeline_mode = #tpu.pipeline_mode<synchronous>, transform_indices = @transform_5, window_bounds = array<i64: 2, 1, 32>}, {pipeline_mode = #tpu.pipeline_mode<synchronous>, transform_indices = @transform_6, window_bounds = array<i64: 2, 32, 32>}, {pipeline_mode = #tpu.pipeline_mode<synchronous>, transform_indices = @transform_7, window_bounds = array<i64: 2, 1, 32>}, {pipeline_mode = #tpu.pipeline_mode<synchronous>, transform_indices = @transform_8, window_bounds = array<i64: 2, 32, 32>}, {pipeline_mode = #tpu.pipeline_mode<synchronous>, transform_indices = @transform_9, window_bounds = array<i64: 2, 1, 32>}, {pipeline_mode = #tpu.pipeline_mode<synchronous>, transform_indices = @transform_10, window_bounds = array<i64: 2, 32, 32>}, {pipeline_mode = #tpu.pipeline_mode<synchronous>, transform_indices = @transform_11, window_bounds = array<i64: 2, 1, 32>}, {pipeline_mode = #tpu.pipeline_mode<synchronous>, transform_indices = @transform_12, window_bounds = array<i64: 2, 1, 32>}, {pipeline_mode = #tpu.pipeline_mode<synchronous>, transform_indices = @transform_13, window_bounds = array<i64: 2, 1, 32>}, {pipeline_mode = #tpu.pipeline_mode<synchronous>, transform_indices = @transform_14, window_bounds = array<i64: 2, 32, 64>}, {pipeline_mode = #tpu.pipeline_mode<synchronous>, transform_indices = @transform_15, window_bounds = array<i64: 2, 1, 64>}, {pipeline_mode = #tpu.pipeline_mode<synchronous>, transform_indices = @transform_16, window_bounds = array<i64: 2, 64, 32>}, {pipeline_mode = #tpu.pipeline_mode<synchronous>, transform_indices = @transform_17, window_bounds = array<i64: 2, 1, 32>}, {pipeline_mode = #tpu.pipeline_mode<synchronous>, transform_indices = @transform_18, window_bounds = array<i64: 2, 1, 32>}, {pipeline_mode = #tpu.pipeline_mode<synchronous>, transform_indices = @transform_19, window_bounds = array<i64: 2, 1, 32>}, {pipeline_mode = #tpu.pipeline_mode<synchronous>, transform_indices = @transform_20, window_bounds = array<i64: 1, 32>}, {pipeline_mode = #tpu.pipeline_mode<synchronous>, transform_indices = @transform_21, window_bounds = array<i64: 1, 32>}, {pipeline_mode = #tpu.pipeline_mode<synchronous>, transform_indices = @transform_22, window_bounds = array<i64: 4, 32, 32>}, {pipeline_mode = #tpu.pipeline_mode<synchronous>, transform_indices = @transform_23, window_bounds = array<i64: 1, 32>}, {pipeline_mode = #tpu.pipeline_mode<synchronous>, transform_indices = @transform_24, window_bounds = array<i64: 32, 1>}, {pipeline_mode = #tpu.pipeline_mode<synchronous>, transform_indices = @transform_25, window_bounds = array<i64: 1, 1>}, {pipeline_mode = #tpu.pipeline_mode<synchronous>, transform_indices = @transform_26, window_bounds = array<i64: 2, 1>}]} {
    %c0 = arith.constant 0 : index
    %c0_0 = arith.constant 0 : index
    %c0_1 = arith.constant 0 : index
    %0 = vector.load %arg1[%c0, %c0_0, %c0_1] : memref<4x8x32xf32, #tpu.memory_space<vmem>>, vector<4x8x32xf32>
    %1 = vector.shape_cast %0 : vector<4x8x32xf32> to vector<32x32xf32>
    %c0_2 = arith.constant 0 : index
    %c0_3 = arith.constant 0 : index
    %c0_4 = arith.constant 0 : index
    %2 = vector.load %arg2[%c0_2, %c0_3, %c0_4] : memref<4x1x8xf32, #tpu.memory_space<vmem>>, vector<4x1x8xf32>
    %cst = arith.constant 1.000000e+00 : f32
    %3 = vector.broadcast %cst : f32 to vector<4x1x8xf32>
    %4 = arith.subf %3, %2 : vector<4x1x8xf32>
    %cst_5 = arith.constant -1.000000e+09 : f32
    %5 = vector.broadcast %cst_5 : f32 to vector<4x1x8xf32>
    %6 = arith.mulf %4, %5 : vector<4x1x8xf32>
    %c0_6 = arith.constant 0 : index
    %c0_7 = arith.constant 0 : index
    %c0_8 = arith.constant 0 : index
    %7 = vector.load %arg5[%c0_6, %c0_7, %c0_8] : memref<2x32x32xf32, #tpu.memory_space<vmem>>, vector<1x32x32xf32>
    %8 = vector.shape_cast %7 : vector<1x32x32xf32> to vector<32x32xf32>
    %cst_9 = arith.constant dense<0.000000e+00> : vector<32x32xf32>
    %9 = tpu.matmul %1, %8, %cst_9 {dimension_numbers = #tpu.dot_dimension_numbers<[1], [0], [0], [1], [0, 0, 1, 1], [], []>} : vector<32x32xf32>, vector<32x32xf32>, vector<32x32xf32> -> vector<32x32xf32>
    %c0_10 = arith.constant 0 : index
    %c0_11 = arith.constant 0 : index
    %c0_12 = arith.constant 0 : index
    %10 = vector.load %arg6[%c0_10, %c0_11, %c0_12] : memref<2x1x32xf32, #tpu.memory_space<vmem>>, vector<1x1x32xf32>
    %11 = vector.shape_cast %10 : vector<1x1x32xf32> to vector<1x32xf32>
    %12 = vector.broadcast %11 : vector<1x32xf32> to vector<32x32xf32>
    %13 = arith.addf %9, %12 : vector<32x32xf32>
    %c0_13 = arith.constant 0 : index
    %c0_14 = arith.constant 0 : index
    %c0_15 = arith.constant 0 : index
    %14 = vector.load %arg7[%c0_13, %c0_14, %c0_15] : memref<2x32x32xf32, #tpu.memory_space<vmem>>, vector<1x32x32xf32>
    %15 = vector.shape_cast %14 : vector<1x32x32xf32> to vector<32x32xf32>
    %cst_16 = arith.constant dense<0.000000e+00> : vector<32x32xf32>
    %16 = tpu.matmul %1, %15, %cst_16 {dimension_numbers = #tpu.dot_dimension_numbers<[1], [0], [0], [1], [0, 0, 1, 1], [], []>} : vector<32x32xf32>, vector<32x32xf32>, vector<32x32xf32> -> vector<32x32xf32>
    %c0_17 = arith.constant 0 : index
    %c0_18 = arith.constant 0 : index
    %c0_19 = arith.constant 0 : index
    %17 = vector.load %arg8[%c0_17, %c0_18, %c0_19] : memref<2x1x32xf32, #tpu.memory_space<vmem>>, vector<1x1x32xf32>
    %18 = vector.shape_cast %17 : vector<1x1x32xf32> to vector<1x32xf32>
    %19 = vector.broadcast %18 : vector<1x32xf32> to vector<32x32xf32>
    %20 = arith.addf %16, %19 : vector<32x32xf32>
    %c0_20 = arith.constant 0 : index
    %c0_21 = arith.constant 0 : index
    %c0_22 = arith.constant 0 : index
    %21 = vector.load %arg9[%c0_20, %c0_21, %c0_22] : memref<2x32x32xf32, #tpu.memory_space<vmem>>, vector<1x32x32xf32>
    %22 = vector.shape_cast %21 : vector<1x32x32xf32> to vector<32x32xf32>
    %cst_23 = arith.constant dense<0.000000e+00> : vector<32x32xf32>
    %23 = tpu.matmul %1, %22, %cst_23 {dimension_numbers = #tpu.dot_dimension_numbers<[1], [0], [0], [1], [0, 0, 1, 1], [], []>} : vector<32x32xf32>, vector<32x32xf32>, vector<32x32xf32> -> vector<32x32xf32>
    %c0_24 = arith.constant 0 : index
    %c0_25 = arith.constant 0 : index
    %c0_26 = arith.constant 0 : index
    %24 = vector.load %arg10[%c0_24, %c0_25, %c0_26] : memref<2x1x32xf32, #tpu.memory_space<vmem>>, vector<1x1x32xf32>
    %25 = vector.shape_cast %24 : vector<1x1x32xf32> to vector<1x32xf32>
    %26 = vector.broadcast %25 : vector<1x32xf32> to vector<32x32xf32>
    %27 = arith.addf %23, %26 : vector<32x32xf32>
    %28 = vector.shape_cast %13 : vector<32x32xf32> to vector<4x8x32xf32>
    %29 = vector.shape_cast %20 : vector<32x32xf32> to vector<4x8x32xf32>
    %30 = vector.shape_cast %27 : vector<32x32xf32> to vector<4x8x32xf32>
    %31 = vector.extract_strided_slice %28 {offsets = [0, 0, 0], sizes = [4, 8, 16], strides = [1, 1, 1]} : vector<4x8x32xf32> to vector<4x8x16xf32>
    %32 = vector.extract_strided_slice %29 {offsets = [0, 0, 0], sizes = [4, 8, 16], strides = [1, 1, 1]} : vector<4x8x32xf32> to vector<4x8x16xf32>
    %33 = vector.extract_strided_slice %30 {offsets = [0, 0, 0], sizes = [4, 8, 16], strides = [1, 1, 1]} : vector<4x8x32xf32> to vector<4x8x16xf32>
    "tpu.trace_start"() <{level = 10 : i32, message = "bqd,bkd->bqk"}> : () -> ()
    %cst_27 = arith.constant dense<0.000000e+00> : vector<4x8x8xf32>
    %34 = tpu.matmul %31, %32, %cst_27 {dimension_numbers = #tpu.dot_dimension_numbers<[2], [2], [1], [1], [0, 0, 0, 1, 1, 1], [0], [0]>} : vector<4x8x16xf32>, vector<4x8x16xf32>, vector<4x8x8xf32> -> vector<4x8x8xf32>
    "tpu.trace_stop"() : () -> ()
    %cst_28 = arith.constant 2.500000e-01 : f32
    %35 = vector.broadcast %cst_28 : f32 to vector<4x8x8xf32>
    %36 = arith.mulf %34, %35 : vector<4x8x8xf32>
    %37 = vector.broadcast %6 : vector<4x1x8xf32> to vector<4x8x8xf32>
    %38 = arith.addf %36, %37 : vector<4x8x8xf32>
    %cst_29 = arith.constant dense<0xFF800000> : vector<4x8xf32>
    %39 = vector.multi_reduction <maximumf>, %38, %cst_29 [2] : vector<4x8x8xf32> to vector<4x8xf32>
    %40 = vector.shape_cast %39 : vector<4x8xf32> to vector<4x8x1xf32>
    %41 = vector.broadcast %40 : vector<4x8x1xf32> to vector<4x8x8xf32>
    %42 = arith.subf %38, %41 : vector<4x8x8xf32>
    %43 = math.exp %42 : vector<4x8x8xf32>
    %cst_30 = arith.constant dense<0.000000e+00> : vector<4x8xf32>
    %44 = vector.multi_reduction <add>, %43, %cst_30 [2] : vector<4x8x8xf32> to vector<4x8xf32>
    %45 = vector.shape_cast %44 : vector<4x8xf32> to vector<4x8x1xf32>
    %46 = tpu.reciprocal %45 {approx = true} : vector<4x8x1xf32> -> vector<4x8x1xf32>
    %47 = vector.broadcast %46 : vector<4x8x1xf32> to vector<4x8x8xf32>
    %48 = arith.mulf %43, %47 : vector<4x8x8xf32>
    "tpu.trace_start"() <{level = 10 : i32, message = "bqk,bkd->bqd"}> : () -> ()
    %cst_31 = arith.constant dense<0.000000e+00> : vector<4x8x16xf32>
    %49 = tpu.matmul %48, %33, %cst_31 {dimension_numbers = #tpu.dot_dimension_numbers<[2], [1], [1], [2], [0, 0, 0, 1, 1, 2], [0], [0]>} : vector<4x8x8xf32>, vector<4x8x16xf32>, vector<4x8x16xf32> -> vector<4x8x16xf32>
    "tpu.trace_stop"() : () -> ()
    %50 = vector.extract_strided_slice %28 {offsets = [0, 0, 16], sizes = [4, 8, 16], strides = [1, 1, 1]} : vector<4x8x32xf32> to vector<4x8x16xf32>
    %51 = vector.extract_strided_slice %29 {offsets = [0, 0, 16], sizes = [4, 8, 16], strides = [1, 1, 1]} : vector<4x8x32xf32> to vector<4x8x16xf32>
    %52 = vector.extract_strided_slice %30 {offsets = [0, 0, 16], sizes = [4, 8, 16], strides = [1, 1, 1]} : vector<4x8x32xf32> to vector<4x8x16xf32>
    "tpu.trace_start"() <{level = 10 : i32, message = "bqd,bkd->bqk"}> : () -> ()
    %cst_32 = arith.constant dense<0.000000e+00> : vector<4x8x8xf32>
    %53 = tpu.matmul %50, %51, %cst_32 {dimension_numbers = #tpu.dot_dimension_numbers<[2], [2], [1], [1], [0, 0, 0, 1, 1, 1], [0], [0]>} : vector<4x8x16xf32>, vector<4x8x16xf32>, vector<4x8x8xf32> -> vector<4x8x8xf32>
    "tpu.trace_stop"() : () -> ()
    %cst_33 = arith.constant 2.500000e-01 : f32
    %54 = vector.broadcast %cst_33 : f32 to vector<4x8x8xf32>
    %55 = arith.mulf %53, %54 : vector<4x8x8xf32>
    %56 = vector.broadcast %6 : vector<4x1x8xf32> to vector<4x8x8xf32>
    %57 = arith.addf %55, %56 : vector<4x8x8xf32>
    %cst_34 = arith.constant dense<0xFF800000> : vector<4x8xf32>
    %58 = vector.multi_reduction <maximumf>, %57, %cst_34 [2] : vector<4x8x8xf32> to vector<4x8xf32>
    %59 = vector.shape_cast %58 : vector<4x8xf32> to vector<4x8x1xf32>
    %60 = vector.broadcast %59 : vector<4x8x1xf32> to vector<4x8x8xf32>
    %61 = arith.subf %57, %60 : vector<4x8x8xf32>
    %62 = math.exp %61 : vector<4x8x8xf32>
    %cst_35 = arith.constant dense<0.000000e+00> : vector<4x8xf32>
    %63 = vector.multi_reduction <add>, %62, %cst_35 [2] : vector<4x8x8xf32> to vector<4x8xf32>
    %64 = vector.shape_cast %63 : vector<4x8xf32> to vector<4x8x1xf32>
    %65 = tpu.reciprocal %64 {approx = true} : vector<4x8x1xf32> -> vector<4x8x1xf32>
    %66 = vector.broadcast %65 : vector<4x8x1xf32> to vector<4x8x8xf32>
    %67 = arith.mulf %62, %66 : vector<4x8x8xf32>
    "tpu.trace_start"() <{level = 10 : i32, message = "bqk,bkd->bqd"}> : () -> ()
    %cst_36 = arith.constant dense<0.000000e+00> : vector<4x8x16xf32>
    %68 = tpu.matmul %67, %52, %cst_36 {dimension_numbers = #tpu.dot_dimension_numbers<[2], [1], [1], [2], [0, 0, 0, 1, 1, 2], [0], [0]>} : vector<4x8x8xf32>, vector<4x8x16xf32>, vector<4x8x16xf32> -> vector<4x8x16xf32>
    "tpu.trace_stop"() : () -> ()
    %69 = tpu.concatenate %49, %68 in 2 : vector<4x8x16xf32>, vector<4x8x16xf32> -> vector<4x8x32xf32>
    %70 = vector.shape_cast %69 : vector<4x8x32xf32> to vector<32x32xf32>
    %c0_37 = arith.constant 0 : index
    %c0_38 = arith.constant 0 : index
    %c0_39 = arith.constant 0 : index
    %71 = vector.load %arg11[%c0_37, %c0_38, %c0_39] : memref<2x32x32xf32, #tpu.memory_space<vmem>>, vector<1x32x32xf32>
    %72 = vector.shape_cast %71 : vector<1x32x32xf32> to vector<32x32xf32>
    %cst_40 = arith.constant dense<0.000000e+00> : vector<32x32xf32>
    %73 = tpu.matmul %70, %72, %cst_40 {dimension_numbers = #tpu.dot_dimension_numbers<[1], [0], [0], [1], [0, 0, 1, 1], [], []>} : vector<32x32xf32>, vector<32x32xf32>, vector<32x32xf32> -> vector<32x32xf32>
    %c0_41 = arith.constant 0 : index
    %c0_42 = arith.constant 0 : index
    %c0_43 = arith.constant 0 : index
    %74 = vector.load %arg12[%c0_41, %c0_42, %c0_43] : memref<2x1x32xf32, #tpu.memory_space<vmem>>, vector<1x1x32xf32>
    %75 = vector.shape_cast %74 : vector<1x1x32xf32> to vector<1x32xf32>
    %76 = vector.broadcast %75 : vector<1x32xf32> to vector<32x32xf32>
    %77 = arith.addf %73, %76 : vector<32x32xf32>
    %78 = arith.addf %1, %77 : vector<32x32xf32>
    %c0_44 = arith.constant 0 : index
    %c0_45 = arith.constant 0 : index
    %c0_46 = arith.constant 0 : index
    %79 = vector.load %arg13[%c0_44, %c0_45, %c0_46] : memref<2x1x32xf32, #tpu.memory_space<vmem>>, vector<1x1x32xf32>
    %80 = vector.shape_cast %79 : vector<1x1x32xf32> to vector<1x32xf32>
    %c0_47 = arith.constant 0 : index
    %c0_48 = arith.constant 0 : index
    %c0_49 = arith.constant 0 : index
    %81 = vector.load %arg14[%c0_47, %c0_48, %c0_49] : memref<2x1x32xf32, #tpu.memory_space<vmem>>, vector<1x1x32xf32>
    %82 = vector.shape_cast %81 : vector<1x1x32xf32> to vector<1x32xf32>
    %cst_50 = arith.constant dense<0.000000e+00> : vector<32xf32>
    %83 = vector.multi_reduction <add>, %78, %cst_50 [1] : vector<32x32xf32> to vector<32xf32>
    %84 = vector.shape_cast %83 : vector<32xf32> to vector<32x1xf32>
    %cst_51 = arith.constant 3.200000e+01 : f32
    %85 = vector.broadcast %cst_51 : f32 to vector<32x1xf32>
    %86 = arith.divf %84, %85 : vector<32x1xf32>
    %87 = vector.broadcast %86 : vector<32x1xf32> to vector<32x32xf32>
    %88 = arith.subf %78, %87 : vector<32x32xf32>
    %89 = arith.mulf %88, %88 : vector<32x32xf32>
    %cst_52 = arith.constant dense<0.000000e+00> : vector<32xf32>
    %90 = vector.multi_reduction <add>, %89, %cst_52 [1] : vector<32x32xf32> to vector<32xf32>
    %91 = vector.shape_cast %90 : vector<32xf32> to vector<32x1xf32>
    %cst_53 = arith.constant 3.200000e+01 : f32
    %92 = vector.broadcast %cst_53 : f32 to vector<32x1xf32>
    %93 = arith.divf %91, %92 : vector<32x1xf32>
    %94 = vector.broadcast %86 : vector<32x1xf32> to vector<32x32xf32>
    %95 = arith.subf %78, %94 : vector<32x32xf32>
    %cst_54 = arith.constant 9.99999996E-13 : f32
    %96 = vector.broadcast %cst_54 : f32 to vector<32x1xf32>
    %97 = arith.addf %93, %96 : vector<32x1xf32>
    %98 = math.rsqrt %97 : vector<32x1xf32>
    %99 = vector.broadcast %98 : vector<32x1xf32> to vector<32x32xf32>
    %100 = arith.mulf %95, %99 : vector<32x32xf32>
    %101 = vector.broadcast %80 : vector<1x32xf32> to vector<32x32xf32>
    %102 = arith.mulf %100, %101 : vector<32x32xf32>
    %103 = vector.broadcast %82 : vector<1x32xf32> to vector<32x32xf32>
    %104 = arith.addf %102, %103 : vector<32x32xf32>
    %c0_55 = arith.constant 0 : index
    %c0_56 = arith.constant 0 : index
    %c0_57 = arith.constant 0 : index
    %105 = vector.load %arg15[%c0_55, %c0_56, %c0_57] : memref<2x32x64xf32, #tpu.memory_space<vmem>>, vector<1x32x64xf32>
    %106 = vector.shape_cast %105 : vector<1x32x64xf32> to vector<32x64xf32>
    %cst_58 = arith.constant dense<0.000000e+00> : vector<32x64xf32>
    %107 = tpu.matmul %104, %106, %cst_58 {dimension_numbers = #tpu.dot_dimension_numbers<[1], [0], [0], [1], [0, 0, 1, 1], [], []>} : vector<32x32xf32>, vector<32x64xf32>, vector<32x64xf32> -> vector<32x64xf32>
    %c0_59 = arith.constant 0 : index
    %c0_60 = arith.constant 0 : index
    %c0_61 = arith.constant 0 : index
    %108 = vector.load %arg16[%c0_59, %c0_60, %c0_61] : memref<2x1x64xf32, #tpu.memory_space<vmem>>, vector<1x1x64xf32>
    %109 = vector.shape_cast %108 : vector<1x1x64xf32> to vector<1x64xf32>
    %110 = vector.broadcast %109 : vector<1x64xf32> to vector<32x64xf32>
    %111 = arith.addf %107, %110 : vector<32x64xf32>
    %112 = arith.mulf %111, %111 : vector<32x64xf32>
    %113 = arith.mulf %111, %112 : vector<32x64xf32>
    %cst_62 = arith.constant 4.471500e-02 : f32
    %114 = vector.broadcast %cst_62 : f32 to vector<32x64xf32>
    %115 = arith.mulf %114, %113 : vector<32x64xf32>
    %116 = arith.addf %111, %115 : vector<32x64xf32>
    %cst_63 = arith.constant 0.797884583 : f32
    %117 = vector.broadcast %cst_63 : f32 to vector<32x64xf32>
    %118 = arith.mulf %117, %116 : vector<32x64xf32>
    %119 = math.tanh %118 : vector<32x64xf32>
    %cst_64 = arith.constant 1.000000e+00 : f32
    %120 = vector.broadcast %cst_64 : f32 to vector<32x64xf32>
    %121 = arith.addf %120, %119 : vector<32x64xf32>
    %cst_65 = arith.constant 5.000000e-01 : f32
    %122 = vector.broadcast %cst_65 : f32 to vector<32x64xf32>
    %123 = arith.mulf %122, %121 : vector<32x64xf32>
    %124 = arith.mulf %111, %123 : vector<32x64xf32>
    %c0_66 = arith.constant 0 : index
    %c0_67 = arith.constant 0 : index
    %c0_68 = arith.constant 0 : index
    %125 = vector.load %arg17[%c0_66, %c0_67, %c0_68] : memref<2x64x32xf32, #tpu.memory_space<vmem>>, vector<1x64x32xf32>
    %126 = vector.shape_cast %125 : vector<1x64x32xf32> to vector<64x32xf32>
    %cst_69 = arith.constant dense<0.000000e+00> : vector<32x32xf32>
    %127 = tpu.matmul %124, %126, %cst_69 {dimension_numbers = #tpu.dot_dimension_numbers<[1], [0], [0], [1], [0, 0, 1, 1], [], []>} : vector<32x64xf32>, vector<64x32xf32>, vector<32x32xf32> -> vector<32x32xf32>
    %c0_70 = arith.constant 0 : index
    %c0_71 = arith.constant 0 : index
    %c0_72 = arith.constant 0 : index
    %128 = vector.load %arg18[%c0_70, %c0_71, %c0_72] : memref<2x1x32xf32, #tpu.memory_space<vmem>>, vector<1x1x32xf32>
    %129 = vector.shape_cast %128 : vector<1x1x32xf32> to vector<1x32xf32>
    %130 = vector.broadcast %129 : vector<1x32xf32> to vector<32x32xf32>
    %131 = arith.addf %127, %130 : vector<32x32xf32>
    %132 = arith.addf %104, %131 : vector<32x32xf32>
    %c0_73 = arith.constant 0 : index
    %c0_74 = arith.constant 0 : index
    %c0_75 = arith.constant 0 : index
    %133 = vector.load %arg19[%c0_73, %c0_74, %c0_75] : memref<2x1x32xf32, #tpu.memory_space<vmem>>, vector<1x1x32xf32>
    %134 = vector.shape_cast %133 : vector<1x1x32xf32> to vector<1x32xf32>
    %c0_76 = arith.constant 0 : index
    %c0_77 = arith.constant 0 : index
    %c0_78 = arith.constant 0 : index
    %135 = vector.load %arg20[%c0_76, %c0_77, %c0_78] : memref<2x1x32xf32, #tpu.memory_space<vmem>>, vector<1x1x32xf32>
    %136 = vector.shape_cast %135 : vector<1x1x32xf32> to vector<1x32xf32>
    %cst_79 = arith.constant dense<0.000000e+00> : vector<32xf32>
    %137 = vector.multi_reduction <add>, %132, %cst_79 [1] : vector<32x32xf32> to vector<32xf32>
    %138 = vector.shape_cast %137 : vector<32xf32> to vector<32x1xf32>
    %cst_80 = arith.constant 3.200000e+01 : f32
    %139 = vector.broadcast %cst_80 : f32 to vector<32x1xf32>
    %140 = arith.divf %138, %139 : vector<32x1xf32>
    %141 = vector.broadcast %140 : vector<32x1xf32> to vector<32x32xf32>
    %142 = arith.subf %132, %141 : vector<32x32xf32>
    %143 = arith.mulf %142, %142 : vector<32x32xf32>
    %cst_81 = arith.constant dense<0.000000e+00> : vector<32xf32>
    %144 = vector.multi_reduction <add>, %143, %cst_81 [1] : vector<32x32xf32> to vector<32xf32>
    %145 = vector.shape_cast %144 : vector<32xf32> to vector<32x1xf32>
    %cst_82 = arith.constant 3.200000e+01 : f32
    %146 = vector.broadcast %cst_82 : f32 to vector<32x1xf32>
    %147 = arith.divf %145, %146 : vector<32x1xf32>
    %148 = vector.broadcast %140 : vector<32x1xf32> to vector<32x32xf32>
    %149 = arith.subf %132, %148 : vector<32x32xf32>
    %cst_83 = arith.constant 9.99999996E-13 : f32
    %150 = vector.broadcast %cst_83 : f32 to vector<32x1xf32>
    %151 = arith.addf %147, %150 : vector<32x1xf32>
    %152 = math.rsqrt %151 : vector<32x1xf32>
    %153 = vector.broadcast %152 : vector<32x1xf32> to vector<32x32xf32>
    %154 = arith.mulf %149, %153 : vector<32x32xf32>
    %155 = vector.broadcast %134 : vector<1x32xf32> to vector<32x32xf32>
    %156 = arith.mulf %154, %155 : vector<32x32xf32>
    %157 = vector.broadcast %136 : vector<1x32xf32> to vector<32x32xf32>
    %158 = arith.addf %156, %157 : vector<32x32xf32>
    %c1 = arith.constant 1 : index
    %c0_84 = arith.constant 0 : index
    %c0_85 = arith.constant 0 : index
    %159 = vector.load %arg5[%c1, %c0_84, %c0_85] : memref<2x32x32xf32, #tpu.memory_space<vmem>>, vector<1x32x32xf32>
    %160 = vector.shape_cast %159 : vector<1x32x32xf32> to vector<32x32xf32>
    %cst_86 = arith.constant dense<0.000000e+00> : vector<32x32xf32>
    %161 = tpu.matmul %158, %160, %cst_86 {dimension_numbers = #tpu.dot_dimension_numbers<[1], [0], [0], [1], [0, 0, 1, 1], [], []>} : vector<32x32xf32>, vector<32x32xf32>, vector<32x32xf32> -> vector<32x32xf32>
    %c1_87 = arith.constant 1 : index
    %c0_88 = arith.constant 0 : index
    %c0_89 = arith.constant 0 : index
    %162 = vector.load %arg6[%c1_87, %c0_88, %c0_89] : memref<2x1x32xf32, #tpu.memory_space<vmem>>, vector<1x1x32xf32>
    %163 = vector.shape_cast %162 : vector<1x1x32xf32> to vector<1x32xf32>
    %164 = vector.broadcast %163 : vector<1x32xf32> to vector<32x32xf32>
    %165 = arith.addf %161, %164 : vector<32x32xf32>
    %c1_90 = arith.constant 1 : index
    %c0_91 = arith.constant 0 : index
    %c0_92 = arith.constant 0 : index
    %166 = vector.load %arg7[%c1_90, %c0_91, %c0_92] : memref<2x32x32xf32, #tpu.memory_space<vmem>>, vector<1x32x32xf32>
    %167 = vector.shape_cast %166 : vector<1x32x32xf32> to vector<32x32xf32>
    %cst_93 = arith.constant dense<0.000000e+00> : vector<32x32xf32>
    %168 = tpu.matmul %158, %167, %cst_93 {dimension_numbers = #tpu.dot_dimension_numbers<[1], [0], [0], [1], [0, 0, 1, 1], [], []>} : vector<32x32xf32>, vector<32x32xf32>, vector<32x32xf32> -> vector<32x32xf32>
    %c1_94 = arith.constant 1 : index
    %c0_95 = arith.constant 0 : index
    %c0_96 = arith.constant 0 : index
    %169 = vector.load %arg8[%c1_94, %c0_95, %c0_96] : memref<2x1x32xf32, #tpu.memory_space<vmem>>, vector<1x1x32xf32>
    %170 = vector.shape_cast %169 : vector<1x1x32xf32> to vector<1x32xf32>
    %171 = vector.broadcast %170 : vector<1x32xf32> to vector<32x32xf32>
    %172 = arith.addf %168, %171 : vector<32x32xf32>
    %c1_97 = arith.constant 1 : index
    %c0_98 = arith.constant 0 : index
    %c0_99 = arith.constant 0 : index
    %173 = vector.load %arg9[%c1_97, %c0_98, %c0_99] : memref<2x32x32xf32, #tpu.memory_space<vmem>>, vector<1x32x32xf32>
    %174 = vector.shape_cast %173 : vector<1x32x32xf32> to vector<32x32xf32>
    %cst_100 = arith.constant dense<0.000000e+00> : vector<32x32xf32>
    %175 = tpu.matmul %158, %174, %cst_100 {dimension_numbers = #tpu.dot_dimension_numbers<[1], [0], [0], [1], [0, 0, 1, 1], [], []>} : vector<32x32xf32>, vector<32x32xf32>, vector<32x32xf32> -> vector<32x32xf32>
    %c1_101 = arith.constant 1 : index
    %c0_102 = arith.constant 0 : index
    %c0_103 = arith.constant 0 : index
    %176 = vector.load %arg10[%c1_101, %c0_102, %c0_103] : memref<2x1x32xf32, #tpu.memory_space<vmem>>, vector<1x1x32xf32>
    %177 = vector.shape_cast %176 : vector<1x1x32xf32> to vector<1x32xf32>
    %178 = vector.broadcast %177 : vector<1x32xf32> to vector<32x32xf32>
    %179 = arith.addf %175, %178 : vector<32x32xf32>
    %180 = vector.shape_cast %165 : vector<32x32xf32> to vector<4x8x32xf32>
    %181 = vector.shape_cast %172 : vector<32x32xf32> to vector<4x8x32xf32>
    %182 = vector.shape_cast %179 : vector<32x32xf32> to vector<4x8x32xf32>
    %183 = vector.extract_strided_slice %180 {offsets = [0, 0, 0], sizes = [4, 8, 16], strides = [1, 1, 1]} : vector<4x8x32xf32> to vector<4x8x16xf32>
    %184 = vector.extract_strided_slice %181 {offsets = [0, 0, 0], sizes = [4, 8, 16], strides = [1, 1, 1]} : vector<4x8x32xf32> to vector<4x8x16xf32>
    %185 = vector.extract_strided_slice %182 {offsets = [0, 0, 0], sizes = [4, 8, 16], strides = [1, 1, 1]} : vector<4x8x32xf32> to vector<4x8x16xf32>
    "tpu.trace_start"() <{level = 10 : i32, message = "bqd,bkd->bqk"}> : () -> ()
    %cst_104 = arith.constant dense<0.000000e+00> : vector<4x8x8xf32>
    %186 = tpu.matmul %183, %184, %cst_104 {dimension_numbers = #tpu.dot_dimension_numbers<[2], [2], [1], [1], [0, 0, 0, 1, 1, 1], [0], [0]>} : vector<4x8x16xf32>, vector<4x8x16xf32>, vector<4x8x8xf32> -> vector<4x8x8xf32>
    "tpu.trace_stop"() : () -> ()
    %cst_105 = arith.constant 2.500000e-01 : f32
    %187 = vector.broadcast %cst_105 : f32 to vector<4x8x8xf32>
    %188 = arith.mulf %186, %187 : vector<4x8x8xf32>
    %189 = vector.broadcast %6 : vector<4x1x8xf32> to vector<4x8x8xf32>
    %190 = arith.addf %188, %189 : vector<4x8x8xf32>
    %cst_106 = arith.constant dense<0xFF800000> : vector<4x8xf32>
    %191 = vector.multi_reduction <maximumf>, %190, %cst_106 [2] : vector<4x8x8xf32> to vector<4x8xf32>
    %192 = vector.shape_cast %191 : vector<4x8xf32> to vector<4x8x1xf32>
    %193 = vector.broadcast %192 : vector<4x8x1xf32> to vector<4x8x8xf32>
    %194 = arith.subf %190, %193 : vector<4x8x8xf32>
    %195 = math.exp %194 : vector<4x8x8xf32>
    %cst_107 = arith.constant dense<0.000000e+00> : vector<4x8xf32>
    %196 = vector.multi_reduction <add>, %195, %cst_107 [2] : vector<4x8x8xf32> to vector<4x8xf32>
    %197 = vector.shape_cast %196 : vector<4x8xf32> to vector<4x8x1xf32>
    %198 = tpu.reciprocal %197 {approx = true} : vector<4x8x1xf32> -> vector<4x8x1xf32>
    %199 = vector.broadcast %198 : vector<4x8x1xf32> to vector<4x8x8xf32>
    %200 = arith.mulf %195, %199 : vector<4x8x8xf32>
    "tpu.trace_start"() <{level = 10 : i32, message = "bqk,bkd->bqd"}> : () -> ()
    %cst_108 = arith.constant dense<0.000000e+00> : vector<4x8x16xf32>
    %201 = tpu.matmul %200, %185, %cst_108 {dimension_numbers = #tpu.dot_dimension_numbers<[2], [1], [1], [2], [0, 0, 0, 1, 1, 2], [0], [0]>} : vector<4x8x8xf32>, vector<4x8x16xf32>, vector<4x8x16xf32> -> vector<4x8x16xf32>
    "tpu.trace_stop"() : () -> ()
    %202 = vector.extract_strided_slice %180 {offsets = [0, 0, 16], sizes = [4, 8, 16], strides = [1, 1, 1]} : vector<4x8x32xf32> to vector<4x8x16xf32>
    %203 = vector.extract_strided_slice %181 {offsets = [0, 0, 16], sizes = [4, 8, 16], strides = [1, 1, 1]} : vector<4x8x32xf32> to vector<4x8x16xf32>
    %204 = vector.extract_strided_slice %182 {offsets = [0, 0, 16], sizes = [4, 8, 16], strides = [1, 1, 1]} : vector<4x8x32xf32> to vector<4x8x16xf32>
    "tpu.trace_start"() <{level = 10 : i32, message = "bqd,bkd->bqk"}> : () -> ()
    %cst_109 = arith.constant dense<0.000000e+00> : vector<4x8x8xf32>
    %205 = tpu.matmul %202, %203, %cst_109 {dimension_numbers = #tpu.dot_dimension_numbers<[2], [2], [1], [1], [0, 0, 0, 1, 1, 1], [0], [0]>} : vector<4x8x16xf32>, vector<4x8x16xf32>, vector<4x8x8xf32> -> vector<4x8x8xf32>
    "tpu.trace_stop"() : () -> ()
    %cst_110 = arith.constant 2.500000e-01 : f32
    %206 = vector.broadcast %cst_110 : f32 to vector<4x8x8xf32>
    %207 = arith.mulf %205, %206 : vector<4x8x8xf32>
    %208 = vector.broadcast %6 : vector<4x1x8xf32> to vector<4x8x8xf32>
    %209 = arith.addf %207, %208 : vector<4x8x8xf32>
    %cst_111 = arith.constant dense<0xFF800000> : vector<4x8xf32>
    %210 = vector.multi_reduction <maximumf>, %209, %cst_111 [2] : vector<4x8x8xf32> to vector<4x8xf32>
    %211 = vector.shape_cast %210 : vector<4x8xf32> to vector<4x8x1xf32>
    %212 = vector.broadcast %211 : vector<4x8x1xf32> to vector<4x8x8xf32>
    %213 = arith.subf %209, %212 : vector<4x8x8xf32>
    %214 = math.exp %213 : vector<4x8x8xf32>
    %cst_112 = arith.constant dense<0.000000e+00> : vector<4x8xf32>
    %215 = vector.multi_reduction <add>, %214, %cst_112 [2] : vector<4x8x8xf32> to vector<4x8xf32>
    %216 = vector.shape_cast %215 : vector<4x8xf32> to vector<4x8x1xf32>
    %217 = tpu.reciprocal %216 {approx = true} : vector<4x8x1xf32> -> vector<4x8x1xf32>
    %218 = vector.broadcast %217 : vector<4x8x1xf32> to vector<4x8x8xf32>
    %219 = arith.mulf %214, %218 : vector<4x8x8xf32>
    "tpu.trace_start"() <{level = 10 : i32, message = "bqk,bkd->bqd"}> : () -> ()
    %cst_113 = arith.constant dense<0.000000e+00> : vector<4x8x16xf32>
    %220 = tpu.matmul %219, %204, %cst_113 {dimension_numbers = #tpu.dot_dimension_numbers<[2], [1], [1], [2], [0, 0, 0, 1, 1, 2], [0], [0]>} : vector<4x8x8xf32>, vector<4x8x16xf32>, vector<4x8x16xf32> -> vector<4x8x16xf32>
    "tpu.trace_stop"() : () -> ()
    %221 = tpu.concatenate %201, %220 in 2 : vector<4x8x16xf32>, vector<4x8x16xf32> -> vector<4x8x32xf32>
    %222 = vector.shape_cast %221 : vector<4x8x32xf32> to vector<32x32xf32>
    %c1_114 = arith.constant 1 : index
    %c0_115 = arith.constant 0 : index
    %c0_116 = arith.constant 0 : index
    %223 = vector.load %arg11[%c1_114, %c0_115, %c0_116] : memref<2x32x32xf32, #tpu.memory_space<vmem>>, vector<1x32x32xf32>
    %224 = vector.shape_cast %223 : vector<1x32x32xf32> to vector<32x32xf32>
    %cst_117 = arith.constant dense<0.000000e+00> : vector<32x32xf32>
    %225 = tpu.matmul %222, %224, %cst_117 {dimension_numbers = #tpu.dot_dimension_numbers<[1], [0], [0], [1], [0, 0, 1, 1], [], []>} : vector<32x32xf32>, vector<32x32xf32>, vector<32x32xf32> -> vector<32x32xf32>
    %c1_118 = arith.constant 1 : index
    %c0_119 = arith.constant 0 : index
    %c0_120 = arith.constant 0 : index
    %226 = vector.load %arg12[%c1_118, %c0_119, %c0_120] : memref<2x1x32xf32, #tpu.memory_space<vmem>>, vector<1x1x32xf32>
    %227 = vector.shape_cast %226 : vector<1x1x32xf32> to vector<1x32xf32>
    %228 = vector.broadcast %227 : vector<1x32xf32> to vector<32x32xf32>
    %229 = arith.addf %225, %228 : vector<32x32xf32>
    %230 = arith.addf %158, %229 : vector<32x32xf32>
    %c1_121 = arith.constant 1 : index
    %c0_122 = arith.constant 0 : index
    %c0_123 = arith.constant 0 : index
    %231 = vector.load %arg13[%c1_121, %c0_122, %c0_123] : memref<2x1x32xf32, #tpu.memory_space<vmem>>, vector<1x1x32xf32>
    %232 = vector.shape_cast %231 : vector<1x1x32xf32> to vector<1x32xf32>
    %c1_124 = arith.constant 1 : index
    %c0_125 = arith.constant 0 : index
    %c0_126 = arith.constant 0 : index
    %233 = vector.load %arg14[%c1_124, %c0_125, %c0_126] : memref<2x1x32xf32, #tpu.memory_space<vmem>>, vector<1x1x32xf32>
    %234 = vector.shape_cast %233 : vector<1x1x32xf32> to vector<1x32xf32>
    %cst_127 = arith.constant dense<0.000000e+00> : vector<32xf32>
    %235 = vector.multi_reduction <add>, %230, %cst_127 [1] : vector<32x32xf32> to vector<32xf32>
    %236 = vector.shape_cast %235 : vector<32xf32> to vector<32x1xf32>
    %cst_128 = arith.constant 3.200000e+01 : f32
    %237 = vector.broadcast %cst_128 : f32 to vector<32x1xf32>
    %238 = arith.divf %236, %237 : vector<32x1xf32>
    %239 = vector.broadcast %238 : vector<32x1xf32> to vector<32x32xf32>
    %240 = arith.subf %230, %239 : vector<32x32xf32>
    %241 = arith.mulf %240, %240 : vector<32x32xf32>
    %cst_129 = arith.constant dense<0.000000e+00> : vector<32xf32>
    %242 = vector.multi_reduction <add>, %241, %cst_129 [1] : vector<32x32xf32> to vector<32xf32>
    %243 = vector.shape_cast %242 : vector<32xf32> to vector<32x1xf32>
    %cst_130 = arith.constant 3.200000e+01 : f32
    %244 = vector.broadcast %cst_130 : f32 to vector<32x1xf32>
    %245 = arith.divf %243, %244 : vector<32x1xf32>
    %246 = vector.broadcast %238 : vector<32x1xf32> to vector<32x32xf32>
    %247 = arith.subf %230, %246 : vector<32x32xf32>
    %cst_131 = arith.constant 9.99999996E-13 : f32
    %248 = vector.broadcast %cst_131 : f32 to vector<32x1xf32>
    %249 = arith.addf %245, %248 : vector<32x1xf32>
    %250 = math.rsqrt %249 : vector<32x1xf32>
    %251 = vector.broadcast %250 : vector<32x1xf32> to vector<32x32xf32>
    %252 = arith.mulf %247, %251 : vector<32x32xf32>
    %253 = vector.broadcast %232 : vector<1x32xf32> to vector<32x32xf32>
    %254 = arith.mulf %252, %253 : vector<32x32xf32>
    %255 = vector.broadcast %234 : vector<1x32xf32> to vector<32x32xf32>
    %256 = arith.addf %254, %255 : vector<32x32xf32>
    %c1_132 = arith.constant 1 : index
    %c0_133 = arith.constant 0 : index
    %c0_134 = arith.constant 0 : index
    %257 = vector.load %arg15[%c1_132, %c0_133, %c0_134] : memref<2x32x64xf32, #tpu.memory_space<vmem>>, vector<1x32x64xf32>
    %258 = vector.shape_cast %257 : vector<1x32x64xf32> to vector<32x64xf32>
    %cst_135 = arith.constant dense<0.000000e+00> : vector<32x64xf32>
    %259 = tpu.matmul %256, %258, %cst_135 {dimension_numbers = #tpu.dot_dimension_numbers<[1], [0], [0], [1], [0, 0, 1, 1], [], []>} : vector<32x32xf32>, vector<32x64xf32>, vector<32x64xf32> -> vector<32x64xf32>
    %c1_136 = arith.constant 1 : index
    %c0_137 = arith.constant 0 : index
    %c0_138 = arith.constant 0 : index
    %260 = vector.load %arg16[%c1_136, %c0_137, %c0_138] : memref<2x1x64xf32, #tpu.memory_space<vmem>>, vector<1x1x64xf32>
    %261 = vector.shape_cast %260 : vector<1x1x64xf32> to vector<1x64xf32>
    %262 = vector.broadcast %261 : vector<1x64xf32> to vector<32x64xf32>
    %263 = arith.addf %259, %262 : vector<32x64xf32>
    %264 = arith.mulf %263, %263 : vector<32x64xf32>
    %265 = arith.mulf %263, %264 : vector<32x64xf32>
    %cst_139 = arith.constant 4.471500e-02 : f32
    %266 = vector.broadcast %cst_139 : f32 to vector<32x64xf32>
    %267 = arith.mulf %266, %265 : vector<32x64xf32>
    %268 = arith.addf %263, %267 : vector<32x64xf32>
    %cst_140 = arith.constant 0.797884583 : f32
    %269 = vector.broadcast %cst_140 : f32 to vector<32x64xf32>
    %270 = arith.mulf %269, %268 : vector<32x64xf32>
    %271 = math.tanh %270 : vector<32x64xf32>
    %cst_141 = arith.constant 1.000000e+00 : f32
    %272 = vector.broadcast %cst_141 : f32 to vector<32x64xf32>
    %273 = arith.addf %272, %271 : vector<32x64xf32>
    %cst_142 = arith.constant 5.000000e-01 : f32
    %274 = vector.broadcast %cst_142 : f32 to vector<32x64xf32>
    %275 = arith.mulf %274, %273 : vector<32x64xf32>
    %276 = arith.mulf %263, %275 : vector<32x64xf32>
    %c1_143 = arith.constant 1 : index
    %c0_144 = arith.constant 0 : index
    %c0_145 = arith.constant 0 : index
    %277 = vector.load %arg17[%c1_143, %c0_144, %c0_145] : memref<2x64x32xf32, #tpu.memory_space<vmem>>, vector<1x64x32xf32>
    %278 = vector.shape_cast %277 : vector<1x64x32xf32> to vector<64x32xf32>
    %cst_146 = arith.constant dense<0.000000e+00> : vector<32x32xf32>
    %279 = tpu.matmul %276, %278, %cst_146 {dimension_numbers = #tpu.dot_dimension_numbers<[1], [0], [0], [1], [0, 0, 1, 1], [], []>} : vector<32x64xf32>, vector<64x32xf32>, vector<32x32xf32> -> vector<32x32xf32>
    %c1_147 = arith.constant 1 : index
    %c0_148 = arith.constant 0 : index
    %c0_149 = arith.constant 0 : index
    %280 = vector.load %arg18[%c1_147, %c0_148, %c0_149] : memref<2x1x32xf32, #tpu.memory_space<vmem>>, vector<1x1x32xf32>
    %281 = vector.shape_cast %280 : vector<1x1x32xf32> to vector<1x32xf32>
    %282 = vector.broadcast %281 : vector<1x32xf32> to vector<32x32xf32>
    %283 = arith.addf %279, %282 : vector<32x32xf32>
    %284 = arith.addf %256, %283 : vector<32x32xf32>
    %c1_150 = arith.constant 1 : index
    %c0_151 = arith.constant 0 : index
    %c0_152 = arith.constant 0 : index
    %285 = vector.load %arg19[%c1_150, %c0_151, %c0_152] : memref<2x1x32xf32, #tpu.memory_space<vmem>>, vector<1x1x32xf32>
    %286 = vector.shape_cast %285 : vector<1x1x32xf32> to vector<1x32xf32>
    %c1_153 = arith.constant 1 : index
    %c0_154 = arith.constant 0 : index
    %c0_155 = arith.constant 0 : index
    %287 = vector.load %arg20[%c1_153, %c0_154, %c0_155] : memref<2x1x32xf32, #tpu.memory_space<vmem>>, vector<1x1x32xf32>
    %288 = vector.shape_cast %287 : vector<1x1x32xf32> to vector<1x32xf32>
    %cst_156 = arith.constant dense<0.000000e+00> : vector<32xf32>
    %289 = vector.multi_reduction <add>, %284, %cst_156 [1] : vector<32x32xf32> to vector<32xf32>
    %290 = vector.shape_cast %289 : vector<32xf32> to vector<32x1xf32>
    %cst_157 = arith.constant 3.200000e+01 : f32
    %291 = vector.broadcast %cst_157 : f32 to vector<32x1xf32>
    %292 = arith.divf %290, %291 : vector<32x1xf32>
    %293 = vector.broadcast %292 : vector<32x1xf32> to vector<32x32xf32>
    %294 = arith.subf %284, %293 : vector<32x32xf32>
    %295 = arith.mulf %294, %294 : vector<32x32xf32>
    %cst_158 = arith.constant dense<0.000000e+00> : vector<32xf32>
    %296 = vector.multi_reduction <add>, %295, %cst_158 [1] : vector<32x32xf32> to vector<32xf32>
    %297 = vector.shape_cast %296 : vector<32xf32> to vector<32x1xf32>
    %cst_159 = arith.constant 3.200000e+01 : f32
    %298 = vector.broadcast %cst_159 : f32 to vector<32x1xf32>
    %299 = arith.divf %297, %298 : vector<32x1xf32>
    %300 = vector.broadcast %292 : vector<32x1xf32> to vector<32x32xf32>
    %301 = arith.subf %284, %300 : vector<32x32xf32>
    %cst_160 = arith.constant 9.99999996E-13 : f32
    %302 = vector.broadcast %cst_160 : f32 to vector<32x1xf32>
    %303 = arith.addf %299, %302 : vector<32x1xf32>
    %304 = math.rsqrt %303 : vector<32x1xf32>
    %305 = vector.broadcast %304 : vector<32x1xf32> to vector<32x32xf32>
    %306 = arith.mulf %301, %305 : vector<32x32xf32>
    %307 = vector.broadcast %286 : vector<1x32xf32> to vector<32x32xf32>
    %308 = arith.mulf %306, %307 : vector<32x32xf32>
    %309 = vector.broadcast %288 : vector<1x32xf32> to vector<32x32xf32>
    %310 = arith.addf %308, %309 : vector<32x32xf32>
    %311 = vector.shape_cast %310 : vector<32x32xf32> to vector<4x8x32xf32>
    %c0_161 = arith.constant 0 : index
    %c0_162 = arith.constant 0 : index
    %c0_163 = arith.constant 0 : index
    %312 = vector.load %arg3[%c0_161, %c0_162, %c0_163] : memref<4x8x1xf32, #tpu.memory_space<vmem>>, vector<4x8x1xf32>
    %313 = vector.broadcast %312 : vector<4x8x1xf32> to vector<4x8x32xf32>
    %314 = arith.mulf %311, %313 : vector<4x8x32xf32>
    %cst_164 = arith.constant dense<0.000000e+00> : vector<4x32xf32>
    %315 = vector.multi_reduction <add>, %314, %cst_164 [1] : vector<4x8x32xf32> to vector<4x32xf32>
    %cst_165 = arith.constant dense<0.000000e+00> : vector<4x1xf32>
    %316 = vector.multi_reduction <add>, %312, %cst_165 [1] : vector<4x8x1xf32> to vector<4x1xf32>
    %cst_166 = arith.constant 9.99999971E-10 : f32
    %317 = vector.broadcast %cst_166 : f32 to vector<4x1xf32>
    %318 = arith.maximumf %316, %317 : vector<4x1xf32>
    %319 = tpu.reciprocal %318 {approx = true} : vector<4x1xf32> -> vector<4x1xf32>
    %320 = vector.broadcast %319 : vector<4x1xf32> to vector<4x32xf32>
    %321 = arith.mulf %315, %320 : vector<4x32xf32>
    %322 = vector.extract_strided_slice %321 {offsets = [0, 0], sizes = [2, 32], strides = [1, 1]} : vector<4x32xf32> to vector<2x32xf32>
    %323 = vector.extract_strided_slice %321 {offsets = [2, 0], sizes = [2, 32], strides = [1, 1]} : vector<4x32xf32> to vector<2x32xf32>
    %c0_167 = arith.constant 0 : index
    %c0_168 = arith.constant 0 : index
    %324 = vector.load %arg4[%c0_167, %c0_168] : memref<2x1xf32, #tpu.memory_space<vmem>>, vector<2x1xf32>
    %c0_169 = arith.constant 0 : index
    %c0_170 = arith.constant 0 : index
    %325 = vector.load %arg21[%c0_169, %c0_170] : memref<1x32xf32, #tpu.memory_space<vmem>>, vector<1x32xf32>
    %326 = vector.broadcast %324 : vector<2x1xf32> to vector<2x32xf32>
    %327 = vector.broadcast %325 : vector<1x32xf32> to vector<2x32xf32>
    %328 = arith.mulf %326, %327 : vector<2x32xf32>
    %c0_171 = arith.constant 0 : index
    %c0_172 = arith.constant 0 : index
    %329 = vector.load %arg22[%c0_171, %c0_172] : memref<1x32xf32, #tpu.memory_space<vmem>>, vector<1x32xf32>
    %330 = vector.broadcast %329 : vector<1x32xf32> to vector<2x32xf32>
    %331 = arith.addf %328, %330 : vector<2x32xf32>
    %cst_173 = arith.constant 0.000000e+00 : f32
    %332 = vector.broadcast %cst_173 : f32 to vector<2x32xf32>
    %333 = arith.maximumf %331, %332 : vector<2x32xf32>
    %c0_174 = arith.constant 0 : index
    %c0_175 = arith.constant 0 : index
    %c0_176 = arith.constant 0 : index
    %334 = vector.load %arg23[%c0_174, %c0_175, %c0_176] : memref<4x32x32xf32, #tpu.memory_space<vmem>>, vector<1x32x32xf32>
    %335 = vector.shape_cast %334 : vector<1x32x32xf32> to vector<32x32xf32>
    %cst_177 = arith.constant dense<0.000000e+00> : vector<2x32xf32>
    %336 = tpu.matmul %322, %335, %cst_177 {dimension_numbers = #tpu.dot_dimension_numbers<[1], [0], [0], [1], [0, 0, 1, 1], [], []>} : vector<2x32xf32>, vector<32x32xf32>, vector<2x32xf32> -> vector<2x32xf32>
    %c1_178 = arith.constant 1 : index
    %c0_179 = arith.constant 0 : index
    %c0_180 = arith.constant 0 : index
    %337 = vector.load %arg23[%c1_178, %c0_179, %c0_180] : memref<4x32x32xf32, #tpu.memory_space<vmem>>, vector<1x32x32xf32>
    %338 = vector.shape_cast %337 : vector<1x32x32xf32> to vector<32x32xf32>
    %cst_181 = arith.constant dense<0.000000e+00> : vector<2x32xf32>
    %339 = tpu.matmul %323, %338, %cst_181 {dimension_numbers = #tpu.dot_dimension_numbers<[1], [0], [0], [1], [0, 0, 1, 1], [], []>} : vector<2x32xf32>, vector<32x32xf32>, vector<2x32xf32> -> vector<2x32xf32>
    %340 = arith.addf %336, %339 : vector<2x32xf32>
    %341 = arith.subf %322, %323 : vector<2x32xf32>
    %342 = math.absf %341 : vector<2x32xf32>
    %c2 = arith.constant 2 : index
    %c0_182 = arith.constant 0 : index
    %c0_183 = arith.constant 0 : index
    %343 = vector.load %arg23[%c2, %c0_182, %c0_183] : memref<4x32x32xf32, #tpu.memory_space<vmem>>, vector<1x32x32xf32>
    %344 = vector.shape_cast %343 : vector<1x32x32xf32> to vector<32x32xf32>
    %cst_184 = arith.constant dense<0.000000e+00> : vector<2x32xf32>
    %345 = tpu.matmul %342, %344, %cst_184 {dimension_numbers = #tpu.dot_dimension_numbers<[1], [0], [0], [1], [0, 0, 1, 1], [], []>} : vector<2x32xf32>, vector<32x32xf32>, vector<2x32xf32> -> vector<2x32xf32>
    %346 = arith.addf %340, %345 : vector<2x32xf32>
    %c3 = arith.constant 3 : index
    %c0_185 = arith.constant 0 : index
    %c0_186 = arith.constant 0 : index
    %347 = vector.load %arg23[%c3, %c0_185, %c0_186] : memref<4x32x32xf32, #tpu.memory_space<vmem>>, vector<1x32x32xf32>
    %348 = vector.shape_cast %347 : vector<1x32x32xf32> to vector<32x32xf32>
    %cst_187 = arith.constant dense<0.000000e+00> : vector<2x32xf32>
    %349 = tpu.matmul %333, %348, %cst_187 {dimension_numbers = #tpu.dot_dimension_numbers<[1], [0], [0], [1], [0, 0, 1, 1], [], []>} : vector<2x32xf32>, vector<32x32xf32>, vector<2x32xf32> -> vector<2x32xf32>
    %350 = arith.addf %346, %349 : vector<2x32xf32>
    %c0_188 = arith.constant 0 : index
    %c0_189 = arith.constant 0 : index
    %351 = vector.load %arg24[%c0_188, %c0_189] : memref<1x32xf32, #tpu.memory_space<vmem>>, vector<1x32xf32>
    %352 = vector.broadcast %351 : vector<1x32xf32> to vector<2x32xf32>
    %353 = arith.addf %350, %352 : vector<2x32xf32>
    %cst_190 = arith.constant 0.000000e+00 : f32
    %354 = vector.broadcast %cst_190 : f32 to vector<2x32xf32>
    %355 = arith.maximumf %353, %354 : vector<2x32xf32>
    %c0_191 = arith.constant 0 : index
    %c0_192 = arith.constant 0 : index
    %356 = vector.load %arg25[%c0_191, %c0_192] : memref<32x1xf32, #tpu.memory_space<vmem>>, vector<32x1xf32>
    %cst_193 = arith.constant dense<0.000000e+00> : vector<2x1xf32>
    %357 = tpu.matmul %355, %356, %cst_193 {dimension_numbers = #tpu.dot_dimension_numbers<[1], [0], [0], [1], [0, 0, 1, 1], [], []>} : vector<2x32xf32>, vector<32x1xf32>, vector<2x1xf32> -> vector<2x1xf32>
    %c0_194 = arith.constant 0 : index
    %c0_195 = arith.constant 0 : index
    %358 = vector.load %arg26[%c0_194, %c0_195] : memref<1x1xf32, #tpu.memory_space<vmem>>, vector<1x1xf32>
    %359 = vector.broadcast %358 : vector<1x1xf32> to vector<2x1xf32>
    %360 = arith.addf %357, %359 : vector<2x1xf32>
    %c0_196 = arith.constant 0 : index
    %c0_197 = arith.constant 0 : index
    %361 = vector.load %arg27[%c0_196, %c0_197] : memref<2x1xf32, #tpu.memory_space<vmem>>, vector<2x1xf32>
    tpu.vector_store %arg27[%c0_196, %c0_197], %360 {strides = array<i32>} : memref<2x1xf32, #tpu.memory_space<vmem>>, vector<2x1xf32>,
    return
  }
  func.func @transform_0(%arg0: i32) -> (i32, i32, i32) {
    %c0_i32 = arith.constant 0 : i32
    %c0_i32_0 = arith.constant 0 : i32
    %c0_i32_1 = arith.constant 0 : i32
    %c0_i32_2 = arith.constant 0 : i32
    return %c0_i32, %c0_i32_0, %c0_i32_1 : i32, i32, i32
  }
  func.func @transform_1(%arg0: i32) -> (i32, i32, i32) {
    %c0_i32 = arith.constant 0 : i32
    %c0_i32_0 = arith.constant 0 : i32
    %c0_i32_1 = arith.constant 0 : i32
    %c0_i32_2 = arith.constant 0 : i32
    return %c0_i32, %c0_i32_0, %c0_i32_1 : i32, i32, i32
  }
  func.func @transform_2(%arg0: i32) -> (i32, i32, i32) {
    %c0_i32 = arith.constant 0 : i32
    %c0_i32_0 = arith.constant 0 : i32
    %c0_i32_1 = arith.constant 0 : i32
    %c0_i32_2 = arith.constant 0 : i32
    return %c0_i32, %c0_i32_0, %c0_i32_1 : i32, i32, i32
  }
  func.func @transform_3(%arg0: i32) -> (i32, i32) {
    %c0_i32 = arith.constant 0 : i32
    %c0_i32_0 = arith.constant 0 : i32
    %c0_i32_1 = arith.constant 0 : i32
    return %c0_i32, %c0_i32_0 : i32, i32
  }
  func.func @transform_4(%arg0: i32) -> (i32, i32, i32) {
    %c0_i32 = arith.constant 0 : i32
    %c0_i32_0 = arith.constant 0 : i32
    %c0_i32_1 = arith.constant 0 : i32
    %c0_i32_2 = arith.constant 0 : i32
    return %c0_i32, %c0_i32_0, %c0_i32_1 : i32, i32, i32
  }
  func.func @transform_5(%arg0: i32) -> (i32, i32, i32) {
    %c0_i32 = arith.constant 0 : i32
    %c0_i32_0 = arith.constant 0 : i32
    %c0_i32_1 = arith.constant 0 : i32
    %c0_i32_2 = arith.constant 0 : i32
    return %c0_i32, %c0_i32_0, %c0_i32_1 : i32, i32, i32
  }
  func.func @transform_6(%arg0: i32) -> (i32, i32, i32) {
    %c0_i32 = arith.constant 0 : i32
    %c0_i32_0 = arith.constant 0 : i32
    %c0_i32_1 = arith.constant 0 : i32
    %c0_i32_2 = arith.constant 0 : i32
    return %c0_i32, %c0_i32_0, %c0_i32_1 : i32, i32, i32
  }
  func.func @transform_7(%arg0: i32) -> (i32, i32, i32) {
    %c0_i32 = arith.constant 0 : i32
    %c0_i32_0 = arith.constant 0 : i32
    %c0_i32_1 = arith.constant 0 : i32
    %c0_i32_2 = arith.constant 0 : i32
    return %c0_i32, %c0_i32_0, %c0_i32_1 : i32, i32, i32
  }
  func.func @transform_8(%arg0: i32) -> (i32, i32, i32) {
    %c0_i32 = arith.constant 0 : i32
    %c0_i32_0 = arith.constant 0 : i32
    %c0_i32_1 = arith.constant 0 : i32
    %c0_i32_2 = arith.constant 0 : i32
    return %c0_i32, %c0_i32_0, %c0_i32_1 : i32, i32, i32
  }
  func.func @transform_9(%arg0: i32) -> (i32, i32, i32) {
    %c0_i32 = arith.constant 0 : i32
    %c0_i32_0 = arith.constant 0 : i32
    %c0_i32_1 = arith.constant 0 : i32
    %c0_i32_2 = arith.constant 0 : i32
    return %c0_i32, %c0_i32_0, %c0_i32_1 : i32, i32, i32
  }
  func.func @transform_10(%arg0: i32) -> (i32, i32, i32) {
    %c0_i32 = arith.constant 0 : i32
    %c0_i32_0 = arith.constant 0 : i32
    %c0_i32_1 = arith.constant 0 : i32
    %c0_i32_2 = arith.constant 0 : i32
    return %c0_i32, %c0_i32_0, %c0_i32_1 : i32, i32, i32
  }
  func.func @transform_11(%arg0: i32) -> (i32, i32, i32) {
    %c0_i32 = arith.constant 0 : i32
    %c0_i32_0 = arith.constant 0 : i32
    %c0_i32_1 = arith.constant 0 : i32
    %c0_i32_2 = arith.constant 0 : i32
    return %c0_i32, %c0_i32_0, %c0_i32_1 : i32, i32, i32
  }
  func.func @transform_12(%arg0: i32) -> (i32, i32, i32) {
    %c0_i32 = arith.constant 0 : i32
    %c0_i32_0 = arith.constant 0 : i32
    %c0_i32_1 = arith.constant 0 : i32
    %c0_i32_2 = arith.constant 0 : i32
    return %c0_i32, %c0_i32_0, %c0_i32_1 : i32, i32, i32
  }
  func.func @transform_13(%arg0: i32) -> (i32, i32, i32) {
    %c0_i32 = arith.constant 0 : i32
    %c0_i32_0 = arith.constant 0 : i32
    %c0_i32_1 = arith.constant 0 : i32
    %c0_i32_2 = arith.constant 0 : i32
    return %c0_i32, %c0_i32_0, %c0_i32_1 : i32, i32, i32
  }
  func.func @transform_14(%arg0: i32) -> (i32, i32, i32) {
    %c0_i32 = arith.constant 0 : i32
    %c0_i32_0 = arith.constant 0 : i32
    %c0_i32_1 = arith.constant 0 : i32
    %c0_i32_2 = arith.constant 0 : i32
    return %c0_i32, %c0_i32_0, %c0_i32_1 : i32, i32, i32
  }
  func.func @transform_15(%arg0: i32) -> (i32, i32, i32) {
    %c0_i32 = arith.constant 0 : i32
    %c0_i32_0 = arith.constant 0 : i32
    %c0_i32_1 = arith.constant 0 : i32
    %c0_i32_2 = arith.constant 0 : i32
    return %c0_i32, %c0_i32_0, %c0_i32_1 : i32, i32, i32
  }
  func.func @transform_16(%arg0: i32) -> (i32, i32, i32) {
    %c0_i32 = arith.constant 0 : i32
    %c0_i32_0 = arith.constant 0 : i32
    %c0_i32_1 = arith.constant 0 : i32
    %c0_i32_2 = arith.constant 0 : i32
    return %c0_i32, %c0_i32_0, %c0_i32_1 : i32, i32, i32
  }
  func.func @transform_17(%arg0: i32) -> (i32, i32, i32) {
    %c0_i32 = arith.constant 0 : i32
    %c0_i32_0 = arith.constant 0 : i32
    %c0_i32_1 = arith.constant 0 : i32
    %c0_i32_2 = arith.constant 0 : i32
    return %c0_i32, %c0_i32_0, %c0_i32_1 : i32, i32, i32
  }
  func.func @transform_18(%arg0: i32) -> (i32, i32, i32) {
    %c0_i32 = arith.constant 0 : i32
    %c0_i32_0 = arith.constant 0 : i32
    %c0_i32_1 = arith.constant 0 : i32
    %c0_i32_2 = arith.constant 0 : i32
    return %c0_i32, %c0_i32_0, %c0_i32_1 : i32, i32, i32
  }
  func.func @transform_19(%arg0: i32) -> (i32, i32, i32) {
    %c0_i32 = arith.constant 0 : i32
    %c0_i32_0 = arith.constant 0 : i32
    %c0_i32_1 = arith.constant 0 : i32
    %c0_i32_2 = arith.constant 0 : i32
    return %c0_i32, %c0_i32_0, %c0_i32_1 : i32, i32, i32
  }
  func.func @transform_20(%arg0: i32) -> (i32, i32) {
    %c0_i32 = arith.constant 0 : i32
    %c0_i32_0 = arith.constant 0 : i32
    %c0_i32_1 = arith.constant 0 : i32
    return %c0_i32, %c0_i32_0 : i32, i32
  }
  func.func @transform_21(%arg0: i32) -> (i32, i32) {
    %c0_i32 = arith.constant 0 : i32
    %c0_i32_0 = arith.constant 0 : i32
    %c0_i32_1 = arith.constant 0 : i32
    return %c0_i32, %c0_i32_0 : i32, i32
  }
  func.func @transform_22(%arg0: i32) -> (i32, i32, i32) {
    %c0_i32 = arith.constant 0 : i32
    %c0_i32_0 = arith.constant 0 : i32
    %c0_i32_1 = arith.constant 0 : i32
    %c0_i32_2 = arith.constant 0 : i32
    return %c0_i32, %c0_i32_0, %c0_i32_1 : i32, i32, i32
  }
  func.func @transform_23(%arg0: i32) -> (i32, i32) {
    %c0_i32 = arith.constant 0 : i32
    %c0_i32_0 = arith.constant 0 : i32
    %c0_i32_1 = arith.constant 0 : i32
    return %c0_i32, %c0_i32_0 : i32, i32
  }
  func.func @transform_24(%arg0: i32) -> (i32, i32) {
    %c0_i32 = arith.constant 0 : i32
    %c0_i32_0 = arith.constant 0 : i32
    %c0_i32_1 = arith.constant 0 : i32
    return %c0_i32, %c0_i32_0 : i32, i32
  }
  func.func @transform_25(%arg0: i32) -> (i32, i32) {
    %c0_i32 = arith.constant 0 : i32
    %c0_i32_0 = arith.constant 0 : i32
    %c0_i32_1 = arith.constant 0 : i32
    return %c0_i32, %c0_i32_0 : i32, i32
  }
  func.func @transform_26(%arg0: i32) -> (i32, i32) {
    %c0_i32 = arith.constant 0 : i32
    %c0_i32_0 = arith.constant 0 : i32
    %c0_i32_1 = arith.constant 0 : i32
    return %c0_i32, %c0_i32_0 : i32, i32
  }
}

</mosaic_0001>

<bundles_post_ra>
// kernel: sbert_siamese_forward.1
= control target key start
LH: loop header
LB: loop body
LE: loop exit
PB: predicated region body
PF: predicated region fallthrough
CT: control target
= control target key end

     0   :  { %s7158_s0 = inlined_call_operand.vmem [shape: f32[4,8,32], index: 0, kind: input, shape index: {}]   ;;  %s7159_s1 = inlined_call_operand.vmem [shape: f32[4,1,8], index: 1, kind: input, shape index: {}]   ;;  %s7160_s2 = inlined_call_operand.vmem [shape: f32[4,8,1], index: 2, kind: input, shape index: {}]   ;;  %s7161_s3 = inlined_call_operand.vmem [shape: f32[2,1], index: 3, kind: input, shape index: {}]   ;;  %s7162_s4 = inlined_call_operand.vmem [shape: f32[2,32,32], index: 4, kind: input, shape index: {}]   ;;  %s7163_s5 = inlined_call_operand.vmem [shape: f32[2,1,32], index: 5, kind: input, shape index: {}, may-alias: {5,7,9,11,13,17,19}]   ;;  %s7164_s6 = inlined_call_operand.vmem [shape: f32[2,32,32], index: 6, kind: input, shape index: {}]   ;;  %s7165_s7 = inlined_call_operand.vmem [shape: f32[2,1,32], index: 7, kind: input, shape index: {}, may-alias: {5,7,9,11,13,17,19}]   ;;  %s7166_s8 = inlined_call_operand.vmem [shape: f32[2,32,32], index: 8, kind: input, shape index: {}]   ;;  %s7167_s9 = inlined_call_operand.vmem [shape: f32[2,1,32], index: 9, kind: input, shape index: {}, may-alias: {5,7,9,11,13,17,19}]   ;;  %s7168_s10 = inlined_call_operand.vmem [shape: f32[2,32,32], index: 10, kind: input, shape index: {}]   ;;  %s7169_s11 = inlined_call_operand.vmem [shape: f32[2,1,32], index: 11, kind: input, shape index: {}, may-alias: {5,7,9,11,13,17,19}]   ;;  %s7170_s12 = inlined_call_operand.vmem [shape: f32[2,1,32], index: 12, kind: input, shape index: {}, may-alias: {12,18}]   ;;  %s7171_s13 = inlined_call_operand.vmem [shape: f32[2,1,32], index: 13, kind: input, shape index: {}, may-alias: {5,7,9,11,13,17,19}]   ;;  %s7172_s14 = inlined_call_operand.hbm [shape: f32[2,32,64], index: 14, kind: input, shape index: {}]   ;;  %s7173_s15 = inlined_call_operand.vmem [shape: f32[2,1,64], index: 15, kind: input, shape index: {}]   ;;  %s7174_s16 = inlined_call_operand.vmem [shape: f32[2,64,32], index: 16, kind: input, shape index: {}]   ;;  %s7175_s17 = inlined_call_operand.vmem [shape: f32[2,1,32], index: 17, kind: input, shape index: {}, may-alias: {5,7,9,11,13,17,19}]   ;;  %s7176_s18 = inlined_call_operand.vmem [shape: f32[2,1,32], index: 18, kind: input, shape index: {}, may-alias: {12,18}]   ;;  %s7177_s19 = inlined_call_operand.vmem [shape: f32[2,1,32], index: 19, kind: input, shape index: {}, may-alias: {5,7,9,11,13,17,19}]   ;;  %s7178_s20 = inlined_call_operand.vmem [shape: f32[1,32], index: 20, kind: input, shape index: {}]   ;;  %s7179_s21 = inlined_call_operand.vmem [shape: f32[1,32], index: 21, kind: input, shape index: {}, may-alias: {21,23}]   ;;  %s7180_s22 = inlined_call_operand.vmem [shape: f32[4,32,32], index: 22, kind: input, shape index: {}]   ;;  %s7181_s23 = inlined_call_operand.vmem [shape: f32[1,32], index: 23, kind: input, shape index: {}, may-alias: {21,23}]   ;;  %s7182_s24 = inlined_call_operand.vmem [shape: f32[32,1], index: 24, kind: input, shape index: {}]   ;;  %s7183_s25 = inlined_call_operand.<no memory space> [shape: f32[1,1], index: 25, kind: input, shape index: {}]   ;;  %s7184_s26 = inlined_call_operand.vmem [shape: f32[2,1], index: 26, kind: output, shape index: {}]  }
   0x1   :  { %7199 = sst [smem:[#allocation6_spill]] %s7158_s0  ;;  %v31_v0 = vstv %s7183_s25 }
   0x2   :  { %7200 = sst [smem:[#allocation7_spill]] %s7159_s1  ;;  %32 = vst [vmem:[#allocation2] sm:$0x1] %v31_v0 }
   0x3   :  { %7201 = sst [smem:[#allocation8_spill]] %s7160_s2 }
   0x4   :  { %7202 = sst [smem:[#allocation9_spill]] %s7161_s3 }
   0x5   :  { %7203 = sst [smem:[#allocation10_spill]] %s7162_s4 }
   0x6   :  { %7204 = sst [smem:[#allocation11_spill]] %s7163_s5 }
   0x7   :  { %7205 = sst [smem:[#allocation12_spill]] %s7164_s6 }
   0x8   :  { %7206 = sst [smem:[#allocation13_spill]] %s7165_s7 }
   0x9   :  { %7207 = sst [smem:[#allocation14_spill]] %s7166_s8 }
   0xa   :  { %7208 = sst [smem:[#allocation15_spill]] %s7167_s9 }
   0xb   :  { %7209 = sst [smem:[#allocation16_spill]] %s7168_s10 }
   0xc   :  { %33 = vsyncpa [#allocation4], 0  ;;  %s6108_s7 = smov [#allocation3]   ;;  %s6084_s29 = scalar_lea.hbm %s7172_s14, 1024 }
   0xd   :  { %s67_s28 = sshll.u32 %s6108_s7, 4  ;;  %p6085_p0 = scmp.ne.s32.totalorder %s7172_s14, %s6084_s29  ;;  %s68_s28 = int_to_ptr.vmem [resolvable:$true] %s67_s28 }
   0xe   :  { %p6088_p1 = scmp.lt.u32.totalorder %s6084_s29, %s7172_s14 }
  0x10   :  { %p6090_p2 = pnand %p6088_p1, %p6085_p0 }
  0x12   :  { %6093 = shalt.err (!%p6090_p2)
}
  0x13   :  { %s6094_s25 = scalar_lea.vmem %s68_s28, 1024  ;;  %p6099_p4 = scmp.lt.s32.totalorder %s68_s28, %s68_s28 }
  0x14   :  { %p6095_p3 = scmp.ne.s32.totalorder %s68_s28, %s6094_s25  ;;  %p6100_p5 = scmp.lt.s32.totalorder %s6094_s25, %s6094_s25 }
  0x16   :  { %p6101_p6 = por %p6100_p5, %p6099_p4 }
  0x18   :  { %p6102_p7 = pnand %p6101_p6, %p6095_p3 }
  0x1a   :  { %6105 = shalt.err (!%p6102_p7)
}
  0x1b   :  { %s6109_s5 = smov 128   ;;  %s6110_s10 = smov 8  }
  0x1c   :  { %73 = dma.hbm_to_vmem [thread:$0]  %s7172_s14, 1024, %s68_s28, [#allocation4], %s6109_s5, %s6109_s5, %s6110_s10  }
  0x1d   :  { %6106 = dma.done.wait [#allocation4], 1024  }
  0x1e   :  { %6107 = vsyncadd [#allocation4], 4294966272  ;;  %s7210_s7 = sld [smem:[#allocation12_spill]]  ;;  %s7211_s9 = sld [smem:[#allocation10_spill]]  ;;  %vm126_vm0 = vcmask 261120   ;;  %v6111_v23 = vmov 0.0   ;;  %v729_v49 = vlaneseq }
  0x1f   :  { %s7212_s4 = sld [smem:[#allocation6_spill]]  ;;  %vm6112_vm1 = vmmov 0   ;;  %s7214_s2 = sld [smem:[#allocation13_spill]]  ;;  %vm416_vm2 = vcmask 130048   ;;  %vm753_vm3 = vcmask 64512   ;;  %vm2128_vm4 = vcmask 523264  }
  0x20   :  { %s7213_s30 = sld [smem:[#allocation14_spill]]  ;;  %s7215_s25 = sld [smem:[#allocation11_spill]]  ;;  %v730_v52 = vshrl.u32 %v729_v49, 7  ;;  %vm4536_vm5 = vcmask 7168   ;;  %vm4631_vm6 = vcmask 1041409   ;;  %vm5037_vm7 = vcmask 1024  }
  0x21   :  { %s7216_s6 = sld [smem:[#allocation15_spill]]  ;;  %s7197_s5 = smov 112  }
  0x22   :  { %s7217_s3 = sld [smem:[#allocation7_spill]]  ;;  %v731_v56 = vsub.s32 0, %v730_v52  ;;  %s7218_s27 = sld [smem:[#allocation16_spill]] }
  0x23   :  { %s7195_s28 = smov 16   ;;  %s7220_s14 = smov 16  }
  0x24   :  { %v224_v1 = vld [vmem:[%s7210_s7] sm:$0xff]  ;;  %v225_v2 = vld [vmem:[%s7210_s7 + $0x8] sm:$0xff]  ;;  %v226_v6 = vld [vmem:[%s7210_s7 + $0x10] sm:$0xff] }
  0x25   :  { %v115_v3 = vld [vmem:[%s7211_s9] sm:$0xff]  ;;  %v5815_v4 = vpack.c.bf16 %v225_v2, %v224_v1  ;;  %v116_v5 = vld [vmem:[%s7211_s9 + $0x8] sm:$0xff]  ;;  %v227_v7 = vld [vmem:[%s7210_s7 + $0x18] sm:$0xff] }
  0x26   :  { %v5807_v8 = vpack.c.bf16 %v116_v5, %v115_v3  ;;  %v5819_v9 = vpack.c.bf16 %v227_v7, %v226_v6  ;;  %v117_v10 = vld [vmem:[%s7211_s9 + $0x10] sm:$0xff]  ;;  %v118_v11 = vld [vmem:[%s7211_s9 + $0x18] sm:$0xff]  ;;  %v6294_v12 = vld [vmem:[%s7212_s4] sm:$0xff] }
  0x27   :  { %5816 = vmatprep.subr.bf16.mxu1 %v5815_v4  ;;  %v5811_v13 = vpack.c.bf16 %v118_v11, %v117_v10  ;;  %5430 = vmatprep.mubr.msk.f32.mxu1 %vm126_vm0, %v6294_v12  ;;  %v320_v14 = vld [vmem:[%s7213_s30] sm:$0xff]  ;;  %v321_v15 = vld [vmem:[%s7213_s30 + $0x8] sm:$0xff]  ;;  %v322_v17 = vld [vmem:[%s7213_s30 + $0x10] sm:$0xff] }
  0x28   :  { %5818 = vmatpush3.bf16.msra.mxu1 %v5815_v4  ;;  %5808 = vmatprep.subr.bf16.mxu0 %v5807_v8  ;;  %v5823_v16 = vpack.c.bf16 %v321_v15, %v320_v14  ;;  %v323_v18 = vld [vmem:[%s7213_s30 + $0x18] sm:$0xff]  ;;  %v6315_v19 = vld [vmem:[%s7212_s4 + $0x8] sm:$0xff]  ;;  %v6320_v20 = vld [vmem:[%s7212_s4 + $0x10] sm:$0xff] }
  0x29   :  { %5810 = vmatpush3.bf16.msra.mxu0 %v5807_v8  ;;  %5820 = vmatprep.subr.bf16.mxu1 %v5819_v9  ;;  %v5827_v21 = vpack.c.bf16 %v323_v18, %v322_v17  ;;  %v6331_v22 = vld [vmem:[%s7212_s4 + $0x18] sm:$0xff]  ;;  %v5049_v24 = vld [vmem:[%s7214_s2] ss:$0 sm:$0xff]  ;;  %v105_v53 = vld [vmem:[%s7217_s3 + $0x2] sm:$0x1] }
  0x2a   :  { %5812 = vmatprep.subr.bf16.mxu0 %v5811_v13  ;;  %5416 = vmatprep.mubr.msk.f32.mxu0 %vm126_vm0, %v6294_v12  ;;  %v5044_v26 = vld [vmem:[%s7215_s25] ss:$0 sm:$0xff]  ;;  %v104_v54 = vld [vmem:[%s7217_s3 + $0x1] sm:$0x1]  ;;  %v109_v57 = vsub.f32 1.0, %v105_v53 }
  0x2b   :  { %v6410_v44 = vld [vmem:[%s7216_s6] ss:$0 sm:$0xff]  ;;  %v108_v58 = vsub.f32 1.0, %v104_v54  ;;  %v106_v59 = vld [vmem:[%s7217_s3 + $0x3] sm:$0x1] }
  0x2c   :  { %5822 = vmatpush3.bf16.msra.mxu1 %v5819_v9  ;;  %v103_v50 = vld [vmem:[%s7217_s3] sm:$0x1]  ;;  %v113_v61 = vmul.f32 -1e+09, %v109_v57  ;;  %v110_v63 = vsub.f32 1.0, %v106_v59  ;;  %s7222_s3 = sld [smem:[#allocation9_spill]] }
  0x2d   :  { %5814 = vmatpush3.bf16.msra.mxu0 %v5811_v13  ;;  %5949 = vmatprep.subr.bf16.mxu1 %v5823_v16  ;;  %v107_v51 = vsub.f32 1.0, %v103_v50  ;;  %v112_v62 = vmul.f32 -1e+09, %v108_v58 }
  0x2e   :  { %5824 = vmatprep.subr.bf16.mxu0 %v5823_v16  ;;  %v6437_v4 = vrot.slane %v113_v61, %v731_v56  ;;  %v114_v6 = vmul.f32 -1e+09, %v110_v63 }
  0x2f   :  { %5431 = vmatmul.mubr.msk.f32.vlgmr.msra.gmra.mrb[0].mxu1 %vm126_vm0, %v6315_v19  ;;  %v111_v55 = vmul.f32 -1e+09, %v107_v51  ;;  %v6439_v5 = vrot.slane %v112_v62, %v731_v56 }
  0x30   :  { %5417 = vmatmul.mubr.msk.f32.vlgmr.msra.gmra.mrb[0].mxu0 %vm126_vm0, %v6315_v19  ;;  %5433 = vmatprep.mubr.msk.f32.mxu1 %vm126_vm0, %v6320_v20  ;;  %v6444_v17 = vrot.slane %v114_v6, %v731_v56 }
  0x31   :  { %5419 = vmatprep.mubr.msk.f32.mxu0 %vm126_vm0, %v6320_v20  ;;  %5951 = vmatpush3.bf16.msra.mxu1 %v5823_v16  ;;  %v6434_v60 = vrot.slane %v111_v55, %v731_v56 }
  0x32   :  { %5950 = vmatprep.subr.bf16.mxu1 %v5827_v21  ;;  %5826 = vmatpush3.bf16.msra.mxu0 %v5823_v16 }
  0x33   :  { %5434 = vmatmul.mubr.msk.f32.gmra.mrb[2].mxu1 %vm126_vm0, %v6331_v22  ;;  %5828 = vmatprep.subr.bf16.mxu0 %v5827_v21 }
  0x34   :  { %5420 = vmatmul.mubr.msk.f32.gmra.mrb[2].mxu0 %vm126_vm0, %v6331_v22  ;;  %5447 = vmatprep.mubr.msk.f32.mxu1 %vm126_vm0, %v6320_v20 }
  0x35   :  { %5952 = vmatpush3.bf16.msra.mxu1 %v5827_v21  ;;  %5444 = vmatprep.mubr.msk.f32.mxu0 %vm126_vm0, %v6294_v12 }
  0x36   :  { %5830 = vmatpush3.bf16.msra.mxu0 %v5827_v21  ;;  %5450 = vmatprep.subr.mxu1 %v6111_v23 }
  0x37   :  { %5460 = vmatprep.subr.mxu0 %v6111_v23 }
  0x38   :  { %5448 = vmatmul.mubr.msk.f32.vlgmr.msra.gmra.mrb[4].mxu1 %vm126_vm0, %v6331_v22 }
  0x39   :  { %5445 = vmatmul.mubr.msk.f32.vlgmr.msra.gmra.mrb[4].mxu0 %vm126_vm0, %v6315_v19  ;;  %5452 = vmatprep.mubr.msk.f32.mxu1 %vm6112_vm1, %v6111_v23 }
  0x3a   :  { %5462 = vmatprep.mubr.msk.f32.mxu0 %vm6112_vm1, %v6111_v23 }
 0x102   :  { %v5432_v25 = vpop.f32.mrb[0].mxu1 }
 0x103   :  { %v301_v27 = vpop.f32.mrb[1].mxu1  ;;  %v5418_v28 = vpop.f32.mrb[0].mxu0  ;;  %v6366_v35 = vadd.f32 %v5432_v25, %v5049_v24 }
 0x104   :  { %v6359_v29 = vadd.f32 %v5049_v24, %v301_v27  ;;  %v205_v30 = vpop.f32.mrb[1].mxu0  ;;  %v6380_v40 = vadd.f32 %v5418_v28, %v5044_v26 }
 0x105   :  { %v6361_v31 = vadd.f32 %v5044_v26, %v205_v30 }
 0x106   :  { %v5435_v32 = vpop.f32.mrb[2].mxu1  ;;  %5451 = vmatpush3.xpose.msk.msra.mxu1 %vm416_vm2, %v6359_v29 }
 0x107   :  { %v311_v33 = vpop.f32.mrb[3].mxu1  ;;  %v5421_v34 = vpop.f32.mrb[2].mxu0  ;;  %5455 = vmatprep.subr.mxu1 %v6111_v23  ;;  %v6374_v39 = vadd.f32 %v5435_v32, %v5049_v24 }
 0x108   :  { %v6368_v36 = vadd.f32 %v5049_v24, %v311_v33  ;;  %v215_v37 = vpop.f32.mrb[3].mxu0  ;;  %v6390_v43 = vadd.f32 %v5421_v34, %v5044_v26 }
 0x109   :  { %5453 = vmatmul.mubr.msk.f32.vlgmr.msra.gmra.mrb[6].mxu1 %vm416_vm2, %v6361_v31  ;;  %v6372_v38 = vadd.f32 %v5044_v26, %v215_v37 }
 0x10a   :  { %5456 = vmatpush3.xpose.msk.msra.mxu1 %vm416_vm2, %v6366_v35  ;;  %5461 = vmatpush3.xpose.msk.msra.mxu0 %vm416_vm2, %v6368_v36 }
 0x10b   :  { %5457 = vmatprep.mubr.msk.f32.mxu1 %vm6112_vm1, %v6111_v23  ;;  %5465 = vmatprep.subr.mxu1 %v6111_v23  ;;  %v6385_v41 = vpop.f32.mrb[4].mxu1 }
 0x10c   :  { %v6387_v42 = vpop.f32.mrb[5].mxu1  ;;  %5470 = vmatprep.subr.mxu0 %v6111_v23  ;;  %v5446_v45 = vpop.f32.mrb[4].mxu0 }
 0x10d   :  { %5458 = vmatmul.mubr.msk.f32.vlgmr.msra.gmra.mrb[8].mxu1 %vm416_vm2, %v6380_v40  ;;  %5463 = vmatmul.mubr.msk.f32.vlgmr.msra.gmra.mrb[6].mxu0 %vm416_vm2, %v6372_v38  ;;  %v6413_v46 = vadd.f32 %v5446_v45, %v6410_v44  ;;  %v397_v47 = vpop.f32.mrb[5].mxu0 }
 0x10e   :  { %5466 = vmatpush3.xpose.msk.msra.mxu1 %vm416_vm2, %v6374_v39  ;;  %5467 = vmatprep.mubr.msk.f32.mxu1 %vm6112_vm1, %v6111_v23  ;;  %v6416_v48 = vadd.f32 %v6410_v44, %v397_v47 }
 0x10f   :  { %5475 = vmatprep.subr.mxu1 %v6111_v23  ;;  %5472 = vmatprep.mubr.msk.f32.mxu0 %vm6112_vm1, %v6111_v23 }
 0x110   :  { %5471 = vmatpush3.msra.mxu0 %v6416_v48 }
 0x111   :  { %5468 = vmatmul.mubr.msk.f32.vlgmr.msra.gmra.mrb[10].mxu1 %vm416_vm2, %v6390_v43  ;;  %5480 = vmatprep.subr.mxu0 %v6111_v23 }
 0x112   :  { %5477 = vmatprep.mubr.msk.f32.mxu1 %vm6112_vm1, %v6111_v23  ;;  %5476 = vmatpush3.msra.mxu1 %v6413_v46 }
 0x113   :  { %5485 = vmatprep.subr.mxu1 %v6111_v23 }
 0x1dc   :  { %v489_v0 = vpop.f32.mrb[6].mxu1 }
 0x1dd   :  { %v721_v1 = vmul.f32 0.25, %v489_v0  ;;  %v5454_v2 = vpop.f32.mrb[7].mxu1 }
 0x1df   :  { %v749_v3 = vadd.f32 %v6434_v60, %v721_v1  ;;  %v6472_v1 = vadd.f32 %v6410_v44, %v6387_v42 }
 0x1e0   :  { %v565_v7 = vpop.f32.mrb[8].mxu1  ;;  %v641_v8 = vpop.f32.mrb[6].mxu0 }
 0x1e1   :  { %v722_v9 = vmul.f32 0.25, %v565_v7  ;;  %v723_v10 = vmul.f32 0.25, %v641_v8  ;;  %v5459_v11 = vpop.f32.mrb[9].mxu1  ;;  %v754_v13 = vsel %vm753_vm3, %v749_v3, -inf  ;;  %v5464_v14 = vpop.f32.mrb[7].mxu0 }
 0x1e2   :  { %755 = vmax.xlane.f32.xlu0 %v754_v13 }
 0x1e3   :  { %v751_v15 = vadd.f32 %v6437_v4, %v723_v10  ;;  %v750_v16 = vadd.f32 %v6439_v5, %v722_v9 }
 0x1e4   :  { %v717_v18 = vpop.f32.mrb[10].mxu1 }
 0x1e5   :  { %v724_v21 = vmul.f32 0.25, %v717_v18  ;;  %v760_v24 = vsel %vm753_vm3, %v751_v15, -inf  ;;  %v757_v25 = vsel %vm753_vm3, %v750_v16, -inf  ;;  %v5469_v26 = vpop.f32.mrb[11].mxu1 }
 0x1e6   :  { %761 = vmax.xlane.f32.xlu1 %v760_v24  ;;  %758 = vmax.xlane.f32.xlu0 %v757_v25 }
 0x1e7   :  { %v752_v27 = vadd.f32 %v6444_v17, %v724_v21 }
 0x1e9   :  { %v763_v28 = vsel %vm753_vm3, %v752_v27, -inf }
 0x1ea   :  { %764 = vmax.xlane.f32.xlu1 %v763_v28 }
 0x1fb   :  { %1170 = vrot.lane.b32.xlu1 %v6366_v35, %s7197_s5 }
 0x1ff   :  { %1090 = vrot.lane.b32.xlu1 %v6361_v31, %s7197_s5 }
 0x203   :  { %1168 = vrot.lane.b32.xlu1 %v6380_v40, %s7197_s5 }
 0x26f   :  { %v756_v30 = vpop.xlane.xlu0 %755 }
 0x270   :  { %v766_v32 = vsub.f32 %v749_v3, %v756_v30 }
 0x272   :  { %v770_v33 = vmul.f32 1.442695, %v766_v32 }
 0x273   :  { %v759_v34 = vpop.xlane.xlu0 %758  ;;  %v762_v31 = vpop.xlane.xlu1 %761 }
 0x274   :  { %5964 = vpow2.f32 %v770_v33  ;;  %v767_v37 = vsub.f32 %v750_v16, %v759_v34  ;;  %v768_v40 = vsub.f32 %v751_v15, %v762_v31 }
 0x276   :  { %v772_v45 = vmul.f32 1.442695, %v767_v37  ;;  %v774_v52 = vmul.f32 1.442695, %v768_v40 }
 0x277   :  { %v765_v51 = vpop.xlane.xlu1 %764 }
 0x278   :  { %5966 = vpow2.f32 %v772_v45  ;;  %v769_v53 = vsub.f32 %v752_v27, %v765_v51 }
 0x279   :  { %5968 = vpow2.f32 %v774_v52 }
 0x27a   :  { %v776_v54 = vmul.f32 1.442695, %v769_v53 }
 0x27c   :  { %5970 = vpow2.f32 %v776_v54 }
 0x27e   :  { %v5965_v47 = vpop.eup %5964 }
 0x27f   :  { %v778_v49 = vsel %vm753_vm3, %v5965_v47, 0.0 }
 0x280   :  { %779 = vadd.xlane.f32.xlu0 %v778_v49 }
 0x282   :  { %v5967_v50 = vpop.eup %5966 }
 0x283   :  { %v781_v35 = vsel %vm753_vm3, %v5967_v50, 0.0  ;;  %v5969_v55 = vpop.eup %5968 }
 0x284   :  { %782 = vadd.xlane.f32.xlu1 %v781_v35  ;;  %v784_v56 = vsel %vm753_vm3, %v5969_v55, 0.0 }
 0x286   :  { %v5971_v57 = vpop.eup %5970 }
 0x287   :  { %v787_v58 = vsel %vm753_vm3, %v5971_v57, 0.0 }
 0x295   :  { %1326 = vrot.lane.b32.xlu1 %v6374_v39, %s7197_s5 }
 0x296   :  { %1092 = vrot.lane.b32.xlu0 %v6359_v29, %s7197_s5  ;;  %v1171_v29 = vpop.permute.xlu1 %1170 }
 0x29a   :  { %v1091_v39 = vpop.permute.xlu1 %1090 }
 0x29e   :  { %v1169_v61 = vpop.permute.xlu1 %1168 }
 0x2b5   :  { %785 = vadd.xlane.f32.xlu0 %v784_v56 }
 0x2b9   :  { %788 = vadd.xlane.f32.xlu1 %v787_v58 }
 0x2ca   :  { %1324 = vrot.lane.b32.xlu1 %v6390_v43, %s7197_s5  ;;  %v6481_v43 = vadd.f32 %v6385_v41, %v6410_v44 }
 0x2cb   :  { %1248 = vrot.lane.b32.xlu0 %v6368_v36, %s7197_s5 }
 0x2cf   :  { %1246 = vrot.lane.b32.xlu0 %v6372_v38, %s7197_s5 }
 0x30d   :  { %v780_v59 = vpop.xlane.xlu0 %779 }
 0x30e   :  { %5972 = vrcp.f32 %v780_v59 }
 0x311   :  { %v783_v62 = vpop.xlane.xlu1 %782  ;;  %v1093_v42 = vpop.permute.xlu0 %1092 }
 0x312   :  { %5974 = vrcp.f32 %v783_v62 }
 0x315   :  { %v1327_v3 = vpop.permute.xlu1 %1326 }
 0x318   :  { %v5973_v63 = vpop.eup %5972 }
 0x319   :  { %v794_v0 = vmul.f32 %v5973_v63, %v5965_v47 }
 0x31b   :  { %5473 = vmatmul.mubr.msk.f32.vlgmr.msra.gmra.mrb[8].mxu0 %vm753_vm3, %v794_v0 }
 0x31c   :  { %5481 = vmatpush3.msra.mxu0 %v6472_v1  ;;  %5482 = vmatprep.mubr.msk.f32.mxu0 %vm6112_vm1, %v6111_v23  ;;  %v5975_v36 = vpop.eup %5974 }
 0x31d   :  { %5490 = vmatprep.subr.mxu0 %v6111_v23  ;;  %v795_v38 = vmul.f32 %v5975_v36, %v5967_v50 }
 0x31f   :  { %5478 = vmatmul.mubr.msk.f32.vlgmr.msra.gmra.mrb[12].mxu1 %vm753_vm3, %v795_v38 }
 0x320   :  { %5486 = vmatpush3.msra.mxu1 %v6481_v43  ;;  %5487 = vmatprep.mubr.msk.f32.mxu1 %vm6112_vm1, %v6111_v23 }
 0x321   :  { %5495 = vmatprep.subr.mxu1 %v6111_v23 }
 0x342   :  { %v786_v2 = vpop.xlane.xlu0 %785 }
 0x343   :  { %5976 = vrcp.f32 %v786_v2 }
 0x346   :  { %v789_v6 = vpop.xlane.xlu1 %788  ;;  %v1249_v41 = vpop.permute.xlu0 %1248 }
 0x347   :  { %5978 = vrcp.f32 %v789_v6 }
 0x34a   :  { %v1247_v10 = vpop.permute.xlu0 %1246  ;;  %v1325_v11 = vpop.permute.xlu1 %1324 }
 0x34d   :  { %v5977_v7 = vpop.eup %5976 }
 0x34e   :  { %v796_v8 = vmul.f32 %v5977_v7, %v5969_v55 }
 0x350   :  { %5483 = vmatmul.mubr.msk.f32.vlgmr.msra.gmra.mrb[10].mxu0 %vm753_vm3, %v796_v8 }
 0x351   :  { %5491 = vmatpush3.xpose.msk.msra.mxu0 %vm416_vm2, %v1093_v42  ;;  %5492 = vmatprep.mubr.msk.f32.mxu0 %vm6112_vm1, %v6111_v23  ;;  %v5979_v44 = vpop.eup %5978 }
 0x352   :  { %5500 = vmatprep.subr.mxu0 %v6111_v23  ;;  %v797_v9 = vmul.f32 %v5979_v44, %v5971_v57 }
 0x354   :  { %5493 = vmatmul.mubr.msk.f32.vlgmr.msra.gmra.mrb[12].mxu0 %vm416_vm2, %v1091_v39  ;;  %5488 = vmatmul.mubr.msk.f32.vlgmr.msra.gmra.mrb[14].mxu1 %vm753_vm3, %v797_v9 }
 0x355   :  { %5501 = vmatpush3.xpose.msk.msra.mxu0 %vm416_vm2, %v1249_v41  ;;  %5496 = vmatpush3.xpose.msk.msra.mxu1 %vm416_vm2, %v1171_v29 }
 0x356   :  { %5497 = vmatprep.mubr.msk.f32.mxu1 %vm6112_vm1, %v6111_v23  ;;  %5502 = vmatprep.mubr.msk.f32.mxu0 %vm6112_vm1, %v6111_v23 }
 0x357   :  { %5505 = vmatprep.subr.mxu1 %v6111_v23  ;;  %5510 = vmatprep.subr.mxu0 %v6111_v23 }
 0x358   :  { %5503 = vmatmul.mubr.msk.f32.vlgmr.msra.gmra.mrb[14].mxu0 %vm416_vm2, %v1247_v10  ;;  %5498 = vmatmul.mubr.msk.f32.vlgmr.msra.gmra.mrb[16].mxu1 %vm416_vm2, %v1169_v61 }
 0x359   :  { %5512 = vmatprep.mubr.msk.f32.mxu0 %vm6112_vm1, %v6111_v23  ;;  %5506 = vmatpush3.xpose.msk.msra.mxu1 %vm416_vm2, %v1327_v3 }
 0x35a   :  { %5507 = vmatprep.mubr.msk.f32.mxu1 %vm6112_vm1, %v6111_v23  ;;  %5515 = vmatprep.subr.mxu1 %v6111_v23 }
 0x35c   :  { %5508 = vmatmul.mubr.msk.f32.vlgmr.msra.gmra.mrb[18].mxu1 %vm416_vm2, %v1325_v11 }
 0x35d   :  { %5517 = vmatprep.mubr.msk.f32.mxu1 %vm6112_vm1, %v6111_v23 }
 0x3ee   :  { %v6514_v13 = vpop.f32.mrb[8].mxu0 }
 0x3ef   :  { %v5474_v14 = vpop.f32.mrb[9].mxu0 }
 0x3f2   :  { %v6516_v15 = vpop.f32.mrb[12].mxu1 }
 0x3f3   :  { %v5479_v16 = vpop.f32.mrb[13].mxu1 }
 0x423   :  { %v6518_v18 = vpop.f32.mrb[10].mxu0 }
 0x424   :  { %v5484_v21 = vpop.f32.mrb[11].mxu0 }
 0x427   :  { %v1164_v24 = vpop.f32.mrb[12].mxu0  ;;  %v6520_v25 = vpop.f32.mrb[14].mxu1 }
 0x428   :  { %v1402_v26 = vmul.f32 0.25, %v1164_v24  ;;  %v5494_v27 = vpop.f32.mrb[13].mxu0  ;;  %v5489_v28 = vpop.f32.mrb[15].mxu1 }
 0x42a   :  { %v1406_v30 = vadd.f32 %v1402_v26, %v6434_v60 }
 0x42b   :  { %v1320_v32 = vpop.f32.mrb[14].mxu0  ;;  %v1242_v33 = vpop.f32.mrb[16].mxu1 }
 0x42c   :  { %v1404_v34 = vmul.f32 0.25, %v1320_v32  ;;  %v5504_v37 = vpop.f32.mrb[15].mxu0  ;;  %v1410_v45 = vsel %vm753_vm3, %v1406_v30, -inf  ;;  %v1403_v47 = vmul.f32 0.25, %v1242_v33  ;;  %v5499_v49 = vpop.f32.mrb[17].mxu1  ;;  %v1782_v33 = vld [vmem:[%s7218_s27] sm:$0xff] }
 0x42d   :  { %1411 = vmax.xlane.f32.xlu0 %v1410_v45  ;;  %v1784_v45 = vld [vmem:[%s7218_s27 + $0x10] sm:$0xff] }
 0x42e   :  { %v1408_v50 = vadd.f32 %v1404_v34, %v6437_v4  ;;  %v1407_v35 = vadd.f32 %v1403_v47, %v6439_v5  ;;  %v1783_v34 = vld [vmem:[%s7218_s27 + $0x8] sm:$0xff]  ;;  %v1785_v47 = vld [vmem:[%s7218_s27 + $0x18] sm:$0xff] }
 0x42f   :  { %v1398_v31 = vpop.f32.mrb[18].mxu1  ;;  %v5831_v37 = vpack.c.bf16 %v1783_v34, %v1782_v33  ;;  %v5835_v49 = vpack.c.bf16 %v1785_v47, %v1784_v45 }
 0x430   :  { %v1416_v40 = vsel %vm753_vm3, %v1408_v50, -inf  ;;  %v1405_v51 = vmul.f32 0.25, %v1398_v31  ;;  %v5509_v52 = vpop.f32.mrb[19].mxu1  ;;  %v1413_v53 = vsel %vm753_vm3, %v1407_v35, -inf }
 0x431   :  { %1417 = vmax.xlane.f32.xlu0 %v1416_v40  ;;  %1414 = vmax.xlane.f32.xlu1 %v1413_v53 }
 0x432   :  { %v1409_v54 = vadd.f32 %v1405_v51, %v6444_v17 }
 0x434   :  { %v1419_v55 = vsel %vm753_vm3, %v1409_v54, -inf }
 0x435   :  { %1420 = vmax.xlane.f32.xlu0 %v1419_v55 }
 0x4ba   :  { %v1412_v56 = vpop.xlane.xlu0 %1411 }
 0x4bb   :  { %v1422_v57 = vsub.f32 %v1406_v30, %v1412_v56 }
 0x4bd   :  { %v1426_v58 = vmul.f32 1.442695, %v1422_v57 }
 0x4be   :  { %v1418_v29 = vpop.xlane.xlu0 %1417  ;;  %v1415_v59 = vpop.xlane.xlu1 %1414 }
 0x4bf   :  { %5980 = vpow2.f32 %v1426_v58  ;;  %v1424_v39 = vsub.f32 %v1408_v50, %v1418_v29  ;;  %v1423_v61 = vsub.f32 %v1407_v35, %v1415_v59 }
 0x4c1   :  { %v1430_v62 = vmul.f32 1.442695, %v1424_v39  ;;  %v1428_v63 = vmul.f32 1.442695, %v1423_v61 }
 0x4c2   :  { %v1421_v6 = vpop.xlane.xlu0 %1420 }
 0x4c3   :  { %5982 = vpow2.f32 %v1430_v62  ;;  %v1425_v7 = vsub.f32 %v1409_v54, %v1421_v6 }
 0x4c4   :  { %5984 = vpow2.f32 %v1428_v63 }
 0x4c5   :  { %v1432_v8 = vmul.f32 1.442695, %v1425_v7 }
 0x4c7   :  { %5986 = vpow2.f32 %v1432_v8 }
 0x4c9   :  { %v5981_v0 = vpop.eup %5980 }
 0x4ca   :  { %v1434_v36 = vsel %vm753_vm3, %v5981_v0, 0.0 }
 0x4cb   :  { %1435 = vadd.xlane.f32.xlu0 %v1434_v36 }
 0x4cd   :  { %v5983_v38 = vpop.eup %5982 }
 0x4ce   :  { %v5985_v42 = vpop.eup %5984  ;;  %v1440_v2 = vsel %vm753_vm3, %v5983_v38, 0.0 }
 0x4cf   :  { %v1437_v3 = vsel %vm753_vm3, %v5985_v42, 0.0  ;;  %1441 = vadd.xlane.f32.xlu0 %v1440_v2 }
 0x4d0   :  { %1438 = vadd.xlane.f32.xlu1 %v1437_v3 }
 0x4d1   :  { %v5987_v41 = vpop.eup %5986 }
 0x4d2   :  { %v1443_v44 = vsel %vm753_vm3, %v5987_v41, 0.0 }
 0x4e1   :  { %1532 = vrot.lane.b32.xlu1 %v6413_v46, %s7197_s5 }
 0x4e5   :  { %1609 = vrot.lane.b32.xlu1 %v6472_v1, %s7197_s5  ;;  %1455 = vrot.lane.b32.xlu0 %v6416_v48, %s7197_s5 }
 0x509   :  { %1444 = vadd.xlane.f32.xlu1 %v1443_v44 }
 0x51a   :  { %1686 = vrot.lane.b32.xlu1 %v6481_v43, %s7197_s5  ;;  %s7221_s5 = sld [smem:[#allocation8_spill]] }
 0x558   :  { %v1436_v9 = vpop.xlane.xlu0 %1435 }
 0x559   :  { %5988 = vrcp.f32 %v1436_v9 }
 0x55c   :  { %v1442_v46 = vpop.xlane.xlu0 %1441 }
 0x55d   :  { %v1439_v10 = vpop.xlane.xlu1 %1438  ;;  %5990 = vrcp.f32 %v1442_v46 }
 0x55e   :  { %5992 = vrcp.f32 %v1439_v10 }
 0x560   :  { %v1456_v1 = vpop.permute.xlu0 %1455 }
 0x561   :  { %v1533_v11 = vpop.permute.xlu1 %1532  ;;  %5511 = vmatpush3.msra.mxu0 %v1456_v1 }
 0x562   :  { %5516 = vmatpush3.msra.mxu1 %v1533_v11  ;;  %5520 = vmatprep.subr.mxu0 %v6111_v23 }
 0x563   :  { %v5989_v48 = vpop.eup %5988  ;;  %5525 = vmatprep.subr.mxu1 %v6111_v23 }
 0x564   :  { %v1450_v14 = vmul.f32 %v5989_v48, %v5981_v0 }
 0x565   :  { %v1610_v16 = vpop.permute.xlu1 %1609 }
 0x566   :  { %5513 = vmatmul.mubr.msk.f32.vlgmr.msra.gmra.mrb[16].mxu0 %vm753_vm3, %v1450_v14 }
 0x567   :  { %v5991_v43 = vpop.eup %5990  ;;  %5521 = vmatpush3.msra.mxu0 %v1610_v16  ;;  %5522 = vmatprep.mubr.msk.f32.mxu0 %vm6112_vm1, %v6111_v23  ;;  %v1969_v16 = vld [vmem:[#allocation3] sm:$0xff] }
 0x568   :  { %v5993_v21 = vpop.eup %5992  ;;  %v1452_v24 = vmul.f32 %v5991_v43, %v5983_v38  ;;  %5832 = vmatprep.subr.bf16.mxu0 %v5831_v37 }
 0x569   :  { %v1451_v26 = vmul.f32 %v5993_v21, %v5985_v42  ;;  %v1971_v21 = vld [vmem:[#allocation3 + $0x10] sm:$0xff] }
 0x56a   :  { %5523 = vmatmul.mubr.msk.f32.vlgmr.msra.gmra.mrb[18].mxu0 %vm753_vm3, %v1452_v24  ;;  %v1972_v24 = vld [vmem:[#allocation3 + $0x18] sm:$0xff] }
 0x56b   :  { %5518 = vmatmul.mubr.msk.f32.vlgmr.msra.gmra.mrb[20].mxu1 %vm753_vm3, %v1451_v26  ;;  %5834 = vmatpush3.bf16.msra.mxu0 %v5831_v37  ;;  %v5843_v26 = vpack.c.bf16 %v1972_v24, %v1971_v21 }
 0x56c   :  { %5527 = vmatprep.mubr.msk.f32.mxu1 %vm6112_vm1, %v6111_v23  ;;  %5836 = vmatprep.subr.bf16.mxu0 %v5835_v49 }
 0x56f   :  { %5838 = vmatpush3.bf16.msra.mxu0 %v5835_v49 }
 0x596   :  { %v1445_v27 = vpop.xlane.xlu1 %1444 }
 0x597   :  { %5994 = vrcp.f32 %v1445_v27 }
 0x59a   :  { %v1687_v28 = vpop.permute.xlu1 %1686 }
 0x59b   :  { %5526 = vmatpush3.msra.mxu1 %v1687_v28 }
 0x5a1   :  { %v5995_v30 = vpop.eup %5994 }
 0x5a2   :  { %v1453_v32 = vmul.f32 %v5995_v30, %v5987_v41 }
 0x5a4   :  { %5528 = vmatmul.mubr.msk.f32.vlgmr.msra.gmra.mrb[22].mxu1 %vm753_vm3, %v1453_v32 }
 0x639   :  { %v1527_v50 = vpop.f32.mrb[16].mxu0 }
 0x63a   :  { %1766 = vrot.lane.b32.xlu0 %v1527_v50, %s7195_s28  ;;  %v5514_v35 = vpop.f32.mrb[17].mxu0 }
 0x63d   :  { %v1681_v31 = vpop.f32.mrb[18].mxu0 }
 0x63e   :  { %v1604_v40 = vpop.f32.mrb[20].mxu1  ;;  %1770 = vrot.lane.b32.xlu0 %v1681_v31, %s7195_s28  ;;  %v5524_v51 = vpop.f32.mrb[19].mxu0 }
 0x63f   :  { %1768 = vrot.lane.b32.xlu1 %v1604_v40, %s7195_s28  ;;  %v5519_v52 = vpop.f32.mrb[21].mxu1 }
 0x677   :  { %v1758_v53 = vpop.f32.mrb[22].mxu1 }
 0x678   :  { %1772 = vrot.lane.b32.xlu1 %v1758_v53, %s7195_s28  ;;  %v5529_v54 = vpop.f32.mrb[23].mxu1 }
 0x679   :  { %v5088_v54 = vld [vmem:[%s7170_s12] ss:$0 sm:$0xff] }
 0x6ac   :  { %v1767_v55 = vpop.permute.xlu0 %1766 }
 0x6ad   :  { %v1778_v56 = vsel %vm416_vm2, %v6514_v13, %v1767_v55  ;;  %v5083_v13 = vld [vmem:[%s7169_s11] ss:$0 sm:$0xff] }
 0x6ae   :  { %5538 = vmatprep.mubr.msk.f32.mxu0 %vm126_vm0, %v1778_v56 }
 0x6b0   :  { %v1771_v57 = vpop.permute.xlu0 %1770 }
 0x6b1   :  { %v1780_v58 = vsel %vm416_vm2, %v6518_v18, %v1771_v57  ;;  %v1769_v29 = vpop.permute.xlu1 %1768 }
 0x6b2   :  { %v1779_v39 = vsel %vm416_vm2, %v6516_v15, %v1769_v29 }
 0x6b3   :  { %5539 = vmatmul.mubr.msk.f32.vlgmr.msra.gmra.mrb[20].mxu0 %vm126_vm0, %v1779_v39 }
 0x6b4   :  { %5541 = vmatprep.mubr.msk.f32.mxu0 %vm126_vm0, %v1780_v58  ;;  %v5089_v58 = vld [vmem:[%s7171_s13] ss:$0 sm:$0xff] }
 0x6ea   :  { %v1773_v59 = vpop.permute.xlu1 %1772 }
 0x6eb   :  { %v1781_v61 = vsel %vm416_vm2, %v6520_v25, %v1773_v59 }
 0x6ec   :  { %5542 = vmatmul.mubr.msk.f32.gmra.mrb[22].mxu0 %vm126_vm0, %v1781_v61 }
 0x786   :  { %v5540_v62 = vpop.f32.mrb[20].mxu0 }
 0x787   :  { %v1877_v18 = vadd.f32 %v5540_v62, %v5083_v13  ;;  %v1871_v63 = vpop.f32.mrb[21].mxu0 }
 0x788   :  { %v1872_v0 = vadd.f32 %v5083_v13, %v1871_v63 }
 0x789   :  { %v1891_v15 = vadd.f32 %v1877_v18, %v6315_v19 }
 0x78a   :  { %v1890_v36 = vadd.f32 %v1872_v0, %v6294_v12 }
 0x78b   :  { %v1899_v38 = vsel %vm126_vm0, %v1891_v15, 0.0 }
 0x78c   :  { %1900 = vadd.xlane.f32.xlu1 %v1899_v38  ;;  %v1896_v42 = vsel %vm126_vm0, %v1890_v36, 0.0 }
 0x78d   :  { %1897 = vadd.xlane.f32.xlu0 %v1896_v42 }
 0x7bf   :  { %v5543_v25 = vpop.f32.mrb[22].mxu0 }
 0x7c0   :  { %v1881_v2 = vpop.f32.mrb[23].mxu0  ;;  %v1887_v3 = vadd.f32 %v5543_v25, %v5083_v13 }
 0x7c1   :  { %v1882_v6 = vadd.f32 %v5083_v13, %v1881_v2 }
 0x7c2   :  { %v1893_v41 = vadd.f32 %v1887_v3, %v6331_v22  ;;  %v1970_v22 = vld [vmem:[#allocation3 + $0x8] sm:$0xff] }
 0x7c3   :  { %v1892_v7 = vadd.f32 %v1882_v6, %v6320_v20  ;;  %v5839_v43 = vpack.c.bf16 %v1970_v22, %v1969_v16 }
 0x7c4   :  { %v1905_v19 = vsel %vm126_vm0, %v1893_v41, 0.0 }
 0x7c5   :  { %v1902_v8 = vsel %vm126_vm0, %v1892_v7, 0.0  ;;  %5840 = vmatprep.subr.bf16.mxu1 %v5839_v43 }
 0x7c6   :  { %1903 = vadd.xlane.f32.xlu0 %v1902_v8  ;;  %5842 = vmatpush3.bf16.msra.mxu1 %v5839_v43  ;;  %v2113_v8 = vld [vmem:[%s7174_s16] sm:$0xff] }
 0x7c7   :  { %5844 = vmatprep.subr.bf16.mxu1 %v5843_v26 }
 0x7ca   :  { %1906 = vadd.xlane.f32.xlu0 %v1905_v19  ;;  %5846 = vmatpush3.bf16.msra.mxu1 %v5843_v26 }
 0x819   :  { %v1901_v12 = vpop.xlane.xlu1 %1900 }
 0x81a   :  { %v1910_v44 = vmul.f32 0.03125, %v1901_v12  ;;  %v1898_v9 = vpop.xlane.xlu0 %1897  ;;  %v2115_v12 = vld [vmem:[%s7174_s16 + $0x10] sm:$0xff] }
 0x81b   :  { %v1909_v46 = vmul.f32 0.03125, %v1898_v9 }
 0x81c   :  { %v1914_v10 = vsub.f32 %v1891_v15, %v1910_v44  ;;  %v2116_v44 = vld [vmem:[%s7174_s16 + $0x18] sm:$0xff] }
 0x81d   :  { %v1913_v1 = vsub.f32 %v1890_v36, %v1909_v46  ;;  %v5851_v9 = vpack.c.bf16 %v2116_v44, %v2115_v12  ;;  %v2117_v46 = vld [vmem:[%s7174_s16 + $0x20] sm:$0xff] }
 0x81e   :  { %v1918_v11 = vmul.f32 %v1914_v10, %v1914_v10 }
 0x81f   :  { %v1917_v48 = vmul.f32 %v1913_v1, %v1913_v1 }
 0x820   :  { %v1924_v14 = vsel %vm126_vm0, %v1918_v11, 0.0  ;;  %v2119_v11 = vld [vmem:[%s7174_s16 + $0x30] sm:$0xff] }
 0x821   :  { %1925 = vadd.xlane.f32.xlu1 %v1924_v14  ;;  %v1921_v20 = vsel %vm126_vm0, %v1917_v48, 0.0  ;;  %v2120_v48 = vld [vmem:[%s7174_s16 + $0x38] sm:$0xff] }
 0x822   :  { %1922 = vadd.xlane.f32.xlu0 %v1921_v20  ;;  %v5859_v14 = vpack.c.bf16 %v2120_v48, %v2119_v11  ;;  %v5090_v20 = vld [vmem:[%s7173_s15] ss:$0 sm:$0xff] }
 0x853   :  { %v1904_v27 = vpop.xlane.xlu0 %1903 }
 0x854   :  { %v1911_v28 = vmul.f32 0.03125, %v1904_v27 }
 0x856   :  { %v1915_v30 = vsub.f32 %v1892_v7, %v1911_v28 }
 0x857   :  { %v1907_v32 = vpop.xlane.xlu0 %1906 }
 0x858   :  { %v1912_v33 = vmul.f32 0.03125, %v1907_v32  ;;  %v1919_v34 = vmul.f32 %v1915_v30, %v1915_v30 }
 0x85a   :  { %v1916_v37 = vsub.f32 %v1893_v41, %v1912_v33  ;;  %v1927_v45 = vsel %vm126_vm0, %v1919_v34, 0.0  ;;  %v2114_v41 = vld [vmem:[%s7174_s16 + $0x8] sm:$0xff] }
 0x85b   :  { %1928 = vadd.xlane.f32.xlu0 %v1927_v45  ;;  %v5847_v19 = vpack.c.bf16 %v2114_v41, %v2113_v8 }
 0x85c   :  { %v1920_v47 = vmul.f32 %v1916_v37, %v1916_v37 }
 0x85d   :  { %5848 = vmatprep.subr.bf16.mxu0 %v5847_v19 }
 0x85e   :  { %v1930_v49 = vsel %vm126_vm0, %v1920_v47, 0.0  ;;  %5850 = vmatpush3.bf16.msra.mxu0 %v5847_v19  ;;  %v5095_v19 = vld [vmem:[%s7175_s17] ss:$0 sm:$0xff] }
 0x85f   :  { %1931 = vadd.xlane.f32.xlu1 %v1930_v49  ;;  %5852 = vmatprep.subr.bf16.mxu0 %v5851_v9 }
 0x862   :  { %5854 = vmatpush3.bf16.msra.mxu0 %v5851_v9 }
 0x8ae   :  { %v1926_v50 = vpop.xlane.xlu1 %1925 }
 0x8af   :  { %v1934_v35 = vmul.f32 0.03125, %v1926_v50  ;;  %v1923_v31 = vpop.xlane.xlu0 %1922 }
 0x8b0   :  { %v1933_v40 = vmul.f32 0.03125, %v1923_v31 }
 0x8b1   :  { %v1938_v51 = vadd.f32 1e-12, %v1934_v35 }
 0x8b2   :  { %v1937_v52 = vadd.f32 1e-12, %v1933_v40 }
 0x8b3   :  { %5996 = vrsqrt.f32 %v1938_v51 }
 0x8b4   :  { %5998 = vrsqrt.f32 %v1937_v52 }
 0x8bd   :  { %v5997_v53 = vpop.eup %5996 }
 0x8be   :  { %v5999_v55 = vpop.eup %5998  ;;  %v1946_v56 = vmul.f32 %v5997_v53, %v1914_v10  ;;  %v2118_v10 = vld [vmem:[%s7174_s16 + $0x28] sm:$0xff] }
 0x8bf   :  { %v1945_v57 = vmul.f32 %v5999_v55, %v1913_v1  ;;  %v5855_v1 = vpack.c.bf16 %v2118_v10, %v2117_v46 }
 0x8c0   :  { %v1956_v29 = vmul.f32 %v5088_v54, %v1946_v56 }
 0x8c1   :  { %v1955_v39 = vmul.f32 %v5088_v54, %v1945_v57  ;;  %5856 = vmatprep.subr.bf16.mxu0 %v5855_v1 }
 0x8c2   :  { %v6603_v61 = vadd.f32 %v5089_v58, %v1956_v29  ;;  %5858 = vmatpush3.bf16.msra.mxu0 %v5855_v1 }
 0x8c3   :  { %v6601_v59 = vadd.f32 %v5089_v58, %v1955_v39  ;;  %5860 = vmatprep.subr.bf16.mxu0 %v5859_v14 }
 0x8c5   :  { %5552 = vmatprep.mubr.msk.f32.mxu1 %vm126_vm0, %v6601_v59 }
 0x8c6   :  { %5553 = vmatmul.mubr.msk.f32.vlgmr.msra.gmra.mrb[24].mxu1 %vm126_vm0, %v6603_v61  ;;  %5862 = vmatpush3.bf16.msra.mxu0 %v5859_v14 }
 0x8e8   :  { %v1929_v13 = vpop.xlane.xlu0 %1928 }
 0x8e9   :  { %v1935_v62 = vmul.f32 0.03125, %v1929_v13 }
 0x8eb   :  { %v1939_v18 = vadd.f32 1e-12, %v1935_v62 }
 0x8ec   :  { %v1932_v63 = vpop.xlane.xlu1 %1931 }
 0x8ed   :  { %6000 = vrsqrt.f32 %v1939_v18  ;;  %v1936_v0 = vmul.f32 0.03125, %v1932_v63 }
 0x8ef   :  { %v1940_v15 = vadd.f32 1e-12, %v1936_v0 }
 0x8f1   :  { %6002 = vrsqrt.f32 %v1940_v15 }
 0x8f7   :  { %v6001_v36 = vpop.eup %6000 }
 0x8f8   :  { %v1947_v38 = vmul.f32 %v6001_v36, %v1915_v30 }
 0x8fa   :  { %v1957_v42 = vmul.f32 %v5088_v54, %v1947_v38 }
 0x8fb   :  { %v6003_v25 = vpop.eup %6002 }
 0x8fc   :  { %v6609_v2 = vadd.f32 %v5089_v58, %v1957_v42  ;;  %v1948_v3 = vmul.f32 %v6003_v25, %v1916_v37 }
 0x8fe   :  { %5555 = vmatprep.mubr.msk.f32.mxu1 %vm126_vm0, %v6609_v2  ;;  %v1958_v6 = vmul.f32 %v5088_v54, %v1948_v3 }
 0x900   :  { %v6613_v7 = vadd.f32 %v5089_v58, %v1958_v6 }
 0x902   :  { %5556 = vmatmul.mubr.msk.f32.gmra.mrb[26].mxu1 %vm126_vm0, %v6613_v7 }
 0x999   :  { %v5554_v16 = vpop.f32.mrb[24].mxu1 }
 0x99a   :  { %v2064_v22 = vadd.f32 %v5554_v16, %v5090_v20  ;;  %v2058_v43 = vpop.f32.mrb[25].mxu1 }
 0x99b   :  { %v2059_v21 = vadd.f32 %v5090_v20, %v2058_v43 }
 0x99c   :  { %v2078_v24 = vmul.f32 %v2064_v22, %v2064_v22 }
 0x99d   :  { %v2077_v26 = vmul.f32 %v2059_v21, %v2059_v21 }
 0x99e   :  { %v2082_v27 = vmul.f32 %v2078_v24, %v2064_v22 }
 0x99f   :  { %v2081_v28 = vmul.f32 %v2077_v26, %v2059_v21 }
 0x9a0   :  { %v2086_v30 = vmul.f32 0.044715, %v2082_v27 }
 0x9a1   :  { %v2085_v32 = vmul.f32 0.044715, %v2081_v28 }
 0x9a2   :  { %v2090_v33 = vadd.f32 %v2086_v30, %v2064_v22 }
 0x9a3   :  { %v2089_v34 = vadd.f32 %v2085_v32, %v2059_v21 }
 0x9a4   :  { %v2094_v37 = vmul.f32 0.7978846, %v2090_v33 }
 0x9a5   :  { %v2093_v45 = vmul.f32 0.7978846, %v2089_v34 }
 0x9a6   :  { %6004 = vtanh.f32 %v2094_v37 }
 0x9a7   :  { %6006 = vtanh.f32 %v2093_v45  ;;  %v5103_v45 = vld [vmem:[%s7211_s9 + $0x28] sm:$0xff] }
 0x9b0   :  { %v6005_v47 = vpop.eup %6004 }
 0x9b1   :  { %v6007_v49 = vpop.eup %6006  ;;  %v2102_v50 = vadd.f32 1.0, %v6005_v47  ;;  %v5122_v47 = vld [vmem:[%s7213_s30 + $0x20] sm:$0xff] }
 0x9b2   :  { %v2101_v35 = vadd.f32 1.0, %v6007_v49 }
 0x9b3   :  { %v2106_v31 = vmul.f32 0.5, %v2102_v50  ;;  %v5123_v50 = vld [vmem:[%s7213_s30 + $0x28] sm:$0xff] }
 0x9b4   :  { %v2105_v40 = vmul.f32 0.5, %v2101_v35  ;;  %v5879_v35 = vpack.c.bf16 %v5123_v50, %v5122_v47 }
 0x9b5   :  { %v2110_v52 = vmul.f32 %v2106_v31, %v2064_v22  ;;  %v5104_v31 = vld [vmem:[%s7211_s9 + $0x30] sm:$0xff] }
 0x9b6   :  { %v2109_v51 = vmul.f32 %v2105_v40, %v2059_v21  ;;  %v5105_v40 = vld [vmem:[%s7211_s9 + $0x38] sm:$0xff]  ;;  %5880 = vmatprep.subr.bf16.mxu0 %v5879_v35 }
 0x9b8   :  { %5574 = vmatprep.mubr.msk.f32.mxu0 %vm2128_vm4, %v2109_v51  ;;  %v5124_v51 = vld [vmem:[%s7213_s30 + $0x30] sm:$0xff] }
 0x9b9   :  { %5575 = vmatmul.mubr.msk.f32.vlgmr.msra.gmra.mrb[24].mxu0 %vm2128_vm4, %v2110_v52  ;;  %v5867_v52 = vpack.c.bf16 %v5105_v40, %v5104_v31 }
 0x9ba   :  { %5882 = vmatpush3.bf16.msra.mxu0 %v5879_v35 }
 0x9d5   :  { %v5557_v53 = vpop.f32.mrb[26].mxu1 }
 0x9d6   :  { %v2074_v54 = vadd.f32 %v5557_v53, %v5090_v20  ;;  %v2068_v55 = vpop.f32.mrb[27].mxu1  ;;  %v5125_v53 = vld [vmem:[%s7213_s30 + $0x38] sm:$0xff] }
 0x9d7   :  { %v2069_v56 = vadd.f32 %v5090_v20, %v2068_v55 }
 0x9d8   :  { %v2080_v57 = vmul.f32 %v2074_v54, %v2074_v54 }
 0x9d9   :  { %v2079_v58 = vmul.f32 %v2069_v56, %v2069_v56 }
 0x9da   :  { %v2084_v29 = vmul.f32 %v2080_v57, %v2074_v54 }
 0x9db   :  { %v2083_v39 = vmul.f32 %v2079_v58, %v2069_v56 }
 0x9dc   :  { %v2088_v13 = vmul.f32 0.044715, %v2084_v29 }
 0x9dd   :  { %v2087_v62 = vmul.f32 0.044715, %v2083_v39 }
 0x9de   :  { %v2092_v18 = vadd.f32 %v2088_v13, %v2074_v54 }
 0x9df   :  { %v2091_v63 = vadd.f32 %v2087_v62, %v2069_v56 }
 0x9e0   :  { %v2096_v0 = vmul.f32 0.7978846, %v2092_v18 }
 0x9e1   :  { %v2095_v15 = vmul.f32 0.7978846, %v2091_v63 }
 0x9e2   :  { %6008 = vtanh.f32 %v2096_v0  ;;  %v5112_v0 = vld [vmem:[%s7210_s7 + $0x20] sm:$0xff] }
 0x9e3   :  { %6010 = vtanh.f32 %v2095_v15  ;;  %v5113_v15 = vld [vmem:[%s7210_s7 + $0x28] sm:$0xff] }
 0x9ec   :  { %v6009_v36 = vpop.eup %6008 }
 0x9ed   :  { %v6011_v38 = vpop.eup %6010  ;;  %v2104_v42 = vadd.f32 1.0, %v6009_v36  ;;  %v5871_v36 = vpack.c.bf16 %v5113_v15, %v5112_v0 }
 0x9ee   :  { %v2103_v25 = vadd.f32 1.0, %v6011_v38 }
 0x9ef   :  { %v2108_v3 = vmul.f32 0.5, %v2104_v42 }
 0x9f0   :  { %v2107_v6 = vmul.f32 0.5, %v2103_v25 }
 0x9f1   :  { %v2112_v41 = vmul.f32 %v2108_v3, %v2074_v54  ;;  %v5883_v54 = vpack.c.bf16 %v5125_v53, %v5124_v51  ;;  %v5117_v53 = vld [vmem:[%s7214_s2 + $0x1] ss:$0 sm:$0xff]  ;;  %s7219_s2 = smov 112  }
 0x9f2   :  { %v2111_v8 = vmul.f32 %v2107_v6, %v2069_v56 }
 0x9f3   :  { %5884 = vmatprep.subr.bf16.mxu0 %v5883_v54 }
 0x9f4   :  { %5577 = vmatprep.mubr.msk.f32.mxu0 %vm2128_vm4, %v2111_v8  ;;  %5886 = vmatpush3.bf16.msra.mxu0 %v5883_v54 }
 0x9f5   :  { %5578 = vmatmul.mubr.msk.f32.gmra.mrb[26].mxu0 %vm2128_vm4, %v2112_v41  ;;  %5632 = vmatprep.subr.mxu0 %v6111_v23 }
 0xa8c   :  { %v5576_v12 = vpop.f32.mrb[24].mxu0 }
 0xa8d   :  { %v2213_v44 = vadd.f32 %v5576_v12, %v5095_v19  ;;  %v2207_v9 = vpop.f32.mrb[25].mxu0 }
 0xa8e   :  { %v2208_v46 = vadd.f32 %v5095_v19, %v2207_v9 }
 0xa8f   :  { %v2227_v10 = vadd.f32 %v2213_v44, %v6603_v61 }
 0xa90   :  { %v2226_v1 = vadd.f32 %v2208_v46, %v6601_v59  ;;  %v5101_v46 = vld [vmem:[%s7177_s19] ss:$0 sm:$0xff] }
 0xa91   :  { %v2235_v11 = vsel %vm126_vm0, %v2227_v10, 0.0 }
 0xa92   :  { %2236 = vadd.xlane.f32.xlu1 %v2235_v11  ;;  %v2232_v48 = vsel %vm126_vm0, %v2226_v1, 0.0  ;;  %v5114_v11 = vld [vmem:[%s7210_s7 + $0x30] sm:$0xff] }
 0xa93   :  { %2233 = vadd.xlane.f32.xlu0 %v2232_v48  ;;  %v5115_v48 = vld [vmem:[%s7210_s7 + $0x38] sm:$0xff] }
 0xac8   :  { %v5579_v14 = vpop.f32.mrb[26].mxu0 }
 0xac9   :  { %v2223_v20 = vadd.f32 %v5579_v14, %v5095_v19  ;;  %v2217_v16 = vpop.f32.mrb[27].mxu0 }
 0xaca   :  { %v2218_v22 = vadd.f32 %v5095_v19, %v2217_v16  ;;  %v5100_v19 = vld [vmem:[%s7176_s18] ss:$0 sm:$0xff]  ;;  %v5875_v16 = vpack.c.bf16 %v5115_v48, %v5114_v11 }
 0xacb   :  { %v2229_v43 = vadd.f32 %v2223_v20, %v6613_v7 }
 0xacc   :  { %v2228_v21 = vadd.f32 %v2218_v22, %v6609_v2  ;;  %v5102_v2 = vld [vmem:[%s7211_s9 + $0x20] sm:$0xff] }
 0xacd   :  { %v2241_v24 = vsel %vm126_vm0, %v2229_v43, 0.0  ;;  %v5863_v49 = vpack.c.bf16 %v5103_v45, %v5102_v2 }
 0xace   :  { %2242 = vadd.xlane.f32.xlu1 %v2241_v24  ;;  %v2238_v61 = vsel %vm126_vm0, %v2228_v21, 0.0 }
 0xacf   :  { %2239 = vadd.xlane.f32.xlu0 %v2238_v61  ;;  %5864 = vmatprep.subr.bf16.mxu1 %v5863_v49 }
 0xad0   :  { %5866 = vmatpush3.bf16.msra.mxu1 %v5863_v49  ;;  %v5127_v49 = vld [vmem:[%s7216_s6 + $0x1] ss:$0 sm:$0xff] }
 0xad1   :  { %5868 = vmatprep.subr.bf16.mxu1 %v5867_v52 }
 0xad4   :  { %5870 = vmatpush3.bf16.msra.mxu1 %v5867_v52 }
 0xad5   :  { %5872 = vmatprep.subr.bf16.mxu1 %v5871_v36 }
 0xb1f   :  { %v2237_v59 = vpop.xlane.xlu1 %2236 }
 0xb20   :  { %v2245_v26 = vmul.f32 0.03125, %v2237_v59  ;;  %v2234_v27 = vpop.xlane.xlu0 %2233 }
 0xb21   :  { %v2244_v28 = vmul.f32 0.03125, %v2234_v27 }
 0xb22   :  { %v2249_v30 = vsub.f32 %v2227_v10, %v2245_v26 }
 0xb23   :  { %v2248_v32 = vsub.f32 %v2226_v1, %v2244_v28 }
 0xb24   :  { %v2253_v33 = vmul.f32 %v2249_v30, %v2249_v30 }
 0xb25   :  { %v2252_v34 = vmul.f32 %v2248_v32, %v2248_v32 }
 0xb26   :  { %v2259_v37 = vsel %vm126_vm0, %v2253_v33, 0.0 }
 0xb27   :  { %2260 = vadd.xlane.f32.xlu1 %v2259_v37  ;;  %v2256_v7 = vsel %vm126_vm0, %v2252_v34, 0.0 }
 0xb28   :  { %2257 = vadd.xlane.f32.xlu0 %v2256_v7 }
 0xb5b   :  { %v2243_v55 = vpop.xlane.xlu1 %2242 }
 0xb5c   :  { %v2247_v56 = vmul.f32 0.03125, %v2243_v55  ;;  %v2240_v57 = vpop.xlane.xlu0 %2239 }
 0xb5d   :  { %v2246_v58 = vmul.f32 0.03125, %v2240_v57 }
 0xb5e   :  { %v2251_v29 = vsub.f32 %v2229_v43, %v2247_v56  ;;  %v5107_v56 = vld [vmem:[%s7215_s25 + $0x1] ss:$0 sm:$0xff] }
 0xb5f   :  { %v2250_v39 = vsub.f32 %v2228_v21, %v2246_v58 }
 0xb60   :  { %v2255_v13 = vmul.f32 %v2251_v29, %v2251_v29 }
 0xb61   :  { %v2254_v62 = vmul.f32 %v2250_v39, %v2250_v39 }
 0xb62   :  { %v2265_v18 = vsel %vm126_vm0, %v2255_v13, 0.0 }
 0xb63   :  { %2266 = vadd.xlane.f32.xlu1 %v2265_v18  ;;  %v2262_v63 = vsel %vm126_vm0, %v2254_v62, 0.0 }
 0xb64   :  { %2263 = vadd.xlane.f32.xlu0 %v2262_v63 }
 0xbb4   :  { %v2261_v38 = vpop.xlane.xlu1 %2260 }
 0xbb5   :  { %v2269_v42 = vmul.f32 0.03125, %v2261_v38  ;;  %v2258_v25 = vpop.xlane.xlu0 %2257 }
 0xbb6   :  { %v2268_v3 = vmul.f32 0.03125, %v2258_v25 }
 0xbb7   :  { %v2273_v6 = vadd.f32 1e-12, %v2269_v42 }
 0xbb8   :  { %v2272_v8 = vadd.f32 1e-12, %v2268_v3 }
 0xbb9   :  { %6012 = vrsqrt.f32 %v2273_v6 }
 0xbba   :  { %6014 = vrsqrt.f32 %v2272_v8 }
 0xbc3   :  { %v6013_v41 = vpop.eup %6012 }
 0xbc4   :  { %v6015_v12 = vpop.eup %6014  ;;  %v2281_v44 = vmul.f32 %v6013_v41, %v2249_v30 }
 0xbc5   :  { %v2280_v9 = vmul.f32 %v6015_v12, %v2248_v32 }
 0xbc6   :  { %v2291_v10 = vmul.f32 %v5100_v19, %v2281_v44 }
 0xbc7   :  { %v2290_v1 = vmul.f32 %v5100_v19, %v2280_v9 }
 0xbc8   :  { %v6708_v20 = vadd.f32 %v5101_v46, %v2291_v10 }
 0xbc9   :  { %v6706_v14 = vadd.f32 %v5101_v46, %v2290_v1 }
 0xbcb   :  { %5588 = vmatprep.mubr.msk.f32.mxu1 %vm126_vm0, %v6706_v14  ;;  %5616 = vmatprep.mubr.msk.f32.mxu0 %vm126_vm0, %v6706_v14 }
 0xbcc   :  { %5589 = vmatmul.mubr.msk.f32.vlgmr.msra.gmra.mrb[28].mxu1 %vm126_vm0, %v6708_v20  ;;  %5617 = vmatmul.mubr.msk.f32.vlgmr.msra.gmra.mrb[28].mxu0 %vm126_vm0, %v6708_v20 }
 0xbcd   :  { %5874 = vmatpush3.bf16.msra.mxu1 %v5871_v36 }
 0xbce   :  { %5876 = vmatprep.subr.bf16.mxu1 %v5875_v16 }
 0xbd1   :  { %5878 = vmatpush3.bf16.msra.mxu1 %v5875_v16 }
 0xbd2   :  { %5622 = vmatprep.subr.mxu1 %v6111_v23 }
 0xbf0   :  { %v2267_v22 = vpop.xlane.xlu1 %2266 }
 0xbf1   :  { %v2271_v43 = vmul.f32 0.03125, %v2267_v22  ;;  %v2264_v21 = vpop.xlane.xlu0 %2263 }
 0xbf2   :  { %v2270_v24 = vmul.f32 0.03125, %v2264_v21 }
 0xbf3   :  { %v2275_v61 = vadd.f32 1e-12, %v2271_v43 }
 0xbf4   :  { %v2274_v59 = vadd.f32 1e-12, %v2270_v24 }
 0xbf5   :  { %6016 = vrsqrt.f32 %v2275_v61 }
 0xbf6   :  { %6018 = vrsqrt.f32 %v2274_v59 }
 0xbff   :  { %v6017_v26 = vpop.eup %6016 }
 0xc00   :  { %v6019_v27 = vpop.eup %6018  ;;  %v2283_v28 = vmul.f32 %v6017_v26, %v2251_v29 }
 0xc01   :  { %v2282_v30 = vmul.f32 %v6019_v27, %v2250_v39 }
 0xc02   :  { %v2293_v32 = vmul.f32 %v5100_v19, %v2283_v28 }
 0xc03   :  { %v2292_v33 = vmul.f32 %v5100_v19, %v2282_v30 }
 0xc04   :  { %v6721_v37 = vadd.f32 %v5101_v46, %v2293_v32 }
 0xc05   :  { %v6719_v34 = vadd.f32 %v5101_v46, %v2292_v33 }
 0xc07   :  { %5591 = vmatprep.mubr.msk.f32.mxu1 %vm126_vm0, %v6719_v34  ;;  %5619 = vmatprep.mubr.msk.f32.mxu0 %vm126_vm0, %v6719_v34 }
 0xc08   :  { %5592 = vmatmul.mubr.msk.f32.gmra.mrb[30].mxu1 %vm126_vm0, %v6721_v37  ;;  %5620 = vmatmul.mubr.msk.f32.gmra.mrb[30].mxu0 %vm126_vm0, %v6721_v37 }
 0xc09   :  { %5602 = vmatprep.mubr.msk.f32.mxu1 %vm126_vm0, %v6706_v14  ;;  %5634 = vmatprep.mubr.msk.f32.mxu0 %vm6112_vm1, %v6111_v23 }
 0xc0c   :  { %5603 = vmatmul.mubr.msk.f32.vlgmr.msra.gmra.mrb[32].mxu1 %vm126_vm0, %v6708_v20 }
 0xc0d   :  { %5605 = vmatprep.mubr.msk.f32.mxu1 %vm126_vm0, %v6719_v34 }
 0xc10   :  { %5606 = vmatmul.mubr.msk.f32.gmra.mrb[34].mxu1 %vm126_vm0, %v6721_v37 }
 0xc11   :  { %5624 = vmatprep.mubr.msk.f32.mxu1 %vm6112_vm1, %v6111_v23 }
 0xc9f   :  { %v5590_v7 = vpop.f32.mrb[28].mxu1  ;;  %v5618_v2 = vpop.f32.mrb[28].mxu0 }
 0xca0   :  { %v2395_v45 = vpop.f32.mrb[29].mxu1  ;;  %v2591_v47 = vpop.f32.mrb[29].mxu0  ;;  %v2401_v18 = vadd.f32 %v5590_v7, %v5107_v56  ;;  %v6785_v38 = vadd.f32 %v5618_v2, %v5127_v49 }
 0xca1   :  { %v2396_v29 = vadd.f32 %v5107_v56, %v2395_v45  ;;  %v6772_v0 = vadd.f32 %v5127_v49, %v2591_v47 }
 0xcdb   :  { %v5593_v50 = vpop.f32.mrb[30].mxu1  ;;  %v5621_v35 = vpop.f32.mrb[30].mxu0 }
 0xcdc   :  { %v6746_v31 = vadd.f32 %v5621_v35, %v5127_v49  ;;  %v2405_v40 = vpop.f32.mrb[31].mxu1  ;;  %v2601_v51 = vpop.f32.mrb[31].mxu0  ;;  %v6780_v36 = vadd.f32 %v5593_v50, %v5107_v56 }
 0xcdd   :  { %v6748_v52 = vadd.f32 %v5127_v49, %v2601_v51  ;;  %v6767_v63 = vadd.f32 %v5107_v56, %v2405_v40 }
 0xcdf   :  { %v5604_v54 = vpop.f32.mrb[32].mxu1 }
 0xce0   :  { %v2493_v55 = vpop.f32.mrb[33].mxu1  ;;  %v2499_v13 = vadd.f32 %v5604_v54, %v5117_v53 }
 0xce1   :  { %v6756_v57 = vadd.f32 %v5117_v53, %v2493_v55 }
 0xce3   :  { %v5607_v58 = vpop.f32.mrb[34].mxu1  ;;  %5623 = vmatpush3.xpose.msk.msra.mxu1 %vm416_vm2, %v6756_v57 }
 0xce4   :  { %v2503_v39 = vpop.f32.mrb[35].mxu1  ;;  %5627 = vmatprep.subr.mxu1 %v6111_v23  ;;  %v2509_v15 = vadd.f32 %v5607_v58, %v5117_v53 }
 0xce5   :  { %v6761_v62 = vadd.f32 %v5117_v53, %v2503_v39 }
 0xce6   :  { %5625 = vmatmul.mubr.msk.f32.vlgmr.msra.gmra.mrb[36].mxu1 %vm416_vm2, %v2396_v29 }
 0xce7   :  { %5628 = vmatpush3.xpose.msk.msra.mxu1 %vm416_vm2, %v2499_v13  ;;  %5633 = vmatpush3.xpose.msk.msra.mxu0 %vm416_vm2, %v6761_v62 }
 0xce8   :  { %5629 = vmatprep.mubr.msk.f32.mxu1 %vm6112_vm1, %v6111_v23  ;;  %5637 = vmatprep.subr.mxu1 %v6111_v23 }
 0xce9   :  { %5642 = vmatprep.subr.mxu0 %v6111_v23 }
 0xcea   :  { %5630 = vmatmul.mubr.msk.f32.vlgmr.msra.gmra.mrb[38].mxu1 %vm416_vm2, %v2401_v18  ;;  %5635 = vmatmul.mubr.msk.f32.vlgmr.msra.gmra.mrb[32].mxu0 %vm416_vm2, %v6767_v63 }
 0xceb   :  { %5638 = vmatpush3.xpose.msk.msra.mxu1 %vm416_vm2, %v2509_v15  ;;  %5643 = vmatpush3.msra.mxu0 %v6772_v0 }
 0xcec   :  { %5639 = vmatprep.mubr.msk.f32.mxu1 %vm6112_vm1, %v6111_v23  ;;  %5647 = vmatprep.subr.mxu1 %v6111_v23 }
 0xced   :  { %5644 = vmatprep.mubr.msk.f32.mxu0 %vm6112_vm1, %v6111_v23  ;;  %5652 = vmatprep.subr.mxu0 %v6111_v23 }
 0xcee   :  { %5640 = vmatmul.mubr.msk.f32.vlgmr.msra.gmra.mrb[40].mxu1 %vm416_vm2, %v6780_v36 }
 0xcef   :  { %5648 = vmatpush3.msra.mxu1 %v6785_v38  ;;  %5649 = vmatprep.mubr.msk.f32.mxu1 %vm6112_vm1, %v6111_v23 }
 0xcf0   :  { %5657 = vmatprep.subr.mxu1 %v6111_v23 }
 0xdb9   :  { %v2682_v42 = vpop.f32.mrb[36].mxu1 }
 0xdba   :  { %v2914_v25 = vmul.f32 0.25, %v2682_v42  ;;  %v5626_v3 = vpop.f32.mrb[37].mxu1 }
 0xdbc   :  { %v2918_v6 = vadd.f32 %v2914_v25, %v6434_v60 }
 0xdbd   :  { %v2758_v8 = vpop.f32.mrb[38].mxu1  ;;  %v2834_v41 = vpop.f32.mrb[32].mxu0 }
 0xdbe   :  { %v2915_v19 = vmul.f32 0.25, %v2758_v8  ;;  %v2916_v12 = vmul.f32 0.25, %v2834_v41  ;;  %v5631_v44 = vpop.f32.mrb[39].mxu1  ;;  %v5636_v9 = vpop.f32.mrb[33].mxu0  ;;  %v2922_v46 = vsel %vm753_vm3, %v2918_v6, -inf }
 0xdbf   :  { %2923 = vmax.xlane.f32.xlu0 %v2922_v46 }
 0xdc0   :  { %v2919_v10 = vadd.f32 %v2915_v19, %v6439_v5  ;;  %v2920_v1 = vadd.f32 %v2916_v12, %v6437_v4 }
 0xdc1   :  { %v2910_v11 = vpop.f32.mrb[40].mxu1 }
 0xdc2   :  { %v2917_v48 = vmul.f32 0.25, %v2910_v11  ;;  %v5641_v16 = vpop.f32.mrb[41].mxu1  ;;  %v2925_v22 = vsel %vm753_vm3, %v2919_v10, -inf  ;;  %v2928_v43 = vsel %vm753_vm3, %v2920_v1, -inf }
 0xdc3   :  { %2926 = vmax.xlane.f32.xlu1 %v2925_v22  ;;  %2929 = vmax.xlane.f32.xlu0 %v2928_v43 }
 0xdc4   :  { %v2921_v21 = vadd.f32 %v2917_v48, %v6444_v17 }
 0xdc6   :  { %v2931_v24 = vsel %vm753_vm3, %v2921_v21, -inf }
 0xdc7   :  { %2932 = vmax.xlane.f32.xlu1 %v2931_v24 }
 0xdd8   :  { %3338 = vrot.lane.b32.xlu1 %v2499_v13, %s7219_s2 }
 0xddc   :  { %3258 = vrot.lane.b32.xlu1 %v2396_v29, %s7219_s2 }
 0xde0   :  { %3336 = vrot.lane.b32.xlu1 %v2401_v18, %s7219_s2 }
 0xe4c   :  { %v2924_v61 = vpop.xlane.xlu0 %2923 }
 0xe4d   :  { %v2934_v59 = vsub.f32 %v2918_v6, %v2924_v61 }
 0xe4f   :  { %v2938_v26 = vmul.f32 1.442695, %v2934_v59 }
 0xe50   :  { %v2927_v27 = vpop.xlane.xlu1 %2926  ;;  %v2930_v45 = vpop.xlane.xlu0 %2929 }
 0xe51   :  { %6020 = vpow2.f32 %v2938_v26  ;;  %v2935_v28 = vsub.f32 %v2919_v10, %v2927_v27  ;;  %v2936_v47 = vsub.f32 %v2920_v1, %v2930_v45 }
 0xe53   :  { %v2940_v30 = vmul.f32 1.442695, %v2935_v28  ;;  %v2942_v50 = vmul.f32 1.442695, %v2936_v47 }
 0xe54   :  { %v2933_v49 = vpop.xlane.xlu1 %2932 }
 0xe55   :  { %6022 = vpow2.f32 %v2940_v30  ;;  %v2937_v35 = vsub.f32 %v2921_v21, %v2933_v49 }
 0xe56   :  { %6024 = vpow2.f32 %v2942_v50 }
 0xe57   :  { %v2944_v40 = vmul.f32 1.442695, %v2937_v35 }
 0xe58   :  { %v3339_v56 = vpop.permute.xlu1 %3338 }
 0xe59   :  { %6026 = vpow2.f32 %v2944_v40 }
 0xe5b   :  { %v6021_v32 = vpop.eup %6020 }
 0xe5c   :  { %v2946_v33 = vsel %vm753_vm3, %v6021_v32, 0.0 }
 0xe5d   :  { %2947 = vadd.xlane.f32.xlu0 %v2946_v33 }
 0xe5f   :  { %v6023_v7 = vpop.eup %6022 }
 0xe60   :  { %v2949_v2 = vsel %vm753_vm3, %v6023_v7, 0.0  ;;  %v6025_v51 = vpop.eup %6024 }
 0xe61   :  { %2950 = vadd.xlane.f32.xlu1 %v2949_v2  ;;  %v2952_v53 = vsel %vm753_vm3, %v6025_v51, 0.0 }
 0xe63   :  { %v6027_v54 = vpop.eup %6026 }
 0xe64   :  { %v2955_v55 = vsel %vm753_vm3, %v6027_v54, 0.0 }
 0xe72   :  { %3494 = vrot.lane.b32.xlu1 %v2509_v15, %s7219_s2 }
 0xe73   :  { %3260 = vrot.lane.b32.xlu0 %v6756_v57, %s7219_s2  ;;  %v3259_v57 = vpop.permute.xlu1 %3258 }
 0xe77   :  { %v3337_v58 = vpop.permute.xlu1 %3336 }
 0xe92   :  { %2953 = vadd.xlane.f32.xlu0 %v2952_v53 }
 0xe96   :  { %2956 = vadd.xlane.f32.xlu1 %v2955_v55 }
 0xea7   :  { %3492 = vrot.lane.b32.xlu1 %v6780_v36, %s7219_s2 }
 0xea8   :  { %3416 = vrot.lane.b32.xlu0 %v6761_v62, %s7219_s2 }
 0xeac   :  { %3414 = vrot.lane.b32.xlu0 %v6767_v63, %s7219_s2 }
 0xeea   :  { %v2948_v29 = vpop.xlane.xlu0 %2947 }
 0xeeb   :  { %6028 = vrcp.f32 %v2948_v29 }
 0xeee   :  { %v2951_v39 = vpop.xlane.xlu1 %2950  ;;  %v3261_v63 = vpop.permute.xlu0 %3260 }
 0xeef   :  { %6030 = vrcp.f32 %v2951_v39 }
 0xef2   :  { %v3495_v36 = vpop.permute.xlu1 %3494 }
 0xef5   :  { %v6029_v13 = vpop.eup %6028 }
 0xef6   :  { %v2962_v18 = vmul.f32 %v6029_v13, %v6021_v32 }
 0xef8   :  { %5645 = vmatmul.mubr.msk.f32.vlgmr.msra.gmra.mrb[34].mxu0 %vm753_vm3, %v2962_v18 }
 0xef9   :  { %v6031_v15 = vpop.eup %6030  ;;  %5653 = vmatpush3.msra.mxu0 %v6748_v52  ;;  %5654 = vmatprep.mubr.msk.f32.mxu0 %vm6112_vm1, %v6111_v23 }
 0xefa   :  { %v2963_v62 = vmul.f32 %v6031_v15, %v6023_v7  ;;  %5662 = vmatprep.subr.mxu0 %v6111_v23 }
 0xefc   :  { %5650 = vmatmul.mubr.msk.f32.vlgmr.msra.gmra.mrb[42].mxu1 %vm753_vm3, %v2963_v62 }
 0xefd   :  { %5658 = vmatpush3.msra.mxu1 %v6746_v31  ;;  %5659 = vmatprep.mubr.msk.f32.mxu1 %vm6112_vm1, %v6111_v23 }
 0xefe   :  { %5667 = vmatprep.subr.mxu1 %v6111_v23 }
 0xf1f   :  { %v2954_v42 = vpop.xlane.xlu0 %2953 }
 0xf20   :  { %6032 = vrcp.f32 %v2954_v42 }
 0xf23   :  { %v2957_v25 = vpop.xlane.xlu1 %2956  ;;  %v3417_v41 = vpop.permute.xlu0 %3416 }
 0xf24   :  { %6034 = vrcp.f32 %v2957_v25 }
 0xf27   :  { %v3415_v12 = vpop.permute.xlu0 %3414  ;;  %v3493_v44 = vpop.permute.xlu1 %3492 }
 0xf2a   :  { %v6033_v3 = vpop.eup %6032 }
 0xf2b   :  { %v2964_v6 = vmul.f32 %v6033_v3, %v6025_v51 }
 0xf2d   :  { %5655 = vmatmul.mubr.msk.f32.vlgmr.msra.gmra.mrb[36].mxu0 %vm753_vm3, %v2964_v6 }
 0xf2e   :  { %v6035_v8 = vpop.eup %6034  ;;  %5663 = vmatpush3.xpose.msk.msra.mxu0 %vm416_vm2, %v3261_v63  ;;  %5664 = vmatprep.mubr.msk.f32.mxu0 %vm6112_vm1, %v6111_v23 }
 0xf2f   :  { %v2965_v19 = vmul.f32 %v6035_v8, %v6027_v54  ;;  %5672 = vmatprep.subr.mxu0 %v6111_v23 }
 0xf31   :  { %5660 = vmatmul.mubr.msk.f32.vlgmr.msra.gmra.mrb[44].mxu1 %vm753_vm3, %v2965_v19  ;;  %5665 = vmatmul.mubr.msk.f32.vlgmr.msra.gmra.mrb[38].mxu0 %vm416_vm2, %v3259_v57 }
 0xf32   :  { %5668 = vmatpush3.xpose.msk.msra.mxu1 %vm416_vm2, %v3339_v56  ;;  %5673 = vmatpush3.xpose.msk.msra.mxu0 %vm416_vm2, %v3417_v41 }
 0xf33   :  { %5669 = vmatprep.mubr.msk.f32.mxu1 %vm6112_vm1, %v6111_v23  ;;  %5674 = vmatprep.mubr.msk.f32.mxu0 %vm6112_vm1, %v6111_v23 }
 0xf34   :  { %5677 = vmatprep.subr.mxu1 %v6111_v23  ;;  %5682 = vmatprep.subr.mxu0 %v6111_v23 }
 0xf35   :  { %5670 = vmatmul.mubr.msk.f32.vlgmr.msra.gmra.mrb[46].mxu1 %vm416_vm2, %v3337_v58  ;;  %5675 = vmatmul.mubr.msk.f32.vlgmr.msra.gmra.mrb[40].mxu0 %vm416_vm2, %v3415_v12 }
 0xf36   :  { %5678 = vmatpush3.xpose.msk.msra.mxu1 %vm416_vm2, %v3495_v36  ;;  %5679 = vmatprep.mubr.msk.f32.mxu1 %vm6112_vm1, %v6111_v23 }
 0xf37   :  { %5687 = vmatprep.subr.mxu1 %v6111_v23  ;;  %5684 = vmatprep.mubr.msk.f32.mxu0 %vm6112_vm1, %v6111_v23 }
 0xf39   :  { %5680 = vmatmul.mubr.msk.f32.vlgmr.msra.gmra.mrb[48].mxu1 %vm416_vm2, %v3493_v44 }
 0xf3a   :  { %5689 = vmatprep.mubr.msk.f32.mxu1 %vm6112_vm1, %v6111_v23 }
 0xfcb   :  { %v6856_v9 = vpop.f32.mrb[34].mxu0 }
 0xfcc   :  { %v5646_v46 = vpop.f32.mrb[35].mxu0 }
 0xfcf   :  { %v6858_v10 = vpop.f32.mrb[42].mxu1 }
 0xfd0   :  { %v5651_v1 = vpop.f32.mrb[43].mxu1 }
0x1000   :  { %v6860_v11 = vpop.f32.mrb[36].mxu0 }
0x1001   :  { %v5656_v48 = vpop.f32.mrb[37].mxu0 }
0x1004   :  { %v6862_v16 = vpop.f32.mrb[44].mxu1  ;;  %v3332_v22 = vpop.f32.mrb[38].mxu0 }
0x1005   :  { %v3570_v43 = vmul.f32 0.25, %v3332_v22  ;;  %v5661_v21 = vpop.f32.mrb[45].mxu1  ;;  %v5666_v24 = vpop.f32.mrb[39].mxu0 }
0x1006   :  { %v5156_v21 = vld [vmem:[%s7218_s27 + $0x20] sm:$0xff]  ;;  %v5157_v24 = vld [vmem:[%s7218_s27 + $0x28] sm:$0xff] }
0x1007   :  { %v3574_v61 = vadd.f32 %v3570_v43, %v6434_v60 }
0x1008   :  { %v3410_v59 = vpop.f32.mrb[46].mxu1  ;;  %v3488_v26 = vpop.f32.mrb[40].mxu0 }
0x1009   :  { %v3571_v27 = vmul.f32 0.25, %v3410_v59  ;;  %v3572_v28 = vmul.f32 0.25, %v3488_v26  ;;  %v5671_v30 = vpop.f32.mrb[47].mxu1  ;;  %v5676_v32 = vpop.f32.mrb[41].mxu0  ;;  %v3578_v33 = vsel %vm753_vm3, %v3574_v61, -inf  ;;  %v5158_v59 = vld [vmem:[%s7218_s27 + $0x30] sm:$0xff] }
0x100a   :  { %3579 = vmax.xlane.f32.xlu0 %v3578_v33  ;;  %v5159_v26 = vld [vmem:[%s7218_s27 + $0x38] sm:$0xff] }
0x100b   :  { %v3575_v7 = vadd.f32 %v3571_v27, %v6439_v5  ;;  %v3576_v2 = vadd.f32 %v3572_v28, %v6437_v4  ;;  %v5891_v27 = vpack.c.bf16 %v5159_v26, %v5158_v59 }
0x100c   :  { %v3566_v45 = vpop.f32.mrb[48].mxu1 }
0x100d   :  { %v3573_v47 = vmul.f32 0.25, %v3566_v45  ;;  %v5681_v49 = vpop.f32.mrb[49].mxu1  ;;  %v3581_v50 = vsel %vm753_vm3, %v3575_v7, -inf  ;;  %v3584_v60 = vsel %vm753_vm3, %v3576_v2, -inf }
0x100e   :  { %3582 = vmax.xlane.f32.xlu1 %v3581_v50  ;;  %3585 = vmax.xlane.f32.xlu0 %v3584_v60 }
0x100f   :  { %v3577_v35 = vadd.f32 %v3573_v47, %v6444_v17 }
0x1011   :  { %v3587_v40 = vsel %vm753_vm3, %v3577_v35, -inf }
0x1012   :  { %3588 = vmax.xlane.f32.xlu0 %v3587_v40 }
0x1097   :  { %v3580_v51 = vpop.xlane.xlu0 %3579 }
0x1098   :  { %v3590_v53 = vsub.f32 %v3574_v61, %v3580_v51  ;;  %v5887_v61 = vpack.c.bf16 %v5157_v24, %v5156_v21 }
0x109a   :  { %v3594_v54 = vmul.f32 1.442695, %v3590_v53 }
0x109b   :  { %v3583_v5 = vpop.xlane.xlu1 %3582  ;;  %v3586_v55 = vpop.xlane.xlu0 %3585 }
0x109c   :  { %6036 = vpow2.f32 %v3594_v54  ;;  %v3591_v4 = vsub.f32 %v3575_v7, %v3583_v5  ;;  %v3592_v56 = vsub.f32 %v3576_v2, %v3586_v55 }
0x109e   :  { %v3596_v57 = vmul.f32 1.442695, %v3591_v4  ;;  %v3598_v58 = vmul.f32 1.442695, %v3592_v56 }
0x109f   :  { %v3589_v62 = vpop.xlane.xlu0 %3588 }
0x10a0   :  { %6038 = vpow2.f32 %v3596_v57  ;;  %v3593_v63 = vsub.f32 %v3577_v35, %v3589_v62 }
0x10a1   :  { %6040 = vpow2.f32 %v3598_v58 }
0x10a2   :  { %v3600_v36 = vmul.f32 1.442695, %v3593_v63 }
0x10a4   :  { %6042 = vpow2.f32 %v3600_v36 }
0x10a6   :  { %v6037_v29 = vpop.eup %6036 }
0x10a7   :  { %v3602_v39 = vsel %vm753_vm3, %v6037_v29, 0.0 }
0x10a8   :  { %3603 = vadd.xlane.f32.xlu0 %v3602_v39 }
0x10aa   :  { %v6039_v17 = vpop.eup %6038 }
0x10ab   :  { %v6041_v13 = vpop.eup %6040  ;;  %v3605_v18 = vsel %vm753_vm3, %v6039_v17, 0.0 }
0x10ac   :  { %3606 = vadd.xlane.f32.xlu1 %v3605_v18  ;;  %v3608_v15 = vsel %vm753_vm3, %v6041_v13, 0.0 }
0x10ad   :  { %3609 = vadd.xlane.f32.xlu0 %v3608_v15 }
0x10ae   :  { %v6043_v42 = vpop.eup %6042 }
0x10af   :  { %v3611_v25 = vsel %vm753_vm3, %v6043_v42, 0.0 }
0x10bd   :  { %3700 = vrot.lane.b32.xlu1 %v6785_v38, %s7219_s2 }
0x10c1   :  { %3777 = vrot.lane.b32.xlu1 %v6748_v52, %s7219_s2 }
0x10c3   :  { %3623 = vrot.lane.b32.xlu0 %v6772_v0, %s7219_s2 }
0x10e5   :  { %3612 = vadd.xlane.f32.xlu1 %v3611_v25 }
0x10f6   :  { %3854 = vrot.lane.b32.xlu1 %v6746_v31, %s7219_s2 }
0x1135   :  { %v3604_v3 = vpop.xlane.xlu0 %3603 }
0x1136   :  { %6044 = vrcp.f32 %v3604_v3 }
0x1139   :  { %v3607_v38 = vpop.xlane.xlu1 %3606 }
0x113a   :  { %6046 = vrcp.f32 %v3607_v38  ;;  %v3610_v6 = vpop.xlane.xlu0 %3609 }
0x113b   :  { %6048 = vrcp.f32 %v3610_v6 }
0x113d   :  { %v3701_v52 = vpop.permute.xlu1 %3700 }
0x113e   :  { %v3624_v8 = vpop.permute.xlu0 %3623  ;;  %5688 = vmatpush3.msra.mxu1 %v3701_v52  ;;  %v4141_v52 = vld [vmem:[#allocation3 + $0x20] sm:$0xff] }
0x113f   :  { %5683 = vmatpush3.msra.mxu0 %v3624_v8  ;;  %5697 = vmatprep.subr.mxu1 %v6111_v23 }
0x1140   :  { %v6045_v0 = vpop.eup %6044  ;;  %5692 = vmatprep.subr.mxu0 %v6111_v23 }
0x1141   :  { %v3618_v41 = vmul.f32 %v6045_v0, %v6037_v29  ;;  %v3778_v19 = vpop.permute.xlu1 %3777  ;;  %v4143_v0 = vld [vmem:[#allocation3 + $0x30] sm:$0xff] }
0x1143   :  { %5685 = vmatmul.mubr.msk.f32.vlgmr.msra.gmra.mrb[42].mxu0 %vm753_vm3, %v3618_v41  ;;  %v4144_v41 = vld [vmem:[#allocation3 + $0x38] sm:$0xff] }
0x1144   :  { %v6047_v31 = vpop.eup %6046  ;;  %5693 = vmatpush3.msra.mxu0 %v3778_v19  ;;  %5694 = vmatprep.mubr.msk.f32.mxu0 %vm6112_vm1, %v6111_v23  ;;  %v5899_v19 = vpack.c.bf16 %v4144_v41, %v4143_v0 }
0x1145   :  { %v6049_v12 = vpop.eup %6048  ;;  %v3619_v44 = vmul.f32 %v6047_v31, %v6039_v17  ;;  %5888 = vmatprep.subr.bf16.mxu0 %v5887_v61 }
0x1146   :  { %v3620_v46 = vmul.f32 %v6049_v12, %v6041_v13 }
0x1147   :  { %5690 = vmatmul.mubr.msk.f32.vlgmr.msra.gmra.mrb[50].mxu1 %vm753_vm3, %v3619_v44 }
0x1148   :  { %5695 = vmatmul.mubr.msk.f32.vlgmr.msra.gmra.mrb[44].mxu0 %vm753_vm3, %v3620_v46  ;;  %5699 = vmatprep.mubr.msk.f32.mxu1 %vm6112_vm1, %v6111_v23 }
0x1149   :  { %5890 = vmatpush3.bf16.msra.mxu0 %v5887_v61 }
0x114a   :  { %5892 = vmatprep.subr.bf16.mxu0 %v5891_v27 }
0x114d   :  { %5894 = vmatpush3.bf16.msra.mxu0 %v5891_v27 }
0x1172   :  { %v3613_v1 = vpop.xlane.xlu1 %3612 }
0x1173   :  { %6050 = vrcp.f32 %v3613_v1 }
0x1176   :  { %v3855_v48 = vpop.permute.xlu1 %3854 }
0x1177   :  { %5698 = vmatpush3.msra.mxu1 %v3855_v48 }
0x117d   :  { %v6051_v22 = vpop.eup %6050 }
0x117e   :  { %v3621_v43 = vmul.f32 %v6051_v22, %v6043_v42 }
0x1180   :  { %5700 = vmatmul.mubr.msk.f32.vlgmr.msra.gmra.mrb[52].mxu1 %vm753_vm3, %v3621_v43 }
0x1216   :  { %v3695_v28 = vpop.f32.mrb[42].mxu0 }
0x1217   :  { %3934 = vrot.lane.b32.xlu0 %v3695_v28, %s7220_s14  ;;  %v5686_v30 = vpop.f32.mrb[43].mxu0 }
0x121a   :  { %v3772_v32 = vpop.f32.mrb[50].mxu1 }
0x121b   :  { %v3849_v33 = vpop.f32.mrb[44].mxu0  ;;  %v5691_v7 = vpop.f32.mrb[51].mxu1  ;;  %3936 = vrot.lane.b32.xlu1 %v3772_v32, %s7220_s14 }
0x121c   :  { %3938 = vrot.lane.b32.xlu0 %v3849_v33, %s7220_s14  ;;  %v5696_v2 = vpop.f32.mrb[45].mxu0  ;;  %v5168_v33 = vld [vmem:[%s7170_s12 + $0x1] ss:$0 sm:$0xff] }
0x1253   :  { %v3926_v45 = vpop.f32.mrb[52].mxu1 }
0x1254   :  { %3940 = vrot.lane.b32.xlu1 %v3926_v45, %s7220_s14  ;;  %v5701_v47 = vpop.f32.mrb[53].mxu1 }
0x1255   :  { %v5169_v47 = vld [vmem:[%s7171_s13 + $0x1] ss:$0 sm:$0xff] }
0x1289   :  { %v3935_v49 = vpop.permute.xlu0 %3934 }
0x128a   :  { %v3946_v50 = vsel %vm416_vm2, %v6856_v9, %v3935_v49  ;;  %v5161_v9 = vld [vmem:[%s7169_s11 + $0x1] ss:$0 sm:$0xff] }
0x128b   :  { %5710 = vmatprep.mubr.msk.f32.mxu0 %vm126_vm0, %v3946_v50 }
0x128d   :  { %v3937_v60 = vpop.permute.xlu1 %3936 }
0x128e   :  { %v3947_v35 = vsel %vm416_vm2, %v6858_v10, %v3937_v60  ;;  %v3939_v40 = vpop.permute.xlu0 %3938 }
0x128f   :  { %v3948_v51 = vsel %vm416_vm2, %v6860_v11, %v3939_v40  ;;  %5711 = vmatmul.mubr.msk.f32.vlgmr.msra.gmra.mrb[46].mxu0 %vm126_vm0, %v3947_v35 }
0x1290   :  { %5713 = vmatprep.mubr.msk.f32.mxu0 %vm126_vm0, %v3948_v51 }
0x12c6   :  { %v3941_v53 = vpop.permute.xlu1 %3940 }
0x12c7   :  { %v3949_v54 = vsel %vm416_vm2, %v6862_v16, %v3941_v53 }
0x12c8   :  { %5714 = vmatmul.mubr.msk.f32.gmra.mrb[48].mxu0 %vm126_vm0, %v3949_v54 }
0x1362   :  { %v5712_v5 = vpop.f32.mrb[46].mxu0 }
0x1363   :  { %v4047_v10 = vadd.f32 %v5712_v5, %v5161_v9  ;;  %v4041_v55 = vpop.f32.mrb[47].mxu0 }
0x1364   :  { %v4042_v4 = vadd.f32 %v5161_v9, %v4041_v55 }
0x1365   :  { %v4061_v11 = vadd.f32 %v4047_v10, %v6708_v20 }
0x1366   :  { %v4060_v56 = vadd.f32 %v4042_v4, %v6706_v14 }
0x1367   :  { %v4071_v57 = vsel %vm126_vm0, %v4061_v11, 0.0 }
0x1368   :  { %4072 = vadd.xlane.f32.xlu1 %v4071_v57  ;;  %v4068_v58 = vsel %vm126_vm0, %v4060_v56, 0.0 }
0x1369   :  { %4069 = vadd.xlane.f32.xlu0 %v4068_v58 }
0x139b   :  { %v5715_v16 = vpop.f32.mrb[48].mxu0 }
0x139c   :  { %v4051_v29 = vpop.f32.mrb[49].mxu0  ;;  %v4057_v39 = vadd.f32 %v5715_v16, %v5161_v9 }
0x139d   :  { %v4052_v17 = vadd.f32 %v5161_v9, %v4051_v29  ;;  %v5176_v29 = vld [vmem:[%s7174_s16 + $0x40] sm:$0xff] }
0x139e   :  { %v4063_v15 = vadd.f32 %v4057_v39, %v6721_v37  ;;  %v4142_v37 = vld [vmem:[#allocation3 + $0x28] sm:$0xff] }
0x139f   :  { %v4062_v13 = vadd.f32 %v4052_v17, %v6719_v34  ;;  %v5895_v8 = vpack.c.bf16 %v4142_v37, %v4141_v52  ;;  %v5177_v39 = vld [vmem:[%s7174_s16 + $0x48] sm:$0xff] }
0x13a0   :  { %v4077_v20 = vsel %vm126_vm0, %v4063_v15, 0.0  ;;  %v5903_v17 = vpack.c.bf16 %v5177_v39, %v5176_v29  ;;  %v5185_v29 = vld [vmem:[%s7175_s17 + $0x1] ss:$0 sm:$0xff] }
0x13a1   :  { %v4074_v18 = vsel %vm126_vm0, %v4062_v13, 0.0  ;;  %5896 = vmatprep.subr.bf16.mxu1 %v5895_v8 }
0x13a2   :  { %4075 = vadd.xlane.f32.xlu0 %v4074_v18  ;;  %5898 = vmatpush3.bf16.msra.mxu1 %v5895_v8  ;;  %v5179_v18 = vld [vmem:[%s7174_s16 + $0x58] sm:$0xff] }
0x13a3   :  { %5900 = vmatprep.subr.bf16.mxu1 %v5899_v19  ;;  %5904 = vmatprep.subr.bf16.mxu0 %v5903_v17 }
0x13a4   :  { %5906 = vmatpush3.bf16.msra.mxu0 %v5903_v17 }
0x13a6   :  { %4078 = vadd.xlane.f32.xlu0 %v4077_v20  ;;  %5902 = vmatpush3.bf16.msra.mxu1 %v5899_v19  ;;  %v5180_v20 = vld [vmem:[%s7174_s16 + $0x60] sm:$0xff] }
0x13f5   :  { %v4073_v14 = vpop.xlane.xlu1 %4072 }
0x13f6   :  { %v4081_v62 = vmul.f32 0.03125, %v4073_v14  ;;  %v4070_v63 = vpop.xlane.xlu0 %4069  ;;  %v5181_v14 = vld [vmem:[%s7174_s16 + $0x68] sm:$0xff] }
0x13f7   :  { %v4080_v36 = vmul.f32 0.03125, %v4070_v63  ;;  %v5182_v63 = vld [vmem:[%s7174_s16 + $0x70] sm:$0xff] }
0x13f8   :  { %v4085_v42 = vsub.f32 %v4061_v11, %v4081_v62  ;;  %v5911_v62 = vpack.c.bf16 %v5181_v14, %v5180_v20 }
0x13f9   :  { %v4084_v25 = vsub.f32 %v4060_v56, %v4080_v36  ;;  %v5183_v36 = vld [vmem:[%s7174_s16 + $0x78] sm:$0xff] }
0x13fa   :  { %v4089_v3 = vmul.f32 %v4085_v42, %v4085_v42 }
0x13fb   :  { %v4088_v38 = vmul.f32 %v4084_v25, %v4084_v25 }
0x13fc   :  { %v4095_v6 = vsel %vm126_vm0, %v4089_v3, 0.0 }
0x13fd   :  { %4096 = vadd.xlane.f32.xlu1 %v4095_v6  ;;  %v4092_v34 = vsel %vm126_vm0, %v4088_v38, 0.0 }
0x13fe   :  { %4093 = vadd.xlane.f32.xlu0 %v4092_v34 }
0x142f   :  { %v4076_v31 = vpop.xlane.xlu0 %4075 }
0x1430   :  { %v4082_v12 = vmul.f32 0.03125, %v4076_v31 }
0x1432   :  { %v4086_v44 = vsub.f32 %v4062_v13, %v4082_v12  ;;  %v5178_v13 = vld [vmem:[%s7174_s16 + $0x50] sm:$0xff] }
0x1433   :  { %v4079_v46 = vpop.xlane.xlu0 %4078 }
0x1434   :  { %v4083_v1 = vmul.f32 0.03125, %v4079_v46  ;;  %v4090_v48 = vmul.f32 %v4086_v44, %v4086_v44 }
0x1436   :  { %v4087_v22 = vsub.f32 %v4063_v15, %v4083_v1  ;;  %v4098_v43 = vsel %vm126_vm0, %v4090_v48, 0.0  ;;  %v5907_v15 = vpack.c.bf16 %v5179_v18, %v5178_v13 }
0x1437   :  { %4099 = vadd.xlane.f32.xlu0 %v4098_v43 }
0x1438   :  { %v4091_v21 = vmul.f32 %v4087_v22, %v4087_v22  ;;  %5908 = vmatprep.subr.bf16.mxu0 %v5907_v15 }
0x1439   :  { %5910 = vmatpush3.bf16.msra.mxu0 %v5907_v15 }
0x143a   :  { %v4101_v24 = vsel %vm126_vm0, %v4091_v21, 0.0  ;;  %5912 = vmatprep.subr.bf16.mxu0 %v5911_v62 }
0x143b   :  { %4102 = vadd.xlane.f32.xlu1 %v4101_v24 }
0x143d   :  { %5914 = vmatpush3.bf16.msra.mxu0 %v5911_v62 }
0x148a   :  { %v4097_v61 = vpop.xlane.xlu1 %4096 }
0x148b   :  { %v4105_v59 = vmul.f32 0.03125, %v4097_v61  ;;  %v4094_v26 = vpop.xlane.xlu0 %4093 }
0x148c   :  { %v4104_v27 = vmul.f32 0.03125, %v4094_v26 }
0x148d   :  { %v4109_v28 = vadd.f32 1e-12, %v4105_v59 }
0x148e   :  { %v4108_v30 = vadd.f32 1e-12, %v4104_v27 }
0x148f   :  { %6052 = vrsqrt.f32 %v4109_v28 }
0x1490   :  { %6054 = vrsqrt.f32 %v4108_v30 }
0x1499   :  { %v6053_v32 = vpop.eup %6052 }
0x149a   :  { %v6055_v7 = vpop.eup %6054  ;;  %v4117_v2 = vmul.f32 %v6053_v32, %v4085_v42  ;;  %v5915_v42 = vpack.c.bf16 %v5183_v36, %v5182_v63 }
0x149b   :  { %v4116_v45 = vmul.f32 %v6055_v7, %v4084_v25  ;;  %v5171_v25 = vld [vmem:[%s7173_s15 + $0x1] ss:$0 sm:$0xff] }
0x149c   :  { %v4127_v49 = vmul.f32 %v5168_v33, %v4117_v2  ;;  %5916 = vmatprep.subr.bf16.mxu0 %v5915_v42 }
0x149d   :  { %v4126_v50 = vmul.f32 %v5168_v33, %v4116_v45  ;;  %5918 = vmatpush3.bf16.msra.mxu0 %v5915_v42 }
0x149e   :  { %v6945_v35 = vadd.f32 %v5169_v47, %v4127_v49 }
0x149f   :  { %v6943_v60 = vadd.f32 %v5169_v47, %v4126_v50 }
0x14a1   :  { %5724 = vmatprep.mubr.msk.f32.mxu1 %vm126_vm0, %v6943_v60 }
0x14a2   :  { %5725 = vmatmul.mubr.msk.f32.vlgmr.msra.gmra.mrb[54].mxu1 %vm126_vm0, %v6945_v35 }
0x14c4   :  { %v4100_v40 = vpop.xlane.xlu0 %4099 }
0x14c5   :  { %v4106_v51 = vmul.f32 0.03125, %v4100_v40 }
0x14c7   :  { %v4110_v53 = vadd.f32 1e-12, %v4106_v51 }
0x14c8   :  { %v4103_v54 = vpop.xlane.xlu1 %4102 }
0x14c9   :  { %6056 = vrsqrt.f32 %v4110_v53  ;;  %v4107_v9 = vmul.f32 0.03125, %v4103_v54 }
0x14cb   :  { %v4111_v5 = vadd.f32 1e-12, %v4107_v9 }
0x14cd   :  { %6058 = vrsqrt.f32 %v4111_v5 }
0x14d3   :  { %v6057_v10 = vpop.eup %6056 }
0x14d4   :  { %v4118_v55 = vmul.f32 %v6057_v10, %v4086_v44 }
0x14d6   :  { %v4128_v4 = vmul.f32 %v5168_v33, %v4118_v55 }
0x14d7   :  { %v6059_v11 = vpop.eup %6058 }
0x14d8   :  { %v6951_v56 = vadd.f32 %v5169_v47, %v4128_v4  ;;  %v4119_v57 = vmul.f32 %v6059_v11, %v4087_v22 }
0x14da   :  { %5727 = vmatprep.mubr.msk.f32.mxu1 %vm126_vm0, %v6951_v56  ;;  %v4129_v58 = vmul.f32 %v5168_v33, %v4119_v57 }
0x14dc   :  { %v6955_v16 = vadd.f32 %v5169_v47, %v4129_v58 }
0x14de   :  { %5728 = vmatmul.mubr.msk.f32.gmra.mrb[56].mxu1 %vm126_vm0, %v6955_v16 }
0x14df   :  { %5760 = vmatprep.mubr.msk.f32.mxu1 %vm6112_vm1, %v6111_v23 }
0x1575   :  { %v5726_v3 = vpop.f32.mrb[54].mxu1 }
0x1576   :  { %v4237_v38 = vadd.f32 %v5726_v3, %v5171_v25  ;;  %v4231_v6 = vpop.f32.mrb[55].mxu1 }
0x1577   :  { %v4232_v34 = vadd.f32 %v5171_v25, %v4231_v6  ;;  %v6115_v6 = vmov 0  }
0x1578   :  { %v4251_v52 = vmul.f32 %v4237_v38, %v4237_v38  ;;  %5963 = vset.pattern.permute.xlu1 %v6115_v6  ;;  %5962 = vset.pattern.permute.xlu0 %v6115_v6  ;;  %v5197_v6 = vld [vmem:[%s7180_s22 + $0x28] sm:$0xff] }
0x1579   :  { %v4250_v37 = vmul.f32 %v4232_v34, %v4232_v34 }
0x157a   :  { %v4255_v8 = vmul.f32 %v4251_v52, %v4237_v38 }
0x157b   :  { %v4254_v0 = vmul.f32 %v4250_v37, %v4232_v34 }
0x157c   :  { %v4259_v41 = vmul.f32 0.044715, %v4255_v8 }
0x157d   :  { %v4258_v19 = vmul.f32 0.044715, %v4254_v0 }
0x157e   :  { %v4263_v31 = vadd.f32 %v4259_v41, %v4237_v38 }
0x157f   :  { %v4262_v12 = vadd.f32 %v4258_v19, %v4232_v34 }
0x1580   :  { %v4267_v44 = vmul.f32 0.7978846, %v4263_v31 }
0x1581   :  { %v4266_v46 = vmul.f32 0.7978846, %v4262_v12 }
0x1582   :  { %6060 = vtanh.f32 %v4267_v44  ;;  %v4480_v44 = vld [vmem:[%s7221_s5] sm:$0xff] }
0x1583   :  { %6062 = vtanh.f32 %v4266_v46 }
0x158c   :  { %v6061_v1 = vpop.eup %6060 }
0x158d   :  { %v6063_v48 = vpop.eup %6062  ;;  %v4275_v22 = vadd.f32 1.0, %v6061_v1 }
0x158e   :  { %v4274_v43 = vadd.f32 1.0, %v6063_v48 }
0x158f   :  { %v4279_v21 = vmul.f32 0.5, %v4275_v22 }
0x1590   :  { %v4278_v24 = vmul.f32 0.5, %v4274_v43 }
0x1591   :  { %v4283_v59 = vmul.f32 %v4279_v21, %v4237_v38 }
0x1592   :  { %v4282_v61 = vmul.f32 %v4278_v24, %v4232_v34 }
0x1594   :  { %5746 = vmatprep.mubr.msk.f32.mxu0 %vm2128_vm4, %v4282_v61  ;;  %v4537_v61 = vsel %vm4536_vm5, %v4480_v44, 0.0 }
0x1595   :  { %5747 = vmatmul.mubr.msk.f32.vlgmr.msra.gmra.mrb[50].mxu0 %vm2128_vm4, %v4283_v59 }
0x15b1   :  { %v5729_v26 = vpop.f32.mrb[56].mxu1 }
0x15b2   :  { %v4247_v27 = vadd.f32 %v5729_v26, %v5171_v25  ;;  %v4241_v28 = vpop.f32.mrb[57].mxu1  ;;  %v4481_v26 = vld [vmem:[%s7221_s5 + $0x8] sm:$0xff] }
0x15b3   :  { %v4242_v30 = vadd.f32 %v5171_v25, %v4241_v28 }
0x15b4   :  { %v4253_v32 = vmul.f32 %v4247_v27, %v4247_v27 }
0x15b5   :  { %v4252_v33 = vmul.f32 %v4242_v30, %v4242_v30 }
0x15b6   :  { %v4257_v7 = vmul.f32 %v4253_v32, %v4247_v27 }
0x15b7   :  { %v4256_v2 = vmul.f32 %v4252_v33, %v4242_v30 }
0x15b8   :  { %v4261_v45 = vmul.f32 0.044715, %v4257_v7 }
0x15b9   :  { %v4260_v47 = vmul.f32 0.044715, %v4256_v2  ;;  %v4538_v2 = vrot.slane %v4537_v61, 4 }
0x15ba   :  { %v4265_v49 = vadd.f32 %v4261_v45, %v4247_v27  ;;  %v4544_v45 = vsel %vm4536_vm5, %v4481_v26, 0.0 }
0x15bb   :  { %v4264_v50 = vadd.f32 %v4260_v47, %v4242_v30 }
0x15bc   :  { %v4269_v40 = vmul.f32 0.7978846, %v4265_v49 }
0x15bd   :  { %v4268_v51 = vmul.f32 0.7978846, %v4264_v50 }
0x15be   :  { %6064 = vtanh.f32 %v4269_v40 }
0x15bf   :  { %6066 = vtanh.f32 %v4268_v51  ;;  %v4539_v51 = vadd.f32 %v4538_v2, %v4537_v61  ;;  %v5192_v2 = vld [vmem:[%s7176_s18 + $0x1] ss:$0 sm:$0xff] }
0x15c8   :  { %v6065_v53 = vpop.eup %6064 }
0x15c9   :  { %v6067_v54 = vpop.eup %6066  ;;  %v4277_v9 = vadd.f32 1.0, %v6065_v53  ;;  %v4545_v53 = vrot.slane %v4544_v45, 4 }
0x15ca   :  { %v4276_v5 = vadd.f32 1.0, %v6067_v54 }
0x15cb   :  { %v4281_v10 = vmul.f32 0.5, %v4277_v9 }
0x15cc   :  { %v4280_v55 = vmul.f32 0.5, %v4276_v5  ;;  %v4540_v5 = vrot.slane %v4539_v51, 2 }
0x15cd   :  { %v4285_v11 = vmul.f32 %v4281_v10, %v4247_v27  ;;  %v4546_v10 = vadd.f32 %v4545_v53, %v4544_v45 }
0x15ce   :  { %v4284_v4 = vmul.f32 %v4280_v55, %v4242_v30 }
0x15d0   :  { %5749 = vmatprep.mubr.msk.f32.mxu0 %vm2128_vm4, %v4284_v4 }
0x15d1   :  { %5750 = vmatmul.mubr.msk.f32.gmra.mrb[52].mxu0 %vm2128_vm4, %v4285_v11  ;;  %v4541_v11 = vadd.f32 %v4540_v5, %v4539_v51 }
0x15d2   :  { %5782 = vmatprep.mubr.msk.f32.mxu0 %vm6112_vm1, %v6111_v23 }
0x1668   :  { %v5748_v57 = vpop.f32.mrb[50].mxu0 }
0x1669   :  { %v4381_v58 = vpop.f32.mrb[51].mxu0  ;;  %v4387_v17 = vadd.f32 %v5748_v57, %v5185_v29  ;;  %v4547_v57 = vrot.slane %v4546_v10, 2 }
0x166a   :  { %v4382_v15 = vadd.f32 %v5185_v29, %v4381_v58 }
0x166b   :  { %v4401_v36 = vadd.f32 %v4387_v17, %v6945_v35  ;;  %v4548_v17 = vadd.f32 %v4547_v57, %v4546_v10 }
0x166c   :  { %v4400_v25 = vadd.f32 %v4382_v15, %v6943_v60  ;;  %v4483_v60 = vld [vmem:[%s7221_s5 + $0x18] sm:$0xff] }
0x166d   :  { %v4411_v3 = vsel %vm126_vm0, %v4401_v36, 0.0  ;;  %v4558_v41 = vsel %vm4536_vm5, %v4483_v60, 0.0  ;;  %v4549_v15 = vrot.slane %v4548_v17, 1 }
0x166e   :  { %v4408_v38 = vsel %vm126_vm0, %v4400_v25, 0.0  ;;  %v4559_v48 = vrot.slane %v4558_v41, 4 }
0x1670   :  { %v4560_v30 = vadd.f32 %v4559_v48, %v4558_v41  ;;  %v5205_v41 = vld [vmem:[%s7180_s22 + $0x58] sm:$0xff] }
0x1672   :  { %v4561_v49 = vrot.slane %v4560_v30, 2 }
0x1674   :  { %v4562_v9 = vadd.f32 %v4561_v49, %v4560_v30 }
0x1676   :  { %v4563_v4 = vrot.slane %v4562_v9, 1 }
0x1678   :  { %v4564_v58 = vadd.f32 %v4563_v4, %v4562_v9 }
0x16a4   :  { %v5751_v39 = vpop.f32.mrb[52].mxu0 }
0x16a5   :  { %v4397_v13 = vadd.f32 %v5751_v39, %v5185_v29  ;;  %v4391_v18 = vpop.f32.mrb[53].mxu0  ;;  %v4542_v39 = vrot.slane %v4541_v11, 1 }
0x16a6   :  { %v4392_v20 = vadd.f32 %v5185_v29, %v4391_v18 }
0x16a7   :  { %v4403_v14 = vadd.f32 %v4397_v13, %v6955_v16  ;;  %v4568_v13 = vmax.f32 %v4564_v58, 1e-09  ;;  %v4543_v18 = vadd.f32 %v4542_v39, %v4541_v11 }
0x16a8   :  { %v4402_v62 = vadd.f32 %v4392_v20, %v6951_v56  ;;  %v7008_v56 = vld [vmem:[%s7221_s5 + $0x10] sm:$0xff] }
0x16a9   :  { %v4417_v63 = vsel %vm126_vm0, %v4403_v14, 0.0  ;;  %v4551_v34 = vsel %vm4536_vm5, %v7008_v56, 0.0  ;;  %v4565_v20 = vmax.f32 %v4543_v18, 1e-09 }
0x16aa   :  { %4418 = vadd.xlane.f32.xlu1 %v4417_v63  ;;  %v4414_v42 = vsel %vm126_vm0, %v4402_v62, 0.0  ;;  %v4552_v0 = vrot.slane %v4551_v34, 4 }
0x16ab   :  { %4415 = vadd.xlane.f32.xlu0 %v4414_v42 }
0x16ac   :  { %v4553_v21 = vadd.f32 %v4552_v0, %v4551_v34  ;;  %v5204_v0 = vld [vmem:[%s7180_s22 + $0x50] sm:$0xff] }
0x16ae   :  { %4412 = vadd.xlane.f32.xlu1 %v4411_v3  ;;  %v4554_v7 = vrot.slane %v4553_v21, 2  ;;  %v4597_v3 = vld [vmem:[%s7222_s3] sm:$0x3] }
0x16af   :  { %4409 = vadd.xlane.f32.xlu0 %v4408_v38  ;;  %v5196_v38 = vld [vmem:[%s7180_s22 + $0x20] sm:$0xff] }
0x16b0   :  { %v4555_v40 = vadd.f32 %v4554_v7, %v4553_v21 }
0x16b2   :  { %v4556_v54 = vrot.slane %v4555_v40, 1 }
0x16b4   :  { %v4557_v55 = vadd.f32 %v4556_v54, %v4555_v40 }
0x16b6   :  { %v4567_v29 = vmax.f32 %v4557_v55, 1e-09 }
0x16b8   :  { %6068 = vrcp.f32 %v4567_v29 }
0x16b9   :  { %6070 = vrcp.f32 %v4568_v13 }
0x16ba   :  { %6072 = vrcp.f32 %v4565_v20 }
0x16c2   :  { %v6069_v63 = vpop.eup %6068 }
0x1737   :  { %v4419_v35 = vpop.xlane.xlu1 %4418 }
0x1738   :  { %v4416_v16 = vpop.xlane.xlu0 %4415  ;;  %v4423_v52 = vmul.f32 0.03125, %v4419_v35  ;;  %v6116_v35 = vmov 0.0|0.0  }
0x1739   :  { %v4422_v37 = vmul.f32 0.03125, %v4416_v16  ;;  %5919 = vmatprep.subr.bf16.mxu1 %v6116_v35  ;;  %5931 = vmatprep.subr.bf16.mxu0 %v6116_v35  ;;  %v5198_v16 = vld [vmem:[%s7180_s22 + $0x30] sm:$0xff] }
0x173a   :  { %v7019_v46 = vsub.f32 %v4403_v14, %v4423_v52  ;;  %v4550_v14 = vadd.f32 %v4549_v15, %v4548_v17  ;;  %v5202_v52 = vld [vmem:[%s7180_s22 + $0x40] sm:$0xff] }
0x173b   :  { %v4413_v8 = vpop.xlane.xlu1 %4412  ;;  %v7023_v22 = vsub.f32 %v4402_v62, %v4422_v37  ;;  %v5203_v37 = vld [vmem:[%s7180_s22 + $0x48] sm:$0xff] }
0x173c   :  { %v4421_v19 = vmul.f32 0.03125, %v4413_v8  ;;  %v4410_v31 = vpop.xlane.xlu0 %4409  ;;  %v4431_v28 = vmul.f32 %v7019_v46, %v7019_v46  ;;  %v4566_v62 = vmax.f32 %v4550_v14, 1e-09  ;;  %v5932_v8 = vpack.c.bf16 %v5203_v37, %v5202_v52 }
0x173d   :  { %v4420_v12 = vmul.f32 0.03125, %v4410_v31  ;;  %v4430_v33 = vmul.f32 %v7023_v22, %v7023_v22 }
0x173e   :  { %v7021_v1 = vsub.f32 %v4401_v36, %v4421_v19  ;;  %v4441_v47 = vsel %vm126_vm0, %v4431_v28, 0.0  ;;  %6074 = vrcp.f32 %v4566_v62  ;;  %v6071_v36 = vpop.eup %6070  ;;  %5933 = vmatpush3.bf16.msra.mxu0 %v5932_v8  ;;  %v5935_v19 = vpack.c.bf16 %v5205_v41, %v5204_v0 }
0x173f   :  { %v7025_v43 = vsub.f32 %v4400_v25, %v4420_v12  ;;  %v4438_v50 = vsel %vm126_vm0, %v4430_v33, 0.0  ;;  %v6073_v42 = vpop.eup %6072  ;;  %5934 = vmatprep.subr.bf16.mxu0 %v6116_v35 }
0x1740   :  { %v4429_v24 = vmul.f32 %v7021_v1, %v7021_v1 }
0x1741   :  { %v4428_v59 = vmul.f32 %v7025_v43, %v7025_v43 }
0x1742   :  { %v4435_v27 = vsel %vm126_vm0, %v4429_v24, 0.0  ;;  %5936 = vmatpush3.bf16.msra.mxu0 %v5935_v19 }
0x1743   :  { %4436 = vadd.xlane.f32.xlu1 %v4435_v27  ;;  %v4432_v32 = vsel %vm126_vm0, %v4428_v59, 0.0  ;;  %5943 = vmatprep.subr.bf16.mxu0 %v6116_v35 }
0x1744   :  { %4433 = vadd.xlane.f32.xlu0 %v4432_v32 }
0x1747   :  { %4442 = vadd.xlane.f32.xlu1 %v4441_v47 }
0x1748   :  { %4439 = vadd.xlane.f32.xlu0 %v4438_v50  ;;  %v6075_v25 = vpop.eup %6074  ;;  %v5193_v50 = vld [vmem:[%s7177_s19 + $0x1] ss:$0 sm:$0xff] }
0x1758   :  { %4501 = vperm.xlu1 %5963, %v4483_v60   ;;  %v5199_v60 = vld [vmem:[%s7180_s22 + $0x38] sm:$0xff] }
0x1759   :  { %v5923_v34 = vpack.c.bf16 %v5199_v60, %v5198_v16 }
0x175c   :  { %4486 = vperm.xlu1 %5963, %v4480_v44  }
0x175e   :  { %4496 = vperm.xlu0 %5962, %v7008_v56   ;;  %v5920_v56 = vpack.c.bf16 %v5197_v6, %v5196_v38 }
0x1760   :  { %4491 = vperm.xlu1 %5963, %v4481_v26   ;;  %5921 = vmatpush3.bf16.msra.mxu1 %v5920_v56 }
0x1761   :  { %5922 = vmatprep.subr.bf16.mxu1 %v6116_v35 }
0x1764   :  { %4585 = vperm.xlu1 %5963, %v6069_v63   ;;  %5924 = vmatpush3.bf16.msra.mxu1 %v5923_v34 }
0x1765   :  { %5925 = vmatprep.subr.bf16.mxu1 %v6116_v35 }
0x1768   :  { %4590 = vperm.xlu1 %5963, %v6071_v36  }
0x176c   :  { %4575 = vperm.xlu1 %5963, %v6073_v42  }
0x1770   :  { %4580 = vperm.xlu1 %5963, %v6075_v25  }
0x1774   :  { %4601 = vperm.xlu1 %5963, %v4597_v3  }
0x17d0   :  { %v4437_v31 = vpop.xlane.xlu1 %4436 }
0x17d1   :  { %v4445_v12 = vmul.f32 0.03125, %v4437_v31  ;;  %v4434_v44 = vpop.xlane.xlu0 %4433 }
0x17d2   :  { %v4444_v48 = vmul.f32 0.03125, %v4434_v44 }
0x17d3   :  { %v4449_v21 = vadd.f32 1e-12, %v4445_v12 }
0x17d4   :  { %v4448_v24 = vadd.f32 1e-12, %v4444_v48  ;;  %v4443_v61 = vpop.xlane.xlu1 %4442 }
0x17d5   :  { %6076 = vrsqrt.f32 %v4449_v21  ;;  %v4447_v59 = vmul.f32 0.03125, %v4443_v61  ;;  %v4440_v26 = vpop.xlane.xlu0 %4439  ;;  %v4620_v61 = vld [vmem:[%s7180_s22] sm:$0xff] }
0x17d6   :  { %6078 = vrsqrt.f32 %v4448_v24  ;;  %v4446_v27 = vmul.f32 0.03125, %v4440_v26 }
0x17d7   :  { %v4451_v28 = vadd.f32 1e-12, %v4447_v59  ;;  %v4621_v59 = vld [vmem:[%s7180_s22 + $0x8] sm:$0xff] }
0x17d8   :  { %v4450_v30 = vadd.f32 1e-12, %v4446_v27  ;;  %v4502_v32 = vpop.permute.xlu1 %4501 }
0x17d9   :  { %6080 = vrsqrt.f32 %v4451_v28 }
0x17da   :  { %6082 = vrsqrt.f32 %v4450_v30 }
0x17dc   :  { %v4487_v33 = vpop.permute.xlu1 %4486 }
0x17dd   :  { %v4497_v13 = vpop.permute.xlu0 %4496 }
0x17df   :  { %v6077_v7 = vpop.eup %6076 }
0x17e0   :  { %v6079_v45 = vpop.eup %6078  ;;  %v4457_v47 = vmul.f32 %v6077_v7, %v7021_v1  ;;  %v4492_v49 = vpop.permute.xlu1 %4491  ;;  %v5926_v7 = vpack.c.bf16 %v4621_v59, %v4620_v61 }
0x17e1   :  { %v4456_v40 = vmul.f32 %v6079_v45, %v7025_v43  ;;  %v4622_v45 = vld [vmem:[%s7180_s22 + $0x10] sm:$0xff] }
0x17e2   :  { %v4467_v51 = vmul.f32 %v5192_v2, %v4457_v47  ;;  %v4623_v47 = vld [vmem:[%s7180_s22 + $0x18] sm:$0xff] }
0x17e3   :  { %v6081_v53 = vpop.eup %6080  ;;  %v4466_v54 = vmul.f32 %v5192_v2, %v4456_v40 }
0x17e4   :  { %v6083_v9 = vpop.eup %6082  ;;  %v4459_v5 = vmul.f32 %v6081_v53, %v7019_v46  ;;  %v4477_v10 = vadd.f32 %v5193_v50, %v4467_v51  ;;  %v4586_v1 = vpop.permute.xlu1 %4585  ;;  %v5929_v53 = vpack.c.bf16 %v4623_v47, %v4622_v45 }
0x17e5   :  { %v4476_v55 = vadd.f32 %v5193_v50, %v4466_v54  ;;  %v4458_v4 = vmul.f32 %v6083_v9, %v7023_v22  ;;  %v5207_v54 = vld [vmem:[%s7180_s22 + $0x60] sm:$0xff]  ;;  %v5208_v9 = vld [vmem:[%s7180_s22 + $0x68] sm:$0xff] }
0x17e6   :  { %v4469_v11 = vmul.f32 %v5192_v2, %v4459_v5  ;;  %v4505_v57 = vmul.f32 %v4492_v49, %v4477_v10  ;;  %v5194_v10 = vld [vmem:[%s7178_s20] ss:$0 sm:$0xff] }
0x17e7   :  { %v4504_v58 = vmul.f32 %v4487_v33, %v4476_v55  ;;  %v4468_v29 = vmul.f32 %v5192_v2, %v4458_v4  ;;  %v5938_v4 = vpack.c.bf16 %v5208_v9, %v5207_v54 }
0x17e8   :  { %v4479_v39 = vadd.f32 %v5193_v50, %v4469_v11  ;;  %v4515_v17 = vsel %vm126_vm0, %v4505_v57, 0.0  ;;  %v4591_v36 = vpop.permute.xlu1 %4590  ;;  %v5209_v57 = vld [vmem:[%s7180_s22 + $0x70] sm:$0xff] }
0x17e9   :  { %v4508_v43 = vsel %vm126_vm0, %v4504_v58, 0.0  ;;  %v4516_v18 = vrot.slane %v4515_v17, 4  ;;  %v4478_v15 = vadd.f32 %v5193_v50, %v4468_v29  ;;  %v5195_v29 = vld [vmem:[%s7179_s21] ss:$0 sm:$0xff] }
0x17ea   :  { %v4507_v20 = vmul.f32 %v4502_v32, %v4479_v39  ;;  %v4509_v14 = vrot.slane %v4508_v43, 4 }
0x17eb   :  { %v4517_v46 = vadd.f32 %v4516_v18, %v4515_v17  ;;  %v4506_v62 = vmul.f32 %v4497_v13, %v4478_v15  ;;  %v4954_v18 = vld [vmem:[%s7182_s24 + $0x8] sm:$0xff] }
0x17ec   :  { %v4529_v63 = vsel %vm126_vm0, %v4507_v20, 0.0  ;;  %v4510_v22 = vadd.f32 %v4509_v14, %v4508_v43  ;;  %v4576_v0 = vpop.permute.xlu1 %4575  ;;  %v4953_v43 = vld [vmem:[%s7182_s24] sm:$0xff]  ;;  %v4956_v20 = vld [vmem:[%s7182_s24 + $0x18] sm:$0xff] }
0x17ed   :  { %v4530_v42 = vrot.slane %v4529_v63, 4  ;;  %v4518_v25 = vrot.slane %v4517_v46, 2  ;;  %v4522_v3 = vsel %vm126_vm0, %v4506_v62, 0.0  ;;  %v5944_v15 = vpack.c.bf16 %v4954_v18, %v4953_v43 }
0x17ee   :  { %v4511_v38 = vrot.slane %v4510_v22, 2  ;;  %v4523_v6 = vrot.slane %v4522_v3, 4 }
0x17ef   :  { %v4531_v56 = vadd.f32 %v4530_v42, %v4529_v63  ;;  %v4519_v16 = vadd.f32 %v4518_v25, %v4517_v46 }
0x17f0   :  { %v4524_v60 = vadd.f32 %v4523_v6, %v4522_v3  ;;  %v4512_v34 = vadd.f32 %v4511_v38, %v4510_v22  ;;  %v4581_v27 = vpop.permute.xlu1 %4580 }
0x17f1   :  { %v4532_v52 = vrot.slane %v4531_v56, 2  ;;  %v4520_v37 = vrot.slane %v4519_v16, 1 }
0x17f2   :  { %v4525_v8 = vrot.slane %v4524_v60, 2  ;;  %v4513_v41 = vrot.slane %v4512_v34, 1 }
0x17f3   :  { %v4533_v19 = vadd.f32 %v4532_v52, %v4531_v56  ;;  %v4521_v44 = vadd.f32 %v4520_v37, %v4519_v16 }
0x17f4   :  { %v4526_v31 = vadd.f32 %v4525_v8, %v4524_v60  ;;  %v4514_v21 = vadd.f32 %v4513_v41, %v4512_v34  ;;  %v4602_v55 = vpop.permute.xlu1 %4601  ;;  %v5213_v34 = vld [vmem:[#allocation2] ss:$0 sm:$0xff] }
0x17f5   :  { %v4534_v12 = vrot.slane %v4533_v19, 1  ;;  %v4594_v30 = vmul.f32 %v4581_v27, %v4521_v44  ;;  %v4610_v11 = vmul.f32 %v5194_v10, %v4602_v55 }
0x17f6   :  { %v4527_v48 = vrot.slane %v4526_v31, 1  ;;  %v4593_v32 = vmul.f32 %v4576_v0, %v4514_v21 }
0x17f7   :  { %v4535_v24 = vadd.f32 %v4534_v12, %v4533_v19  ;;  %v4618_v17 = vadd.f32 %v5195_v29, %v4610_v11 }
0x17f8   :  { %v4528_v26 = vadd.f32 %v4527_v48, %v4526_v31  ;;  %v4707_v58 = vsel %vm4631_vm6, %v4594_v30, %v4593_v32 }
0x17f9   :  { %v4596_v28 = vmul.f32 %v4591_v36, %v4535_v24  ;;  %v4619_v13 = vmax.f32 %v4618_v17, 0.0 }
0x17fa   :  { %v4595_v33 = vmul.f32 %v4586_v1, %v4528_v26  ;;  %v5210_v1 = vld [vmem:[%s7180_s22 + $0x78] sm:$0xff] }
0x17fb   :  { %v4781_v2 = vsub.f32 %v4594_v30, %v4596_v28  ;;  %v5941_v39 = vpack.c.bf16 %v5210_v1, %v5209_v57 }
0x17fc   :  { %v4780_v49 = vsub.f32 %v4593_v32, %v4595_v33  ;;  %v4632_v50 = vsel %vm4631_vm6, %v4596_v28, %v4595_v33 }
0x17fd   :  { %v4783_v40 = vand.u32 2147483647, %v4781_v2  ;;  %5761 = vmatmul.mubr.msk.f32.vlgmr.msra.gmra.mrb[58].mxu1 %vm126_vm0, %v4632_v50 }
0x17fe   :  { %v4782_v51 = vand.u32 2147483647, %v4780_v49  ;;  %5927 = vmatpush3.bf16.msra.mxu1 %v5926_v7  ;;  %5771 = vmatprep.mubr.msk.f32.mxu1 %vm6112_vm1, %v6111_v23 }
0x17ff   :  { %5928 = vmatprep.subr.bf16.mxu1 %v6116_v35 }
0x1800   :  { %v4791_v5 = vsel %vm4631_vm6, %v4783_v40, %v4782_v51 }
0x1801   :  { %5783 = vmatmul.mubr.msk.f32.vlgmr.msra.gmra.mrb[54].mxu0 %vm126_vm0, %v4791_v5 }
0x1802   :  { %5930 = vmatpush3.bf16.msra.mxu1 %v5929_v53  ;;  %5804 = vmatprep.mubr.msk.f32.mxu0 %vm6112_vm1, %v6111_v23 }
0x1803   :  { %5937 = vmatprep.subr.bf16.mxu1 %v6116_v35  ;;  %5945 = vmatpush3.bf16.msra.mxu0 %v5944_v15 }
0x1804   :  { %5946 = vmatprep.subr.bf16.mxu0 %v6116_v35 }
0x1805   :  { %5772 = vmatmul.mubr.msk.f32.vlgmr.msra.gmra.mrb[60].mxu1 %vm126_vm0, %v4707_v58 }
0x1806   :  { %5939 = vmatpush3.bf16.msra.mxu1 %v5938_v4  ;;  %5793 = vmatprep.mubr.msk.f32.mxu1 %vm6112_vm1, %v6111_v23  ;;  %v4955_v23 = vld [vmem:[%s7182_s24 + $0x10] sm:$0xff] }
0x1807   :  { %5940 = vmatprep.subr.bf16.mxu1 %v6116_v35  ;;  %v5947_v14 = vpack.c.bf16 %v4956_v20, %v4955_v23  ;;  %v5212_v35 = vld [vmem:[%s7181_s23] ss:$0 sm:$0xff] }
0x1809   :  { %5948 = vmatpush3.bf16.msra.mxu0 %v5947_v14 }
0x180a   :  { %5942 = vmatpush3.bf16.msra.mxu1 %v5941_v39 }
0x180d   :  { %5794 = vmatmul.mubr.msk.f32.vlgmr.msra.gmra.mrb[62].mxu1 %vm126_vm0, %v4619_v13 }
0x18d0   :  { %v4701_v46 = vpop.f32.mrb[58].mxu1 }
0x18d1   :  { %v5762_v62 = vpop.f32.mrb[59].mxu1 }
0x18d4   :  { %v4860_v63 = vpop.f32.mrb[54].mxu0 }
0x18d5   :  { %v5784_v22 = vpop.f32.mrb[55].mxu0 }
0x18d8   :  { %v4776_v36 = vpop.f32.mrb[60].mxu1 }
0x18d9   :  { %v4777_v42 = vadd.f32 %v4776_v36, %v4701_v46  ;;  %v5773_v25 = vpop.f32.mrb[61].mxu1 }
0x18db   :  { %v4864_v3 = vadd.f32 %v4860_v63, %v4777_v42 }
0x18e0   :  { %v4939_v38 = vpop.f32.mrb[62].mxu1 }
0x18e1   :  { %v4943_v6 = vadd.f32 %v4939_v38, %v4864_v3  ;;  %v5795_v56 = vpop.f32.mrb[63].mxu1 }
0x18e3   :  { %v4951_v16 = vadd.f32 %v5212_v35, %v4943_v6 }
0x18e5   :  { %v4952_v60 = vmax.f32 %v4951_v16, 0.0 }
0x18e7   :  { %5805 = vmatmul.mubr.msk.f32.vlgmr.msra.gmra.mrb[56].mxu0 %vm126_vm0, %v4952_v60 }
0x19ba   :  { %v5033_v52 = vpop.f32.mrb[56].mxu0 }
0x19bb   :  { %v5034_v37 = vadd.f32 %v5213_v34, %v5033_v52  ;;  %v5806_v8 = vpop.f32.mrb[57].mxu0 }
0x19bd   :  { %5038 = vst.msk [vmem:[%s7184_s26] sm:$0x3] %vm5037_vm7, %v5034_v37 }
0x19be   :  { %5043 = vsyncpa [#allocation4], 1 }

</bundles_post_ra>
